<compile_context>
chip_gen: v6e
topology: v6e:2x2x1
jax: 0.10.0
libtpu: 0.0.40
codegen_flags: <defaults>
</compile_context>

<pallas_src>
import functools
import numpy as np

import jax
import jax.numpy as jnp
from jax.experimental import pallas as pl
from jax.experimental.pallas import tpu as pltpu


# -----------------------------------------------------------------------------
# Small hyper-parameters (shrunk versions of FastSpeech hp.py for the demo)
# -----------------------------------------------------------------------------
class hp:
    vocab_size = 32
    max_seq_len = 64
    encoder_dim = 32
    encoder_n_layer = 2
    encoder_head = 2
    encoder_conv1d_filter_size = 64
    decoder_dim = 32
    decoder_n_layer = 2
    decoder_head = 2
    decoder_conv1d_filter_size = 64
    fft_conv1d_kernel = (9, 1)
    fft_conv1d_padding = (4, 0)
    duration_predictor_filter_size = 32
    duration_predictor_kernel_size = 3
    num_mels = 16
    dropout = 0.1  # TODO(synk): nn.Dropout randomness not reproduced (identity here)


CBHG_K = 8
CBHG_PROJECTIONS = [32, hp.num_mels]  # original FastSpeech uses [256, num_mels]
LN_EPS = 1e-5


# -----------------------------------------------------------------------------
# Kernel: fused matmul + bias + activation (+ residual, + mask)
# -----------------------------------------------------------------------------
def _linear_kernel(*refs, activation, has_residual, has_mask):
    o_ref = refs[-1]
    a_ref, w_ref, b_ref = refs[0], refs[1], refs[2]
    i = 3
    res_ref = mask_ref = None
    if has_residual:
        res_ref = refs[i]; i += 1
    if has_mask:
        mask_ref = refs[i]; i += 1
    acc = jnp.dot(a_ref[...], w_ref[...], preferred_element_type=jnp.float32)
    acc = acc + b_ref[...]
    if activation == "relu":
        acc = jnp.maximum(acc, 0.0)
    elif activation == "sigmoid":
        acc = jax.nn.sigmoid(acc)
    if has_residual:
        acc = acc + res_ref[...]
    if has_mask:
        acc = acc * mask_ref[...]
    o_ref[...] = acc


def pallas_linear(a, w, b=None, activation=None, residual=None, mask=None):
    """a: (M, K); w: (K, N); optional bias (N,), residual (M, N), mask (M, 1)."""
    M, K = a.shape
    N = w.shape[1]
    a_bf = a.astype(jnp.bfloat16)
    w_bf = w.astype(jnp.bfloat16)
    b2 = (b if b is not None else jnp.zeros((N,), jnp.float32)).astype(jnp.float32).reshape(1, N)
    args = [a_bf, w_bf, b2]
    if residual is not None:
        args.append(residual.astype(jnp.float32))
    if mask is not None:
        args.append(mask.astype(jnp.float32))
    kern = functools.partial(_linear_kernel, activation=activation,
                             has_residual=residual is not None,
                             has_mask=mask is not None)
    out_shape = jax.ShapeDtypeStruct((M, N), jnp.float32)

    tile_m = 256  # row-tile so big matmuls shard across v7x's 2 TensorCores
    if M >= 2 * tile_m and M % tile_m == 0:
        in_specs = [pl.BlockSpec((tile_m, K), lambda i: (i, 0)),
                    pl.BlockSpec((K, N), lambda i: (0, 0)),
                    pl.BlockSpec((1, N), lambda i: (0, 0))]
        if residual is not None:
            in_specs.append(pl.BlockSpec((tile_m, N), lambda i: (i, 0)))
        if mask is not None:
            in_specs.append(pl.BlockSpec((tile_m, 1), lambda i: (i, 0)))
        return pl.pallas_call(
            kern, grid=(M // tile_m,), in_specs=in_specs,
            out_specs=pl.BlockSpec((tile_m, N), lambda i: (i, 0)),
            out_shape=out_shape,
            compiler_params=pltpu.CompilerParams(dimension_semantics=("parallel",)),
        )(*args)
    return pl.pallas_call(kern, out_shape=out_shape)(*args)


# -----------------------------------------------------------------------------
# Kernel: fused multi-head attention (per batch element)
#   QKV proj -> per-head scores/softmax/context -> output proj -> +residual
#   -> LayerNorm -> * non_pad_mask
# -----------------------------------------------------------------------------
def _mha_kernel(x_ref, wqkv_ref, bqkv_ref, fcw_ref, fcb_ref, g_ref, beta_ref,
                bias_ref, mask_ref, o_ref, *, n_head, d_k, d_v, temperature, eps):
    x = x_ref[0]                                   # (T, d_model) f32
    T = x.shape[0]
    d_model = o_ref.shape[2]
    xb = x.astype(jnp.bfloat16)
    qkv = jnp.dot(xb, wqkv_ref[...], preferred_element_type=jnp.float32)
    qkv = qkv + bqkv_ref[...]                      # (T, 2*n_head*d_k + n_head*d_v)
    bias = bias_ref[0]                             # (T, T) f32, shared across heads
    inv_temp = 1.0 / temperature
    q_off = 0
    k_off = n_head * d_k
    v_off = 2 * n_head * d_k
    acc = jnp.zeros((T, d_model), jnp.float32)
    for h in range(n_head):
        q = qkv[:, q_off + h * d_k: q_off + (h + 1) * d_k].astype(jnp.bfloat16)
        k = qkv[:, k_off + h * d_k: k_off + (h + 1) * d_k].astype(jnp.bfloat16)
        v = qkv[:, v_off + h * d_v: v_off + (h + 1) * d_v].astype(jnp.bfloat16)
        scores = jax.lax.dot_general(q, k, (((1,), (1,)), ((), ())),
                                     preferred_element_type=jnp.float32)
        scores = scores * inv_temp + bias
        m = jnp.max(scores, axis=-1, keepdims=True)
        e = jnp.exp(scores - m)
        attn = e * pl.reciprocal(jnp.sum(e, axis=-1, keepdims=True), approx=True)
        ctx = jnp.dot(attn.astype(jnp.bfloat16), v, preferred_element_type=jnp.float32)
        acc = acc + jnp.dot(ctx.astype(jnp.bfloat16), fcw_ref[h],
                            preferred_element_type=jnp.float32)
    y = acc + fcb_ref[...] + x                     # residual add (f32)
    mean = jnp.mean(y, axis=-1, keepdims=True)
    var = jnp.mean((y - mean) ** 2, axis=-1, keepdims=True)
    y = (y - mean) * jax.lax.rsqrt(var + eps) * g_ref[...] + beta_ref[...]
    o_ref[0] = y * mask_ref[0]


def multi_head_attention(x, p, n_head, d_k, d_v, attn_bias, non_pad_mask):
    B, T, d_model = x.shape
    wqkv = jnp.concatenate([p["w_qs"], p["w_ks"], p["w_vs"]], axis=1).astype(jnp.bfloat16)
    bqkv = jnp.concatenate([p["b_qs"], p["b_ks"], p["b_vs"]]).reshape(1, -1).astype(jnp.float32)
    nqkv = wqkv.shape[1]
    fcw = p["fc_w"].reshape(n_head, d_v, d_model).astype(jnp.bfloat16)
    fcb = p["fc_b"].reshape(1, d_model).astype(jnp.float32)
    g = p["ln_g"].reshape(1, d_model).astype(jnp.float32)
    beta = p["ln_b"].reshape(1, d_model).astype(jnp.float32)
    kern = functools.partial(_mha_kernel, n_head=n_head, d_k=d_k, d_v=d_v,
                             temperature=float(d_k) ** 0.5, eps=LN_EPS)
    return pl.pallas_call(
        kern, grid=(B,),
        in_specs=[
            pl.BlockSpec((1, T, d_model), lambda b: (b, 0, 0)),
            pl.BlockSpec((d_model, nqkv), lambda b: (0, 0)),
            pl.BlockSpec((1, nqkv), lambda b: (0, 0)),
            pl.BlockSpec((n_head, d_v, d_model), lambda b: (0, 0, 0)),
            pl.BlockSpec((1, d_model), lambda b: (0, 0)),
            pl.BlockSpec((1, d_model), lambda b: (0, 0)),
            pl.BlockSpec((1, d_model), lambda b: (0, 0)),
            pl.BlockSpec((1, T, T), lambda b: (b, 0, 0)),      # bias shared over heads
            pl.BlockSpec((1, T, 1), lambda b: (b, 0, 0)),
        ],
        out_specs=pl.BlockSpec((1, T, d_model), lambda b: (b, 0, 0)),
        out_shape=jax.ShapeDtypeStruct((B, T, d_model), jnp.float32),
        compiler_params=pltpu.CompilerParams(dimension_semantics=("parallel",)),
    )(x.astype(jnp.float32), wqkv, bqkv, fcw, fcb, g, beta,
      attn_bias.astype(jnp.float32), non_pad_mask.astype(jnp.float32))


# -----------------------------------------------------------------------------
# Kernel: fused position-wise FFN (per batch element)
#   conv1d(K=9, shifted-accumulate) + ReLU -> conv1d(K=1) -> +residual -> LN -> mask
# -----------------------------------------------------------------------------
def _ffn_kernel(xp_ref, w1_ref, b1_ref, w2_ref, b2_ref, g_ref, beta_ref,
                mask_ref, o_ref, *, pad1, eps):
    T = o_ref.shape[1]
    x_pad = xp_ref[0]                              # (T + 2*pad1, d_model) f32
    xb = x_pad.astype(jnp.bfloat16)
    K1 = w1_ref.shape[0]
    d_inner = w1_ref.shape[2]
    acc = jnp.zeros((T, d_inner), jnp.float32)
    for k in range(K1):
        acc = acc + jnp.dot(xb[k:k + T], w1_ref[k], preferred_element_type=jnp.float32)
    h = jnp.maximum(acc + b1_ref[...], 0.0)
    out = jnp.dot(h.astype(jnp.bfloat16), w2_ref[0],
                  preferred_element_type=jnp.float32) + b2_ref[...]
    residual = x_pad[pad1:pad1 + T]
    y = out + residual
    mean = jnp.mean(y, axis=-1, keepdims=True)
    var = jnp.mean((y - mean) ** 2, axis=-1, keepdims=True)
    y = (y - mean) * jax.lax.rsqrt(var + eps) * g_ref[...] + beta_ref[...]
    o_ref[0] = y * mask_ref[0]


def positionwise_ffn(x, p, non_pad_mask):
    B, T, d_model = x.shape
    K1, K2 = hp.fft_conv1d_kernel
    pad1, pad2 = hp.fft_conv1d_padding
    assert K2 == 1 and pad2 == 0  # matches FastSpeech hp (second conv is pointwise)
    xp = jnp.pad(x, ((0, 0), (pad1, pad1), (0, 0))).astype(jnp.float32)
    Tp = T + 2 * pad1
    w1 = jnp.transpose(p["w1"], (2, 1, 0)).astype(jnp.bfloat16)   # (K1, d_model, d_inner)
    w2 = jnp.transpose(p["w2"], (2, 1, 0)).astype(jnp.bfloat16)   # (1, d_inner, d_model)
    d_inner = w1.shape[2]
    b1 = p["b1"].reshape(1, -1).astype(jnp.float32)
    b2 = p["b2"].reshape(1, -1).astype(jnp.float32)
    g = p["ln_g"].reshape(1, -1).astype(jnp.float32)
    beta = p["ln_b"].reshape(1, -1).astype(jnp.float32)
    kern = functools.partial(_ffn_kernel, pad1=pad1, eps=LN_EPS)
    return pl.pallas_call(
        kern, grid=(B,),
        in_specs=[
            pl.BlockSpec((1, Tp, d_model), lambda b: (b, 0, 0)),
            pl.BlockSpec((K1, d_model, d_inner), lambda b: (0, 0, 0)),
            pl.BlockSpec((1, d_inner), lambda b: (0, 0)),
            pl.BlockSpec((1, d_inner, d_model), lambda b: (0, 0, 0)),
            pl.BlockSpec((1, d_model), lambda b: (0, 0)),
            pl.BlockSpec((1, d_model), lambda b: (0, 0)),
            pl.BlockSpec((1, d_model), lambda b: (0, 0)),
            pl.BlockSpec((1, T, 1), lambda b: (b, 0, 0)),
        ],
        out_specs=pl.BlockSpec((1, T, d_model), lambda b: (b, 0, 0)),
        out_shape=jax.ShapeDtypeStruct((B, T, d_model), jnp.float32),
        compiler_params=pltpu.CompilerParams(dimension_semantics=("parallel",)),
    )(xp, w1, b1, w2, b2, g, beta, non_pad_mask.astype(jnp.float32))


# -----------------------------------------------------------------------------
# Kernel: generic bias-free conv1d (shifted-accumulate) + optional ReLU
# (used for the merged CBHG bank and the CBHG projections)
# -----------------------------------------------------------------------------
def _conv_kernel(xp_ref, w_ref, o_ref, *, activation):
    K = w_ref.shape[0]
    Tout = o_ref.shape[1]
    Cout = o_ref.shape[2]
    xb = xp_ref[0].astype(jnp.bfloat16)
    acc = jnp.zeros((Tout, Cout), jnp.float32)
    for k in range(K):
        acc = acc + jnp.dot(xb[k:k + Tout], w_ref[k], preferred_element_type=jnp.float32)
    if activation == "relu":
        acc = jnp.maximum(acc, 0.0)
    o_ref[0] = acc


def pallas_conv_kio(x, w_kio, padding, activation=None):
    """x: (B, T, Cin); w_kio: (K, Cin, Cout); stride 1, no bias."""
    B, T, Cin = x.shape
    K, _, Cout = w_kio.shape
    xp = jnp.pad(x, ((0, 0), (padding, padding), (0, 0))).astype(jnp.float32)
    Tp = T + 2 * padding
    Tout = Tp - K + 1
    return pl.pallas_call(
        functools.partial(_conv_kernel, activation=activation),
        grid=(B,),
        in_specs=[pl.BlockSpec((1, Tp, Cin), lambda b: (b, 0, 0)),
                  pl.BlockSpec((K, Cin, Cout), lambda b: (0, 0, 0))],
        out_specs=pl.BlockSpec((1, Tout, Cout), lambda b: (b, 0, 0)),
        out_shape=jax.ShapeDtypeStruct((B, Tout, Cout), jnp.float32),
        compiler_params=pltpu.CompilerParams(dimension_semantics=("parallel",)),
    )(xp, w_kio.astype(jnp.bfloat16))


def _pt_to_kio(w):
    """PyTorch Conv1d weight (Cout, Cin, K) -> (K, Cin, Cout)."""
    return jnp.transpose(w, (2, 1, 0))


# -----------------------------------------------------------------------------
# Kernels: duration predictor (conv + bias + LN + ReLU [+ linear head + ReLU])
# -----------------------------------------------------------------------------
def _conv_ln_relu_kernel(xp_ref, w_ref, b_ref, g_ref, beta_ref, o_ref, *, eps):
    K = w_ref.shape[0]
    Tout = o_ref.shape[1]
    Cout = o_ref.shape[2]
    xb = xp_ref[0].astype(jnp.bfloat16)
    acc = jnp.zeros((Tout, Cout), jnp.float32)
    for k in range(K):
        acc = acc + jnp.dot(xb[k:k + Tout], w_ref[k], preferred_element_type=jnp.float32)
    acc = acc + b_ref[...]
    mean = jnp.mean(acc, axis=-1, keepdims=True)
    var = jnp.mean((acc - mean) ** 2, axis=-1, keepdims=True)
    y = (acc - mean) * jax.lax.rsqrt(var + eps) * g_ref[...] + beta_ref[...]
    o_ref[0] = jnp.maximum(y, 0.0)


def _conv_ln_relu_head_kernel(xp_ref, w_ref, b_ref, g_ref, beta_ref,
                              hw_ref, hb_ref, o_ref, *, eps):
    K = w_ref.shape[0]
    Tout = o_ref.shape[1]
    Cf = w_ref.shape[2]
    xb = xp_ref[0].astype(jnp.bfloat16)
    acc = jnp.zeros((Tout, Cf), jnp.float32)
    for k in range(K):
        acc = acc + jnp.dot(xb[k:k + Tout], w_ref[k], preferred_element_type=jnp.float32)
    acc = acc + b_ref[...]
    mean = jnp.mean(acc, axis=-1, keepdims=True)
    var = jnp.mean((acc - mean) ** 2, axis=-1, keepdims=True)
    y = jnp.maximum((acc - mean) * jax.lax.rsqrt(var + eps) * g_ref[...] + beta_ref[...], 0.0)
    # linear head (Cf -> 1) as a VPU row reduction (avoids an N=1 MXU matmul)
    dur = jnp.sum(y * hw_ref[...], axis=-1, keepdims=True) + hb_ref[...]
    o_ref[0] = jnp.maximum(dur, 0.0)


def duration_predictor(x, p):
    B, T, C = x.shape
    k = hp.duration_predictor_kernel_size
    f = hp.duration_predictor_filter_size
    pad = 1
    Tp = T + 2 * pad

    xp = jnp.pad(x, ((0, 0), (pad, pad), (0, 0))).astype(jnp.float32)
    w1 = _pt_to_kio(p["conv1_w"]).astype(jnp.bfloat16)
    h = pl.pallas_call(
        functools.partial(_conv_ln_relu_kernel, eps=LN_EPS),
        grid=(B,),
        in_specs=[pl.BlockSpec((1, Tp, C), lambda b: (b, 0, 0)),
                  pl.BlockSpec((k, C, f), lambda b: (0, 0, 0)),
                  pl.BlockSpec((1, f), lambda b: (0, 0)),
                  pl.BlockSpec((1, f), lambda b: (0, 0)),
                  pl.BlockSpec((1, f), lambda b: (0, 0))],
        out_specs=pl.BlockSpec((1, T, f), lambda b: (b, 0, 0)),
        out_shape=jax.ShapeDtypeStruct((B, T, f), jnp.float32),
        compiler_params=pltpu.CompilerParams(dimension_semantics=("parallel",)),
    )(xp, w1, p["conv1_b"].reshape(1, -1), p["ln1_g"].reshape(1, -1),
      p["ln1_b"].reshape(1, -1))

    h_pad = jnp.pad(h, ((0, 0), (pad, pad), (0, 0)))
    w2 = _pt_to_kio(p["conv2_w"]).astype(jnp.bfloat16)
    dur = pl.pallas_call(
        functools.partial(_conv_ln_relu_head_kernel, eps=LN_EPS),
        grid=(B,),
        in_specs=[pl.BlockSpec((1, Tp, f), lambda b: (b, 0, 0)),
                  pl.BlockSpec((k, f, f), lambda b: (0, 0, 0)),
                  pl.BlockSpec((1, f), lambda b: (0, 0)),
                  pl.BlockSpec((1, f), lambda b: (0, 0)),
                  pl.BlockSpec((1, f), lambda b: (0, 0)),
                  pl.BlockSpec((1, f), lambda b: (0, 0)),
                  pl.BlockSpec((1, 1), lambda b: (0, 0))],
        out_specs=pl.BlockSpec((1, T, 1), lambda b: (b, 0, 0)),
        out_shape=jax.ShapeDtypeStruct((B, T, 1), jnp.float32),
        compiler_params=pltpu.CompilerParams(dimension_semantics=("parallel",)),
    )(h_pad, w2, p["conv2_b"].reshape(1, -1), p["ln2_g"].reshape(1, -1),
      p["ln2_b"].reshape(1, -1), p["lin_w"].reshape(1, -1), p["lin_b"].reshape(1, 1))
    return dur[:, :, 0]  # == .squeeze() in training mode


# -----------------------------------------------------------------------------
# Kernel: length regulator (alignment @ x), one gridded call over the batch
# -----------------------------------------------------------------------------
def _lr_kernel(a_ref, x_ref, o_ref):
    o_ref[0] = jnp.dot(a_ref[0], x_ref[0], preferred_element_type=jnp.float32)


def length_regulator_train(x, duration_target, mel_max_length):
    B, T, C = x.shape
    dur = duration_target.astype(jnp.int32)
    ends = jnp.cumsum(dur, axis=1)
    starts = ends - dur
    t_idx = jnp.arange(mel_max_length)[None, :, None]
    align = ((t_idx >= starts[:, None, :]) & (t_idx < ends[:, None, :])).astype(jnp.bfloat16)
    return pl.pallas_call(
        _lr_kernel, grid=(B,),
        in_specs=[pl.BlockSpec((1, mel_max_length, T), lambda b: (b, 0, 0)),
                  pl.BlockSpec((1, T, C), lambda b: (b, 0, 0))],
        out_specs=pl.BlockSpec((1, mel_max_length, C), lambda b: (b, 0, 0)),
        out_shape=jax.ShapeDtypeStruct((B, mel_max_length, C), jnp.float32),
        compiler_params=pltpu.CompilerParams(dimension_semantics=("parallel",)),
    )(align, x.astype(jnp.bfloat16))


# -----------------------------------------------------------------------------
# Kernel: fused highway stack (4 layers in one kernel)
# -----------------------------------------------------------------------------
def _highway_stack_kernel(x_ref, hw_ref, hb_ref, tw_ref, tb_ref, o_ref, *, n_layers):
    x = x_ref[...]
    for l in range(n_layers):
        xb = x.astype(jnp.bfloat16)
        h = jnp.maximum(jnp.dot(xb, hw_ref[l], preferred_element_type=jnp.float32)
                        + hb_ref[l], 0.0)
        t = jax.nn.sigmoid(jnp.dot(xb, tw_ref[l], preferred_element_type=jnp.float32)
                           + tb_ref[l])
        x = h * t + x * (1.0 - t)
    o_ref[...] = x


def highway_stack(x2d, highways):
    L = len(highways)
    C = x2d.shape[1]
    hw = jnp.stack([h["H_w"] for h in highways]).astype(jnp.bfloat16)
    hb = jnp.stack([h["H_b"] for h in highways]).reshape(L, 1, C).astype(jnp.float32)
    tw = jnp.stack([h["T_w"] for h in highways]).astype(jnp.bfloat16)
    tb = jnp.stack([h["T_b"] for h in highways]).reshape(L, 1, C).astype(jnp.float32)
    return pl.pallas_call(
        functools.partial(_highway_stack_kernel, n_layers=L),
        out_shape=jax.ShapeDtypeStruct(x2d.shape, jnp.float32),
    )(x2d.astype(jnp.float32), hw, hb, tw, tb)


# -----------------------------------------------------------------------------
# Kernel: GRU recurrence with hidden state resident in VMEM scratch
# -----------------------------------------------------------------------------
def _gru_kernel(xi_ref, whh_ref, bhh_ref, ys_ref, h_ref):
    h_ref[...] = jnp.zeros_like(h_ref)
    whh = whh_ref[...]          # (H, 3H) f32 (kept f32 to avoid recurrent drift)
    bhh = bhh_ref[...]          # (1, 3H) f32
    H = whh.shape[0]
    T = xi_ref.shape[0]

    @pl.loop(0, T)
    def _(t):
        h = h_ref[...]
        gh = jnp.dot(h, whh, preferred_element_type=jnp.float32) + bhh
        xi_t = xi_ref[t]        # (B, 3H)
        r = jax.nn.sigmoid(xi_t[:, 0:H] + gh[:, 0:H])
        z = jax.nn.sigmoid(xi_t[:, H:2 * H] + gh[:, H:2 * H])
        n = jnp.tanh(xi_t[:, 2 * H:3 * H] + r * gh[:, 2 * H:3 * H])
        h_new = (1.0 - z) * n + z * h
        h_ref[...] = h_new
        ys_ref[t] = h_new


def gru_direction(x, p, reverse):
    B, T, C = x.shape
    H = p["w_hh"].shape[0]
    if reverse:
        x = x[:, ::-1, :]
    xi = pallas_linear(x.reshape(B * T, C), p["w_ih"], p["b_ih"]).reshape(B, T, 3 * H)
    xi_t = jnp.transpose(xi, (1, 0, 2))          # (T, B, 3H)
    ys = pl.pallas_call(
        _gru_kernel,
        out_shape=jax.ShapeDtypeStruct((T, B, H), jnp.float32),
        scratch_shapes=[pltpu.VMEM((B, H), jnp.float32)],
    )(xi_t, p["w_hh"].astype(jnp.float32), p["b_hh"].reshape(1, -1).astype(jnp.float32))
    ys = jnp.transpose(ys, (1, 0, 2))
    if reverse:
        ys = ys[:, ::-1, :]
    return ys


# -----------------------------------------------------------------------------
# Transformer blocks, encoder / decoder
# -----------------------------------------------------------------------------
def fft_block(x, p, non_pad_mask, attn_bias, n_head, d_k, d_v):
    out = multi_head_attention(x, p["attn"], n_head, d_k, d_v, attn_bias, non_pad_mask)
    out = positionwise_ffn(out, p["ffn"], non_pad_mask)
    return out


def _masks_from_seq(seq):
    """seq: (B, T) int, PAD == 0."""
    B, T = seq.shape
    pad = (seq == 0)
    attn_bias = jnp.where(pad[:, None, :], -1e9, 0.0)
    attn_bias = jnp.broadcast_to(attn_bias, (B, T, T)).astype(jnp.float32)
    non_pad_mask = (seq != 0).astype(jnp.float32)[:, :, None]
    return attn_bias, non_pad_mask


def encoder_forward(src_seq, src_pos, p):
    d_k = hp.encoder_dim // hp.encoder_head
    attn_bias, non_pad_mask = _masks_from_seq(src_seq)
    x = p["word_emb"][src_seq] + p["pos_table"][src_pos]
    for lp in p["layers"]:
        x = fft_block(x, lp, non_pad_mask, attn_bias, hp.encoder_head, d_k, d_k)
    return x, non_pad_mask


def decoder_forward(enc_seq, enc_pos, p):
    d_k = hp.decoder_dim // hp.decoder_head
    attn_bias, non_pad_mask = _masks_from_seq(enc_pos)
    x = enc_seq + p["pos_table"][enc_pos]
    for lp in p["layers"]:
        x = fft_block(x, lp, non_pad_mask, attn_bias, hp.decoder_head, d_k, d_k)
    return x


# -----------------------------------------------------------------------------
# CBHG postnet
# -----------------------------------------------------------------------------
def build_merged_bank_w(bank_w_list, C):
    """Pack conv banks (kernel sizes 1..K, padding k//2) into one kernel-K conv."""
    K = CBHG_K
    w = jnp.zeros((K, C, K * C), jnp.float32)
    for i, wk in enumerate(bank_w_list):          # wk: (C, C, k), kernel size k=i+1
        k = i + 1
        off = K // 2 - k // 2
        w = w.at[off:off + k, :, i * C:(i + 1) * C].set(jnp.transpose(wk, (2, 1, 0)))
    return w


def bank_batchnorm(y, gamma, beta, T, eps=1e-5):
    """Per-bank BatchNorm (training stats) on the merged bank output (B, T+1, K*C).

    Odd-kernel banks originally produce length-T outputs, so their extra
    position is excluded from the statistics (exact match of the reference).
    """
    B, Tm, KC = y.shape
    K = CBHG_K
    C = KC // K
    y4 = y.reshape(B, Tm, K, C)
    valid = np.ones((1, Tm, K, 1), np.float32)
    for i in range(K):
        if (i + 1) % 2 == 1:
            valid[0, T:, i, 0] = 0.0
    valid = jnp.asarray(valid)
    cnt = B * jnp.sum(valid, axis=(0, 1), keepdims=True)
    mean = jnp.sum(y4 * valid, axis=(0, 1), keepdims=True) / cnt
    var = jnp.sum(((y4 - mean) ** 2) * valid, axis=(0, 1), keepdims=True) / cnt
    yn = (y4 - mean) * jax.lax.rsqrt(var + eps)
    yn = yn * gamma.reshape(1, 1, K, C) + beta.reshape(1, 1, K, C)
    return yn[:, :T].reshape(B, T, K * C)


def batchnorm_train(y, gamma, beta, eps=1e-5):
    mean = jnp.mean(y, axis=(0, 1), keepdims=True)
    var = jnp.mean((y - mean) ** 2, axis=(0, 1), keepdims=True)
    return (y - mean) * jax.lax.rsqrt(var + eps) * gamma.reshape(1, 1, -1) + beta.reshape(1, 1, -1)


def cbhg_forward(inputs, p):
    B, T, C = inputs.shape                         # C == in_dim == num_mels
    # --- merged conv1d banks: ONE conv kernel + ReLU (lane-dense K*C output) ---
    wbank = build_merged_bank_w(p["bank_w"], C)    # (K, C, K*C)
    y = pallas_conv_kio(inputs, wbank, padding=CBHG_K // 2, activation="relu")  # (B, T+1, K*C)
    y = bank_batchnorm(y, jnp.stack(p["bank_g"]), jnp.stack(p["bank_b"]), T)    # (B, T, K*C)

    # MaxPool1d(kernel=2, stride=1, padding=1)[..., :T]
    yp = jnp.pad(y, ((0, 0), (1, 1), (0, 0)), constant_values=-jnp.inf)
    x = jnp.maximum(yp[:, :-1, :], yp[:, 1:, :])[:, :T, :]

    # projections: conv -> relu -> BN; conv -> BN (batch stats in glue)
    x = pallas_conv_kio(x, _pt_to_kio(p["proj1_w"]), padding=1, activation="relu")
    x = batchnorm_train(x, p["proj1_g"], p["proj1_b"])
    x = pallas_conv_kio(x, _pt_to_kio(p["proj2_w"]), padding=1, activation=None)
    x = batchnorm_train(x, p["proj2_g"], p["proj2_b"])

    if x.shape[-1] != C:
        x = pallas_linear(x.reshape(B * T, -1), p["pre_highway_w"]).reshape(B, T, C)
    x = x + inputs

    x = highway_stack(x.reshape(B * T, C), p["highways"]).reshape(B, T, C)

    out_f = gru_direction(x, p["gru_fwd"], reverse=False)
    out_b = gru_direction(x, p["gru_bwd"], reverse=True)
    return jnp.concatenate([out_f, out_b], axis=-1)  # (B, T, 2*C)


# -----------------------------------------------------------------------------
# Full FastSpeech forward (training branch: targets provided)
# -----------------------------------------------------------------------------
def fastspeech_forward(params, src_seq, src_pos, mel_pos, mel_max_length,
                       length_target, alpha=1.0):
    enc_out, _ = encoder_forward(src_seq, src_pos, params["encoder"])
    dur_pred = duration_predictor(enc_out, params["duration_predictor"])
    lr_out = length_regulator_train(enc_out, length_target, mel_max_length)
    dec_out = decoder_forward(lr_out, mel_pos, params["decoder"])

    B, M, _ = dec_out.shape
    # mask_tensor fused into the mel_linear / last_linear epilogues
    lengths = jnp.max(mel_pos, axis=-1)
    mel_valid = (jnp.arange(mel_max_length)[None, :] < lengths[:, None]).astype(jnp.float32)
    mel_valid2d = mel_valid.reshape(B * M, 1)

    mel = pallas_linear(dec_out.reshape(B * M, hp.decoder_dim),
                        params["mel_linear_w"], params["mel_linear_b"],
                        mask=mel_valid2d)
    mel = mel.reshape(B, M, hp.num_mels)

    residual = cbhg_forward(mel, params["cbhg"])
    mel_postnet = pallas_linear(residual.reshape(B * M, 2 * hp.num_mels),
                                params["last_linear_w"], params["last_linear_b"],
                                residual=mel.reshape(B * M, hp.num_mels),
                                mask=mel_valid2d)
    mel_postnet = mel_postnet.reshape(B, M, hp.num_mels)
    return mel, mel_postnet, dur_pred


# -----------------------------------------------------------------------------
# Parameter init (deterministic, synthetic)
# -----------------------------------------------------------------------------
class KeyGen:
    def __init__(self, key):
        self.key = key

    def __call__(self):
        self.key, k = jax.random.split(self.key)
        return k


def sinusoid_table(n_position, d_hid):
    pos = np.arange(n_position)[:, None].astype(np.float64)
    i = np.arange(d_hid)[None, :]
    angle = pos / np.power(10000.0, 2 * (i // 2) / d_hid)
    table = np.zeros((n_position, d_hid), np.float32)
    table[:, 0::2] = np.sin(angle[:, 0::2])
    table[:, 1::2] = np.cos(angle[:, 1::2])
    table[0] = 0.0  # padding_idx
    return jnp.asarray(table)


def init_fastspeech_params(key):
    kg = KeyGen(key)

    def nrm(shape, scale=0.1):
        return scale * jax.random.normal(kg(), shape, dtype=jnp.float32)

    def zeros(shape):
        return jnp.zeros(shape, jnp.float32)

    def ones(shape):
        return jnp.ones(shape, jnp.float32)

    d_k = hp.encoder_dim // hp.encoder_head

    def fft_layer(d_model, n_head, dk, dv, d_inner, kernel):
        return {
            "attn": {
                "w_qs": nrm((d_model, n_head * dk)), "b_qs": zeros((n_head * dk,)),
                "w_ks": nrm((d_model, n_head * dk)), "b_ks": zeros((n_head * dk,)),
                "w_vs": nrm((d_model, n_head * dv)), "b_vs": zeros((n_head * dv,)),
                "fc_w": nrm((n_head * dv, d_model)), "fc_b": zeros((d_model,)),
                "ln_g": ones((d_model,)), "ln_b": zeros((d_model,)),
            },
            "ffn": {
                "w1": nrm((d_inner, d_model, kernel[0])), "b1": zeros((d_inner,)),
                "w2": nrm((d_model, d_inner, kernel[1])), "b2": zeros((d_model,)),
                "ln_g": ones((d_model,)), "ln_b": zeros((d_model,)),
            },
        }

    dp_f = hp.duration_predictor_filter_size
    dp_k = hp.duration_predictor_kernel_size
    in_dim = hp.num_mels
    proj = CBHG_PROJECTIONS

    params = {
        "encoder": {
            "word_emb": nrm((hp.vocab_size, hp.encoder_dim)).at[0].set(0.0),
            "pos_table": sinusoid_table(hp.max_seq_len + 1, hp.encoder_dim),
            "layers": [fft_layer(hp.encoder_dim, hp.encoder_head, d_k, d_k,
                                 hp.encoder_conv1d_filter_size, hp.fft_conv1d_kernel)
                       for _ in range(hp.encoder_n_layer)],
        },
        "duration_predictor": {
            "conv1_w": nrm((dp_f, hp.encoder_dim, dp_k)), "conv1_b": zeros((dp_f,)),
            "ln1_g": ones((dp_f,)), "ln1_b": zeros((dp_f,)),
            "conv2_w": nrm((dp_f, dp_f, dp_k)), "conv2_b": zeros((dp_f,)),
            "ln2_g": ones((dp_f,)), "ln2_b": zeros((dp_f,)),
            "lin_w": nrm((dp_f, 1)), "lin_b": zeros((1,)),
        },
        "decoder": {
            "pos_table": sinusoid_table(hp.max_seq_len + 1, hp.decoder_dim),
            "layers": [fft_layer(hp.decoder_dim, hp.decoder_head, d_k, d_k,
                                 hp.decoder_conv1d_filter_size, hp.fft_conv1d_kernel)
                       for _ in range(hp.decoder_n_layer)],
        },
        "mel_linear_w": nrm((hp.decoder_dim, hp.num_mels)),
        "mel_linear_b": zeros((hp.num_mels,)),
        "cbhg": {
            "bank_w": [nrm((in_dim, in_dim, k)) for k in range(1, CBHG_K + 1)],
            "bank_g": [ones((in_dim,)) for _ in range(CBHG_K)],
            "bank_b": [zeros((in_dim,)) for _ in range(CBHG_K)],
            "proj1_w": nrm((proj[0], CBHG_K * in_dim, 3)),
            "proj1_g": ones((proj[0],)), "proj1_b": zeros((proj[0],)),
            "proj2_w": nrm((proj[1], proj[0], 3)),
            "proj2_g": ones((proj[1],)), "proj2_b": zeros((proj[1],)),
            "pre_highway_w": nrm((proj[1], in_dim)),  # unused when proj[-1]==in_dim
            "highways": [{"H_w": nrm((in_dim, in_dim)), "H_b": zeros((in_dim,)),
                          "T_w": nrm((in_dim, in_dim)),
                          "T_b": -jnp.ones((in_dim,), jnp.float32)}
                         for _ in range(4)],
            "gru_fwd": {"w_ih": nrm((in_dim, 3 * in_dim)),
                        "w_hh": nrm((in_dim, 3 * in_dim)),
                        "b_ih": zeros((3 * in_dim,)), "b_hh": zeros((3 * in_dim,))},
            "gru_bwd": {"w_ih": nrm((in_dim, 3 * in_dim)),
                        "w_hh": nrm((in_dim, 3 * in_dim)),
                        "b_ih": zeros((3 * in_dim,)), "b_hh": zeros((3 * in_dim,))},
        },
        "last_linear_w": nrm((hp.num_mels * 2, hp.num_mels)),
        "last_linear_b": zeros((hp.num_mels,)),
    }
    return params


# -----------------------------------------------------------------------------
# Demo
# -----------------------------------------------------------------------------
if __name__ == "__main__":
    # TODO(synk): eval-mode LengthRegulator (data-dependent output length) is
    # not expressible with static shapes; the training branch is implemented.
    key = jax.random.PRNGKey(0)
    pkey, dkey = jax.random.split(key)
    params = init_fastspeech_params(pkey)

    B, T_src = 2, 8
    src_seq = jax.random.randint(dkey, (B, T_src), 1, hp.vocab_size)  # no PAD tokens
    src_pos = jnp.tile(jnp.arange(1, T_src + 1, dtype=jnp.int32)[None, :], (B, 1))
    length_target = jnp.full((B, T_src), 2, dtype=jnp.int32)
    mel_max_length = T_src * 2  # 16
    mel_pos = jnp.tile(jnp.arange(1, mel_max_length + 1, dtype=jnp.int32)[None, :], (B, 1))

    fwd = jax.jit(fastspeech_forward, static_argnames=("mel_max_length",))
    mel, mel_postnet, dur_pred = fwd(params, src_seq, src_pos, mel_pos,
                                     mel_max_length=mel_max_length,
                                     length_target=length_target)
    jax.block_until_ready((mel, mel_postnet, dur_pred))

    assert mel.shape == (B, mel_max_length, hp.num_mels)
    assert mel_postnet.shape == (B, mel_max_length, hp.num_mels)
    assert dur_pred.shape == (B, T_src)
    assert bool(jnp.all(jnp.isfinite(mel))) and bool(jnp.all(jnp.isfinite(mel_postnet)))
    print("KERNEL_OK")
</pallas_src>

<mosaic_0001>
module attributes {stable_mosaic.version = 11 : i64} {
  func.func @_mha_kernel(%arg0: i32, %arg1: memref<1x8x32xf32, #tpu.memory_space<vmem>>, %arg2: memref<32x96xbf16, #tpu.memory_space<vmem>>, %arg3: memref<1x96xf32, #tpu.memory_space<vmem>>, %arg4: memref<2x16x32xbf16, #tpu.memory_space<vmem>>, %arg5: memref<1x32xf32, #tpu.memory_space<vmem>>, %arg6: memref<1x32xf32, #tpu.memory_space<vmem>>, %arg7: memref<1x32xf32, #tpu.memory_space<vmem>>, %arg8: memref<1x8x8xf32, #tpu.memory_space<vmem>>, %arg9: memref<1x8x1xf32, #tpu.memory_space<vmem>>, %arg10: memref<1x8x32xf32, #tpu.memory_space<vmem>>) attributes {dimension_semantics = [#tpu.dimension_semantics<parallel>], iteration_bounds = array<i64: 2>, scalar_prefetch = 0 : i64, scratch_operands = 0 : i64, tpu.core_type = #tpu.core_type<tc>, window_params = [{transform_indices = @transform_0, window_bounds = array<i64: 1, 8, 32>}, {pipeline_mode = #tpu.pipeline_mode<synchronous>, transform_indices = @transform_1, window_bounds = array<i64: 32, 96>}, {pipeline_mode = #tpu.pipeline_mode<synchronous>, transform_indices = @transform_2, window_bounds = array<i64: 1, 96>}, {pipeline_mode = #tpu.pipeline_mode<synchronous>, transform_indices = @transform_3, window_bounds = array<i64: 2, 16, 32>}, {pipeline_mode = #tpu.pipeline_mode<synchronous>, transform_indices = @transform_4, window_bounds = array<i64: 1, 32>}, {pipeline_mode = #tpu.pipeline_mode<synchronous>, transform_indices = @transform_5, window_bounds = array<i64: 1, 32>}, {pipeline_mode = #tpu.pipeline_mode<synchronous>, transform_indices = @transform_6, window_bounds = array<i64: 1, 32>}, {transform_indices = @transform_7, window_bounds = array<i64: 1, 8, 8>}, {transform_indices = @transform_8, window_bounds = array<i64: 1, 8, 1>}, {transform_indices = @transform_9, window_bounds = array<i64: 1, 8, 32>}]} {
    %c0 = arith.constant 0 : index
    %c0_0 = arith.constant 0 : index
    %c0_1 = arith.constant 0 : index
    %0 = vector.load %arg1[%c0, %c0_0, %c0_1] : memref<1x8x32xf32, #tpu.memory_space<vmem>>, vector<1x8x32xf32>
    %1 = vector.shape_cast %0 : vector<1x8x32xf32> to vector<8x32xf32>
    %2 = arith.truncf %1 : vector<8x32xf32> to vector<8x32xbf16>
    %c0_2 = arith.constant 0 : index
    %c0_3 = arith.constant 0 : index
    %3 = vector.load %arg2[%c0_2, %c0_3] : memref<32x96xbf16, #tpu.memory_space<vmem>>, vector<32x96xbf16>
    %cst = arith.constant dense<0.000000e+00> : vector<8x96xf32>
    %4 = tpu.matmul %2, %3, %cst {dimension_numbers = #tpu.dot_dimension_numbers<[1], [0], [0], [1], [0, 0, 1, 1], [], []>} : vector<8x32xbf16>, vector<32x96xbf16>, vector<8x96xf32> -> vector<8x96xf32>
    %c0_4 = arith.constant 0 : index
    %c0_5 = arith.constant 0 : index
    %5 = vector.load %arg3[%c0_4, %c0_5] : memref<1x96xf32, #tpu.memory_space<vmem>>, vector<1x96xf32>
    %6 = vector.broadcast %5 : vector<1x96xf32> to vector<8x96xf32>
    %7 = arith.addf %4, %6 : vector<8x96xf32>
    %c0_6 = arith.constant 0 : index
    %c0_7 = arith.constant 0 : index
    %c0_8 = arith.constant 0 : index
    %8 = vector.load %arg8[%c0_6, %c0_7, %c0_8] : memref<1x8x8xf32, #tpu.memory_space<vmem>>, vector<1x8x8xf32>
    %9 = vector.shape_cast %8 : vector<1x8x8xf32> to vector<8x8xf32>
    %cst_9 = arith.constant 0.000000e+00 : f32
    %10 = vector.broadcast %cst_9 : f32 to vector<8x32xf32>
    %11 = vector.extract_strided_slice %7 {offsets = [0, 0], sizes = [8, 16], strides = [1, 1]} : vector<8x96xf32> to vector<8x16xf32>
    %12 = arith.truncf %11 : vector<8x16xf32> to vector<8x16xbf16>
    %13 = vector.extract_strided_slice %7 {offsets = [0, 32], sizes = [8, 16], strides = [1, 1]} : vector<8x96xf32> to vector<8x16xf32>
    %14 = arith.truncf %13 : vector<8x16xf32> to vector<8x16xbf16>
    %15 = vector.extract_strided_slice %7 {offsets = [0, 64], sizes = [8, 16], strides = [1, 1]} : vector<8x96xf32> to vector<8x16xf32>
    %16 = arith.truncf %15 : vector<8x16xf32> to vector<8x16xbf16>
    %cst_10 = arith.constant dense<0.000000e+00> : vector<8x8xf32>
    %17 = tpu.matmul %12, %14, %cst_10 {dimension_numbers = #tpu.dot_dimension_numbers<[1], [1], [0], [0], [0, 0, 1, 0], [], []>} : vector<8x16xbf16>, vector<8x16xbf16>, vector<8x8xf32> -> vector<8x8xf32>
    %cst_11 = arith.constant 2.500000e-01 : f32
    %18 = vector.broadcast %cst_11 : f32 to vector<8x8xf32>
    %19 = arith.mulf %17, %18 : vector<8x8xf32>
    %20 = arith.addf %19, %9 : vector<8x8xf32>
    %cst_12 = arith.constant dense<0xFF800000> : vector<8xf32>
    %21 = vector.multi_reduction <maximumf>, %20, %cst_12 [1] : vector<8x8xf32> to vector<8xf32>
    %22 = vector.shape_cast %21 : vector<8xf32> to vector<8x1xf32>
    %23 = vector.broadcast %22 : vector<8x1xf32> to vector<8x8xf32>
    %24 = arith.subf %20, %23 : vector<8x8xf32>
    %25 = math.exp %24 : vector<8x8xf32>
    %cst_13 = arith.constant dense<0.000000e+00> : vector<8xf32>
    %26 = vector.multi_reduction <add>, %25, %cst_13 [1] : vector<8x8xf32> to vector<8xf32>
    %27 = vector.shape_cast %26 : vector<8xf32> to vector<8x1xf32>
    %28 = tpu.reciprocal %27 {approx = true} : vector<8x1xf32> -> vector<8x1xf32>
    %29 = vector.broadcast %28 : vector<8x1xf32> to vector<8x8xf32>
    %30 = arith.mulf %25, %29 : vector<8x8xf32>
    %31 = arith.truncf %30 : vector<8x8xf32> to vector<8x8xbf16>
    %cst_14 = arith.constant dense<0.000000e+00> : vector<8x16xf32>
    %32 = tpu.matmul %31, %16, %cst_14 {dimension_numbers = #tpu.dot_dimension_numbers<[1], [0], [0], [1], [0, 0, 1, 1], [], []>} : vector<8x8xbf16>, vector<8x16xbf16>, vector<8x16xf32> -> vector<8x16xf32>
    %33 = arith.truncf %32 : vector<8x16xf32> to vector<8x16xbf16>
    %c0_15 = arith.constant 0 : index
    %c0_16 = arith.constant 0 : index
    %c0_17 = arith.constant 0 : index
    %34 = vector.load %arg4[%c0_15, %c0_16, %c0_17] : memref<2x16x32xbf16, #tpu.memory_space<vmem>>, vector<1x16x32xbf16>
    %35 = vector.shape_cast %34 : vector<1x16x32xbf16> to vector<16x32xbf16>
    %cst_18 = arith.constant dense<0.000000e+00> : vector<8x32xf32>
    %36 = tpu.matmul %33, %35, %cst_18 {dimension_numbers = #tpu.dot_dimension_numbers<[1], [0], [0], [1], [0, 0, 1, 1], [], []>} : vector<8x16xbf16>, vector<16x32xbf16>, vector<8x32xf32> -> vector<8x32xf32>
    %37 = arith.addf %10, %36 : vector<8x32xf32>
    %38 = vector.extract_strided_slice %7 {offsets = [0, 16], sizes = [8, 16], strides = [1, 1]} : vector<8x96xf32> to vector<8x16xf32>
    %39 = arith.truncf %38 : vector<8x16xf32> to vector<8x16xbf16>
    %40 = vector.extract_strided_slice %7 {offsets = [0, 48], sizes = [8, 16], strides = [1, 1]} : vector<8x96xf32> to vector<8x16xf32>
    %41 = arith.truncf %40 : vector<8x16xf32> to vector<8x16xbf16>
    %42 = vector.extract_strided_slice %7 {offsets = [0, 80], sizes = [8, 16], strides = [1, 1]} : vector<8x96xf32> to vector<8x16xf32>
    %43 = arith.truncf %42 : vector<8x16xf32> to vector<8x16xbf16>
    %cst_19 = arith.constant dense<0.000000e+00> : vector<8x8xf32>
    %44 = tpu.matmul %39, %41, %cst_19 {dimension_numbers = #tpu.dot_dimension_numbers<[1], [1], [0], [0], [0, 0, 1, 0], [], []>} : vector<8x16xbf16>, vector<8x16xbf16>, vector<8x8xf32> -> vector<8x8xf32>
    %cst_20 = arith.constant 2.500000e-01 : f32
    %45 = vector.broadcast %cst_20 : f32 to vector<8x8xf32>
    %46 = arith.mulf %44, %45 : vector<8x8xf32>
    %47 = arith.addf %46, %9 : vector<8x8xf32>
    %cst_21 = arith.constant dense<0xFF800000> : vector<8xf32>
    %48 = vector.multi_reduction <maximumf>, %47, %cst_21 [1] : vector<8x8xf32> to vector<8xf32>
    %49 = vector.shape_cast %48 : vector<8xf32> to vector<8x1xf32>
    %50 = vector.broadcast %49 : vector<8x1xf32> to vector<8x8xf32>
    %51 = arith.subf %47, %50 : vector<8x8xf32>
    %52 = math.exp %51 : vector<8x8xf32>
    %cst_22 = arith.constant dense<0.000000e+00> : vector<8xf32>
    %53 = vector.multi_reduction <add>, %52, %cst_22 [1] : vector<8x8xf32> to vector<8xf32>
    %54 = vector.shape_cast %53 : vector<8xf32> to vector<8x1xf32>
    %55 = tpu.reciprocal %54 {approx = true} : vector<8x1xf32> -> vector<8x1xf32>
    %56 = vector.broadcast %55 : vector<8x1xf32> to vector<8x8xf32>
    %57 = arith.mulf %52, %56 : vector<8x8xf32>
    %58 = arith.truncf %57 : vector<8x8xf32> to vector<8x8xbf16>
    %cst_23 = arith.constant dense<0.000000e+00> : vector<8x16xf32>
    %59 = tpu.matmul %58, %43, %cst_23 {dimension_numbers = #tpu.dot_dimension_numbers<[1], [0], [0], [1], [0, 0, 1, 1], [], []>} : vector<8x8xbf16>, vector<8x16xbf16>, vector<8x16xf32> -> vector<8x16xf32>
    %60 = arith.truncf %59 : vector<8x16xf32> to vector<8x16xbf16>
    %c1 = arith.constant 1 : index
    %c0_24 = arith.constant 0 : index
    %c0_25 = arith.constant 0 : index
    %61 = vector.load %arg4[%c1, %c0_24, %c0_25] : memref<2x16x32xbf16, #tpu.memory_space<vmem>>, vector<1x16x32xbf16>
    %62 = vector.shape_cast %61 : vector<1x16x32xbf16> to vector<16x32xbf16>
    %cst_26 = arith.constant dense<0.000000e+00> : vector<8x32xf32>
    %63 = tpu.matmul %60, %62, %cst_26 {dimension_numbers = #tpu.dot_dimension_numbers<[1], [0], [0], [1], [0, 0, 1, 1], [], []>} : vector<8x16xbf16>, vector<16x32xbf16>, vector<8x32xf32> -> vector<8x32xf32>
    %64 = arith.addf %37, %63 : vector<8x32xf32>
    %c0_27 = arith.constant 0 : index
    %c0_28 = arith.constant 0 : index
    %65 = vector.load %arg5[%c0_27, %c0_28] : memref<1x32xf32, #tpu.memory_space<vmem>>, vector<1x32xf32>
    %66 = vector.broadcast %65 : vector<1x32xf32> to vector<8x32xf32>
    %67 = arith.addf %64, %66 : vector<8x32xf32>
    %68 = arith.addf %67, %1 : vector<8x32xf32>
    %cst_29 = arith.constant dense<0.000000e+00> : vector<8xf32>
    %69 = vector.multi_reduction <add>, %68, %cst_29 [1] : vector<8x32xf32> to vector<8xf32>
    %70 = vector.shape_cast %69 : vector<8xf32> to vector<8x1xf32>
    %cst_30 = arith.constant 3.200000e+01 : f32
    %71 = vector.broadcast %cst_30 : f32 to vector<8x1xf32>
    %72 = arith.divf %70, %71 : vector<8x1xf32>
    %73 = vector.broadcast %72 : vector<8x1xf32> to vector<8x32xf32>
    %74 = arith.subf %68, %73 : vector<8x32xf32>
    %75 = arith.mulf %74, %74 : vector<8x32xf32>
    %cst_31 = arith.constant dense<0.000000e+00> : vector<8xf32>
    %76 = vector.multi_reduction <add>, %75, %cst_31 [1] : vector<8x32xf32> to vector<8xf32>
    %77 = vector.shape_cast %76 : vector<8xf32> to vector<8x1xf32>
    %cst_32 = arith.constant 3.200000e+01 : f32
    %78 = vector.broadcast %cst_32 : f32 to vector<8x1xf32>
    %79 = arith.divf %77, %78 : vector<8x1xf32>
    %80 = vector.broadcast %72 : vector<8x1xf32> to vector<8x32xf32>
    %81 = arith.subf %68, %80 : vector<8x32xf32>
    %cst_33 = arith.constant 9.99999974E-6 : f32
    %82 = vector.broadcast %cst_33 : f32 to vector<8x1xf32>
    %83 = arith.addf %79, %82 : vector<8x1xf32>
    %84 = math.rsqrt %83 : vector<8x1xf32>
    %85 = vector.broadcast %84 : vector<8x1xf32> to vector<8x32xf32>
    %86 = arith.mulf %81, %85 : vector<8x32xf32>
    %c0_34 = arith.constant 0 : index
    %c0_35 = arith.constant 0 : index
    %87 = vector.load %arg6[%c0_34, %c0_35] : memref<1x32xf32, #tpu.memory_space<vmem>>, vector<1x32xf32>
    %88 = vector.broadcast %87 : vector<1x32xf32> to vector<8x32xf32>
    %89 = arith.mulf %86, %88 : vector<8x32xf32>
    %c0_36 = arith.constant 0 : index
    %c0_37 = arith.constant 0 : index
    %90 = vector.load %arg7[%c0_36, %c0_37] : memref<1x32xf32, #tpu.memory_space<vmem>>, vector<1x32xf32>
    %91 = vector.broadcast %90 : vector<1x32xf32> to vector<8x32xf32>
    %92 = arith.addf %89, %91 : vector<8x32xf32>
    %c0_38 = arith.constant 0 : index
    %c0_39 = arith.constant 0 : index
    %c0_40 = arith.constant 0 : index
    %93 = vector.load %arg9[%c0_38, %c0_39, %c0_40] : memref<1x8x1xf32, #tpu.memory_space<vmem>>, vector<1x8x1xf32>
    %94 = vector.shape_cast %93 : vector<1x8x1xf32> to vector<8x1xf32>
    %95 = vector.broadcast %94 : vector<8x1xf32> to vector<8x32xf32>
    %96 = arith.mulf %92, %95 : vector<8x32xf32>
    %c0_41 = arith.constant 0 : index
    %c0_42 = arith.constant 0 : index
    %c0_43 = arith.constant 0 : index
    %97 = vector.load %arg10[%c0_41, %c0_42, %c0_43] : memref<1x8x32xf32, #tpu.memory_space<vmem>>, vector<1x8x32xf32>
    %98 = vector.shape_cast %97 : vector<1x8x32xf32> to vector<8x32xf32>
    %99 = vector.shape_cast %96 : vector<8x32xf32> to vector<1x8x32xf32>
    tpu.vector_store %arg10[%c0_41, %c0_42, %c0_43], %99 {strides = array<i32>} : memref<1x8x32xf32, #tpu.memory_space<vmem>>, vector<1x8x32xf32>,
    return
  }
  func.func @transform_0(%arg0: i32) -> (i32, i32, i32) {
    %c0_i32 = arith.constant 0 : i32
    %c0_i32_0 = arith.constant 0 : i32
    %c0_i32_1 = arith.constant 0 : i32
    return %arg0, %c0_i32, %c0_i32_0 : i32, i32, i32
  }
  func.func @transform_1(%arg0: i32) -> (i32, i32) {
    %c0_i32 = arith.constant 0 : i32
    %c0_i32_0 = arith.constant 0 : i32
    %c0_i32_1 = arith.constant 0 : i32
    return %c0_i32, %c0_i32_0 : i32, i32
  }
  func.func @transform_2(%arg0: i32) -> (i32, i32) {
    %c0_i32 = arith.constant 0 : i32
    %c0_i32_0 = arith.constant 0 : i32
    %c0_i32_1 = arith.constant 0 : i32
    return %c0_i32, %c0_i32_0 : i32, i32
  }
  func.func @transform_3(%arg0: i32) -> (i32, i32, i32) {
    %c0_i32 = arith.constant 0 : i32
    %c0_i32_0 = arith.constant 0 : i32
    %c0_i32_1 = arith.constant 0 : i32
    %c0_i32_2 = arith.constant 0 : i32
    return %c0_i32, %c0_i32_0, %c0_i32_1 : i32, i32, i32
  }
  func.func @transform_4(%arg0: i32) -> (i32, i32) {
    %c0_i32 = arith.constant 0 : i32
    %c0_i32_0 = arith.constant 0 : i32
    %c0_i32_1 = arith.constant 0 : i32
    return %c0_i32, %c0_i32_0 : i32, i32
  }
  func.func @transform_5(%arg0: i32) -> (i32, i32) {
    %c0_i32 = arith.constant 0 : i32
    %c0_i32_0 = arith.constant 0 : i32
    %c0_i32_1 = arith.constant 0 : i32
    return %c0_i32, %c0_i32_0 : i32, i32
  }
  func.func @transform_6(%arg0: i32) -> (i32, i32) {
    %c0_i32 = arith.constant 0 : i32
    %c0_i32_0 = arith.constant 0 : i32
    %c0_i32_1 = arith.constant 0 : i32
    return %c0_i32, %c0_i32_0 : i32, i32
  }
  func.func @transform_7(%arg0: i32) -> (i32, i32, i32) {
    %c0_i32 = arith.constant 0 : i32
    %c0_i32_0 = arith.constant 0 : i32
    %c0_i32_1 = arith.constant 0 : i32
    return %arg0, %c0_i32, %c0_i32_0 : i32, i32, i32
  }
  func.func @transform_8(%arg0: i32) -> (i32, i32, i32) {
    %c0_i32 = arith.constant 0 : i32
    %c0_i32_0 = arith.constant 0 : i32
    %c0_i32_1 = arith.constant 0 : i32
    return %arg0, %c0_i32, %c0_i32_0 : i32, i32, i32
  }
  func.func @transform_9(%arg0: i32) -> (i32, i32, i32) {
    %c0_i32 = arith.constant 0 : i32
    %c0_i32_0 = arith.constant 0 : i32
    %c0_i32_1 = arith.constant 0 : i32
    return %arg0, %c0_i32, %c0_i32_0 : i32, i32, i32
  }
}

module attributes {stable_mosaic.version = 11 : i64} {
  func.func @_ffn_kernel(%arg0: i32, %arg1: memref<1x16x32xf32, #tpu.memory_space<vmem>>, %arg2: memref<9x32x64xbf16, #tpu.memory_space<vmem>>, %arg3: memref<1x64xf32, #tpu.memory_space<vmem>>, %arg4: memref<1x64x32xbf16, #tpu.memory_space<vmem>>, %arg5: memref<1x32xf32, #tpu.memory_space<vmem>>, %arg6: memref<1x32xf32, #tpu.memory_space<vmem>>, %arg7: memref<1x32xf32, #tpu.memory_space<vmem>>, %arg8: memref<1x8x1xf32, #tpu.memory_space<vmem>>, %arg9: memref<1x8x32xf32, #tpu.memory_space<vmem>>) attributes {dimension_semantics = [#tpu.dimension_semantics<parallel>], iteration_bounds = array<i64: 2>, scalar_prefetch = 0 : i64, scratch_operands = 0 : i64, tpu.core_type = #tpu.core_type<tc>, window_params = [{transform_indices = @transform_0, window_bounds = array<i64: 1, 16, 32>}, {pipeline_mode = #tpu.pipeline_mode<synchronous>, transform_indices = @transform_1, window_bounds = array<i64: 9, 32, 64>}, {pipeline_mode = #tpu.pipeline_mode<synchronous>, transform_indices = @transform_2, window_bounds = array<i64: 1, 64>}, {pipeline_mode = #tpu.pipeline_mode<synchronous>, transform_indices = @transform_3, window_bounds = array<i64: 1, 64, 32>}, {pipeline_mode = #tpu.pipeline_mode<synchronous>, transform_indices = @transform_4, window_bounds = array<i64: 1, 32>}, {pipeline_mode = #tpu.pipeline_mode<synchronous>, transform_indices = @transform_5, window_bounds = array<i64: 1, 32>}, {pipeline_mode = #tpu.pipeline_mode<synchronous>, transform_indices = @transform_6, window_bounds = array<i64: 1, 32>}, {transform_indices = @transform_7, window_bounds = array<i64: 1, 8, 1>}, {transform_indices = @transform_8, window_bounds = array<i64: 1, 8, 32>}]} {
    %c0 = arith.constant 0 : index
    %c0_0 = arith.constant 0 : index
    %c0_1 = arith.constant 0 : index
    %0 = vector.load %arg1[%c0, %c0_0, %c0_1] : memref<1x16x32xf32, #tpu.memory_space<vmem>>, vector<1x16x32xf32>
    %1 = vector.shape_cast %0 : vector<1x16x32xf32> to vector<16x32xf32>
    %2 = arith.truncf %1 : vector<16x32xf32> to vector<16x32xbf16>
    %cst = arith.constant 0.000000e+00 : f32
    %3 = vector.broadcast %cst : f32 to vector<8x64xf32>
    %4 = vector.extract_strided_slice %2 {offsets = [0, 0], sizes = [8, 32], strides = [1, 1]} : vector<16x32xbf16> to vector<8x32xbf16>
    %c0_2 = arith.constant 0 : index
    %c0_3 = arith.constant 0 : index
    %c0_4 = arith.constant 0 : index
    %5 = vector.load %arg2[%c0_2, %c0_3, %c0_4] : memref<9x32x64xbf16, #tpu.memory_space<vmem>>, vector<1x32x64xbf16>
    %6 = vector.shape_cast %5 : vector<1x32x64xbf16> to vector<32x64xbf16>
    %cst_5 = arith.constant dense<0.000000e+00> : vector<8x64xf32>
    %7 = tpu.matmul %4, %6, %cst_5 {dimension_numbers = #tpu.dot_dimension_numbers<[1], [0], [0], [1], [0, 0, 1, 1], [], []>} : vector<8x32xbf16>, vector<32x64xbf16>, vector<8x64xf32> -> vector<8x64xf32>
    %8 = arith.addf %3, %7 : vector<8x64xf32>
    %9 = vector.extract_strided_slice %2 {offsets = [1, 0], sizes = [8, 32], strides = [1, 1]} : vector<16x32xbf16> to vector<8x32xbf16>
    %c1 = arith.constant 1 : index
    %c0_6 = arith.constant 0 : index
    %c0_7 = arith.constant 0 : index
    %10 = vector.load %arg2[%c1, %c0_6, %c0_7] : memref<9x32x64xbf16, #tpu.memory_space<vmem>>, vector<1x32x64xbf16>
    %11 = vector.shape_cast %10 : vector<1x32x64xbf16> to vector<32x64xbf16>
    %cst_8 = arith.constant dense<0.000000e+00> : vector<8x64xf32>
    %12 = tpu.matmul %9, %11, %cst_8 {dimension_numbers = #tpu.dot_dimension_numbers<[1], [0], [0], [1], [0, 0, 1, 1], [], []>} : vector<8x32xbf16>, vector<32x64xbf16>, vector<8x64xf32> -> vector<8x64xf32>
    %13 = arith.addf %8, %12 : vector<8x64xf32>
    %14 = vector.extract_strided_slice %2 {offsets = [2, 0], sizes = [8, 32], strides = [1, 1]} : vector<16x32xbf16> to vector<8x32xbf16>
    %c2 = arith.constant 2 : index
    %c0_9 = arith.constant 0 : index
    %c0_10 = arith.constant 0 : index
    %15 = vector.load %arg2[%c2, %c0_9, %c0_10] : memref<9x32x64xbf16, #tpu.memory_space<vmem>>, vector<1x32x64xbf16>
    %16 = vector.shape_cast %15 : vector<1x32x64xbf16> to vector<32x64xbf16>
    %cst_11 = arith.constant dense<0.000000e+00> : vector<8x64xf32>
    %17 = tpu.matmul %14, %16, %cst_11 {dimension_numbers = #tpu.dot_dimension_numbers<[1], [0], [0], [1], [0, 0, 1, 1], [], []>} : vector<8x32xbf16>, vector<32x64xbf16>, vector<8x64xf32> -> vector<8x64xf32>
    %18 = arith.addf %13, %17 : vector<8x64xf32>
    %19 = vector.extract_strided_slice %2 {offsets = [3, 0], sizes = [8, 32], strides = [1, 1]} : vector<16x32xbf16> to vector<8x32xbf16>
    %c3 = arith.constant 3 : index
    %c0_12 = arith.constant 0 : index
    %c0_13 = arith.constant 0 : index
    %20 = vector.load %arg2[%c3, %c0_12, %c0_13] : memref<9x32x64xbf16, #tpu.memory_space<vmem>>, vector<1x32x64xbf16>
    %21 = vector.shape_cast %20 : vector<1x32x64xbf16> to vector<32x64xbf16>
    %cst_14 = arith.constant dense<0.000000e+00> : vector<8x64xf32>
    %22 = tpu.matmul %19, %21, %cst_14 {dimension_numbers = #tpu.dot_dimension_numbers<[1], [0], [0], [1], [0, 0, 1, 1], [], []>} : vector<8x32xbf16>, vector<32x64xbf16>, vector<8x64xf32> -> vector<8x64xf32>
    %23 = arith.addf %18, %22 : vector<8x64xf32>
    %24 = vector.extract_strided_slice %2 {offsets = [4, 0], sizes = [8, 32], strides = [1, 1]} : vector<16x32xbf16> to vector<8x32xbf16>
    %c4 = arith.constant 4 : index
    %c0_15 = arith.constant 0 : index
    %c0_16 = arith.constant 0 : index
    %25 = vector.load %arg2[%c4, %c0_15, %c0_16] : memref<9x32x64xbf16, #tpu.memory_space<vmem>>, vector<1x32x64xbf16>
    %26 = vector.shape_cast %25 : vector<1x32x64xbf16> to vector<32x64xbf16>
    %cst_17 = arith.constant dense<0.000000e+00> : vector<8x64xf32>
    %27 = tpu.matmul %24, %26, %cst_17 {dimension_numbers = #tpu.dot_dimension_numbers<[1], [0], [0], [1], [0, 0, 1, 1], [], []>} : vector<8x32xbf16>, vector<32x64xbf16>, vector<8x64xf32> -> vector<8x64xf32>
    %28 = arith.addf %23, %27 : vector<8x64xf32>
    %29 = vector.extract_strided_slice %2 {offsets = [5, 0], sizes = [8, 32], strides = [1, 1]} : vector<16x32xbf16> to vector<8x32xbf16>
    %c5 = arith.constant 5 : index
    %c0_18 = arith.constant 0 : index
    %c0_19 = arith.constant 0 : index
    %30 = vector.load %arg2[%c5, %c0_18, %c0_19] : memref<9x32x64xbf16, #tpu.memory_space<vmem>>, vector<1x32x64xbf16>
    %31 = vector.shape_cast %30 : vector<1x32x64xbf16> to vector<32x64xbf16>
    %cst_20 = arith.constant dense<0.000000e+00> : vector<8x64xf32>
    %32 = tpu.matmul %29, %31, %cst_20 {dimension_numbers = #tpu.dot_dimension_numbers<[1], [0], [0], [1], [0, 0, 1, 1], [], []>} : vector<8x32xbf16>, vector<32x64xbf16>, vector<8x64xf32> -> vector<8x64xf32>
    %33 = arith.addf %28, %32 : vector<8x64xf32>
    %34 = vector.extract_strided_slice %2 {offsets = [6, 0], sizes = [8, 32], strides = [1, 1]} : vector<16x32xbf16> to vector<8x32xbf16>
    %c6 = arith.constant 6 : index
    %c0_21 = arith.constant 0 : index
    %c0_22 = arith.constant 0 : index
    %35 = vector.load %arg2[%c6, %c0_21, %c0_22] : memref<9x32x64xbf16, #tpu.memory_space<vmem>>, vector<1x32x64xbf16>
    %36 = vector.shape_cast %35 : vector<1x32x64xbf16> to vector<32x64xbf16>
    %cst_23 = arith.constant dense<0.000000e+00> : vector<8x64xf32>
    %37 = tpu.matmul %34, %36, %cst_23 {dimension_numbers = #tpu.dot_dimension_numbers<[1], [0], [0], [1], [0, 0, 1, 1], [], []>} : vector<8x32xbf16>, vector<32x64xbf16>, vector<8x64xf32> -> vector<8x64xf32>
    %38 = arith.addf %33, %37 : vector<8x64xf32>
    %39 = vector.extract_strided_slice %2 {offsets = [7, 0], sizes = [8, 32], strides = [1, 1]} : vector<16x32xbf16> to vector<8x32xbf16>
    %c7 = arith.constant 7 : index
    %c0_24 = arith.constant 0 : index
    %c0_25 = arith.constant 0 : index
    %40 = vector.load %arg2[%c7, %c0_24, %c0_25] : memref<9x32x64xbf16, #tpu.memory_space<vmem>>, vector<1x32x64xbf16>
    %41 = vector.shape_cast %40 : vector<1x32x64xbf16> to vector<32x64xbf16>
    %cst_26 = arith.constant dense<0.000000e+00> : vector<8x64xf32>
    %42 = tpu.matmul %39, %41, %cst_26 {dimension_numbers = #tpu.dot_dimension_numbers<[1], [0], [0], [1], [0, 0, 1, 1], [], []>} : vector<8x32xbf16>, vector<32x64xbf16>, vector<8x64xf32> -> vector<8x64xf32>
    %43 = arith.addf %38, %42 : vector<8x64xf32>
    %44 = vector.extract_strided_slice %2 {offsets = [8, 0], sizes = [8, 32], strides = [1, 1]} : vector<16x32xbf16> to vector<8x32xbf16>
    %c8 = arith.constant 8 : index
    %c0_27 = arith.constant 0 : index
    %c0_28 = arith.constant 0 : index
    %45 = vector.load %arg2[%c8, %c0_27, %c0_28] : memref<9x32x64xbf16, #tpu.memory_space<vmem>>, vector<1x32x64xbf16>
    %46 = vector.shape_cast %45 : vector<1x32x64xbf16> to vector<32x64xbf16>
    %cst_29 = arith.constant dense<0.000000e+00> : vector<8x64xf32>
    %47 = tpu.matmul %44, %46, %cst_29 {dimension_numbers = #tpu.dot_dimension_numbers<[1], [0], [0], [1], [0, 0, 1, 1], [], []>} : vector<8x32xbf16>, vector<32x64xbf16>, vector<8x64xf32> -> vector<8x64xf32>
    %48 = arith.addf %43, %47 : vector<8x64xf32>
    %c0_30 = arith.constant 0 : index
    %c0_31 = arith.constant 0 : index
    %49 = vector.load %arg3[%c0_30, %c0_31] : memref<1x64xf32, #tpu.memory_space<vmem>>, vector<1x64xf32>
    %50 = vector.broadcast %49 : vector<1x64xf32> to vector<8x64xf32>
    %51 = arith.addf %48, %50 : vector<8x64xf32>
    %cst_32 = arith.constant 0.000000e+00 : f32
    %52 = vector.broadcast %cst_32 : f32 to vector<8x64xf32>
    %53 = arith.maximumf %51, %52 : vector<8x64xf32>
    %54 = arith.truncf %53 : vector<8x64xf32> to vector<8x64xbf16>
    %c0_33 = arith.constant 0 : index
    %c0_34 = arith.constant 0 : index
    %c0_35 = arith.constant 0 : index
    %55 = vector.load %arg4[%c0_33, %c0_34, %c0_35] : memref<1x64x32xbf16, #tpu.memory_space<vmem>>, vector<1x64x32xbf16>
    %56 = vector.shape_cast %55 : vector<1x64x32xbf16> to vector<64x32xbf16>
    %cst_36 = arith.constant dense<0.000000e+00> : vector<8x32xf32>
    %57 = tpu.matmul %54, %56, %cst_36 {dimension_numbers = #tpu.dot_dimension_numbers<[1], [0], [0], [1], [0, 0, 1, 1], [], []>} : vector<8x64xbf16>, vector<64x32xbf16>, vector<8x32xf32> -> vector<8x32xf32>
    %c0_37 = arith.constant 0 : index
    %c0_38 = arith.constant 0 : index
    %58 = vector.load %arg5[%c0_37, %c0_38] : memref<1x32xf32, #tpu.memory_space<vmem>>, vector<1x32xf32>
    %59 = vector.broadcast %58 : vector<1x32xf32> to vector<8x32xf32>
    %60 = arith.addf %57, %59 : vector<8x32xf32>
    %61 = vector.extract_strided_slice %1 {offsets = [4, 0], sizes = [8, 32], strides = [1, 1]} : vector<16x32xf32> to vector<8x32xf32>
    %62 = arith.addf %60, %61 : vector<8x32xf32>
    %cst_39 = arith.constant dense<0.000000e+00> : vector<8xf32>
    %63 = vector.multi_reduction <add>, %62, %cst_39 [1] : vector<8x32xf32> to vector<8xf32>
    %64 = vector.shape_cast %63 : vector<8xf32> to vector<8x1xf32>
    %cst_40 = arith.constant 3.200000e+01 : f32
    %65 = vector.broadcast %cst_40 : f32 to vector<8x1xf32>
    %66 = arith.divf %64, %65 : vector<8x1xf32>
    %67 = vector.broadcast %66 : vector<8x1xf32> to vector<8x32xf32>
    %68 = arith.subf %62, %67 : vector<8x32xf32>
    %69 = arith.mulf %68, %68 : vector<8x32xf32>
    %cst_41 = arith.constant dense<0.000000e+00> : vector<8xf32>
    %70 = vector.multi_reduction <add>, %69, %cst_41 [1] : vector<8x32xf32> to vector<8xf32>
    %71 = vector.shape_cast %70 : vector<8xf32> to vector<8x1xf32>
    %cst_42 = arith.constant 3.200000e+01 : f32
    %72 = vector.broadcast %cst_42 : f32 to vector<8x1xf32>
    %73 = arith.divf %71, %72 : vector<8x1xf32>
    %74 = vector.broadcast %66 : vector<8x1xf32> to vector<8x32xf32>
    %75 = arith.subf %62, %74 : vector<8x32xf32>
    %cst_43 = arith.constant 9.99999974E-6 : f32
    %76 = vector.broadcast %cst_43 : f32 to vector<8x1xf32>
    %77 = arith.addf %73, %76 : vector<8x1xf32>
    %78 = math.rsqrt %77 : vector<8x1xf32>
    %79 = vector.broadcast %78 : vector<8x1xf32> to vector<8x32xf32>
    %80 = arith.mulf %75, %79 : vector<8x32xf32>
    %c0_44 = arith.constant 0 : index
    %c0_45 = arith.constant 0 : index
    %81 = vector.load %arg6[%c0_44, %c0_45] : memref<1x32xf32, #tpu.memory_space<vmem>>, vector<1x32xf32>
    %82 = vector.broadcast %81 : vector<1x32xf32> to vector<8x32xf32>
    %83 = arith.mulf %80, %82 : vector<8x32xf32>
    %c0_46 = arith.constant 0 : index
    %c0_47 = arith.constant 0 : index
    %84 = vector.load %arg7[%c0_46, %c0_47] : memref<1x32xf32, #tpu.memory_space<vmem>>, vector<1x32xf32>
    %85 = vector.broadcast %84 : vector<1x32xf32> to vector<8x32xf32>
    %86 = arith.addf %83, %85 : vector<8x32xf32>
    %c0_48 = arith.constant 0 : index
    %c0_49 = arith.constant 0 : index
    %c0_50 = arith.constant 0 : index
    %87 = vector.load %arg8[%c0_48, %c0_49, %c0_50] : memref<1x8x1xf32, #tpu.memory_space<vmem>>, vector<1x8x1xf32>
    %88 = vector.shape_cast %87 : vector<1x8x1xf32> to vector<8x1xf32>
    %89 = vector.broadcast %88 : vector<8x1xf32> to vector<8x32xf32>
    %90 = arith.mulf %86, %89 : vector<8x32xf32>
    %c0_51 = arith.constant 0 : index
    %c0_52 = arith.constant 0 : index
    %c0_53 = arith.constant 0 : index
    %91 = vector.load %arg9[%c0_51, %c0_52, %c0_53] : memref<1x8x32xf32, #tpu.memory_space<vmem>>, vector<1x8x32xf32>
    %92 = vector.shape_cast %91 : vector<1x8x32xf32> to vector<8x32xf32>
    %93 = vector.shape_cast %90 : vector<8x32xf32> to vector<1x8x32xf32>
    tpu.vector_store %arg9[%c0_51, %c0_52, %c0_53], %93 {strides = array<i32>} : memref<1x8x32xf32, #tpu.memory_space<vmem>>, vector<1x8x32xf32>,
    return
  }
  func.func @transform_0(%arg0: i32) -> (i32, i32, i32) {
    %c0_i32 = arith.constant 0 : i32
    %c0_i32_0 = arith.constant 0 : i32
    %c0_i32_1 = arith.constant 0 : i32
    return %arg0, %c0_i32, %c0_i32_0 : i32, i32, i32
  }
  func.func @transform_1(%arg0: i32) -> (i32, i32, i32) {
    %c0_i32 = arith.constant 0 : i32
    %c0_i32_0 = arith.constant 0 : i32
    %c0_i32_1 = arith.constant 0 : i32
    %c0_i32_2 = arith.constant 0 : i32
    return %c0_i32, %c0_i32_0, %c0_i32_1 : i32, i32, i32
  }
  func.func @transform_2(%arg0: i32) -> (i32, i32) {
    %c0_i32 = arith.constant 0 : i32
    %c0_i32_0 = arith.constant 0 : i32
    %c0_i32_1 = arith.constant 0 : i32
    return %c0_i32, %c0_i32_0 : i32, i32
  }
  func.func @transform_3(%arg0: i32) -> (i32, i32, i32) {
    %c0_i32 = arith.constant 0 : i32
    %c0_i32_0 = arith.constant 0 : i32
    %c0_i32_1 = arith.constant 0 : i32
    %c0_i32_2 = arith.constant 0 : i32
    return %c0_i32, %c0_i32_0, %c0_i32_1 : i32, i32, i32
  }
  func.func @transform_4(%arg0: i32) -> (i32, i32) {
    %c0_i32 = arith.constant 0 : i32
    %c0_i32_0 = arith.constant 0 : i32
    %c0_i32_1 = arith.constant 0 : i32
    return %c0_i32, %c0_i32_0 : i32, i32
  }
  func.func @transform_5(%arg0: i32) -> (i32, i32) {
    %c0_i32 = arith.constant 0 : i32
    %c0_i32_0 = arith.constant 0 : i32
    %c0_i32_1 = arith.constant 0 : i32
    return %c0_i32, %c0_i32_0 : i32, i32
  }
  func.func @transform_6(%arg0: i32) -> (i32, i32) {
    %c0_i32 = arith.constant 0 : i32
    %c0_i32_0 = arith.constant 0 : i32
    %c0_i32_1 = arith.constant 0 : i32
    return %c0_i32, %c0_i32_0 : i32, i32
  }
  func.func @transform_7(%arg0: i32) -> (i32, i32, i32) {
    %c0_i32 = arith.constant 0 : i32
    %c0_i32_0 = arith.constant 0 : i32
    %c0_i32_1 = arith.constant 0 : i32
    return %arg0, %c0_i32, %c0_i32_0 : i32, i32, i32
  }
  func.func @transform_8(%arg0: i32) -> (i32, i32, i32) {
    %c0_i32 = arith.constant 0 : i32
    %c0_i32_0 = arith.constant 0 : i32
    %c0_i32_1 = arith.constant 0 : i32
    return %arg0, %c0_i32, %c0_i32_0 : i32, i32, i32
  }
}

module attributes {stable_mosaic.version = 11 : i64} {
  func.func @_lr_kernel(%arg0: i32, %arg1: memref<1x16x8xbf16, #tpu.memory_space<vmem>>, %arg2: memref<1x8x32xbf16, #tpu.memory_space<vmem>>, %arg3: memref<1x16x32xf32, #tpu.memory_space<vmem>>) attributes {dimension_semantics = [#tpu.dimension_semantics<parallel>], iteration_bounds = array<i64: 2>, scalar_prefetch = 0 : i64, scratch_operands = 0 : i64, tpu.core_type = #tpu.core_type<tc>, window_params = [{transform_indices = @transform_0, window_bounds = array<i64: 1, 16, 8>}, {transform_indices = @transform_1, window_bounds = array<i64: 1, 8, 32>}, {transform_indices = @transform_2, window_bounds = array<i64: 1, 16, 32>}]} {
    %c0 = arith.constant 0 : index
    %c0_0 = arith.constant 0 : index
    %c0_1 = arith.constant 0 : index
    %0 = vector.load %arg1[%c0, %c0_0, %c0_1] : memref<1x16x8xbf16, #tpu.memory_space<vmem>>, vector<1x16x8xbf16>
    %1 = vector.shape_cast %0 : vector<1x16x8xbf16> to vector<16x8xbf16>
    %c0_2 = arith.constant 0 : index
    %c0_3 = arith.constant 0 : index
    %c0_4 = arith.constant 0 : index
    %2 = vector.load %arg2[%c0_2, %c0_3, %c0_4] : memref<1x8x32xbf16, #tpu.memory_space<vmem>>, vector<1x8x32xbf16>
    %3 = vector.shape_cast %2 : vector<1x8x32xbf16> to vector<8x32xbf16>
    %cst = arith.constant dense<0.000000e+00> : vector<16x32xf32>
    %4 = tpu.matmul %1, %3, %cst {dimension_numbers = #tpu.dot_dimension_numbers<[1], [0], [0], [1], [0, 0, 1, 1], [], []>} : vector<16x8xbf16>, vector<8x32xbf16>, vector<16x32xf32> -> vector<16x32xf32>
    %c0_5 = arith.constant 0 : index
    %c0_6 = arith.constant 0 : index
    %c0_7 = arith.constant 0 : index
    %5 = vector.load %arg3[%c0_5, %c0_6, %c0_7] : memref<1x16x32xf32, #tpu.memory_space<vmem>>, vector<1x16x32xf32>
    %6 = vector.shape_cast %5 : vector<1x16x32xf32> to vector<16x32xf32>
    %7 = vector.shape_cast %4 : vector<16x32xf32> to vector<1x16x32xf32>
    tpu.vector_store %arg3[%c0_5, %c0_6, %c0_7], %7 {strides = array<i32>} : memref<1x16x32xf32, #tpu.memory_space<vmem>>, vector<1x16x32xf32>,
    return
  }
  func.func @transform_0(%arg0: i32) -> (i32, i32, i32) {
    %c0_i32 = arith.constant 0 : i32
    %c0_i32_0 = arith.constant 0 : i32
    %c0_i32_1 = arith.constant 0 : i32
    return %arg0, %c0_i32, %c0_i32_0 : i32, i32, i32
  }
  func.func @transform_1(%arg0: i32) -> (i32, i32, i32) {
    %c0_i32 = arith.constant 0 : i32
    %c0_i32_0 = arith.constant 0 : i32
    %c0_i32_1 = arith.constant 0 : i32
    return %arg0, %c0_i32, %c0_i32_0 : i32, i32, i32
  }
  func.func @transform_2(%arg0: i32) -> (i32, i32, i32) {
    %c0_i32 = arith.constant 0 : i32
    %c0_i32_0 = arith.constant 0 : i32
    %c0_i32_1 = arith.constant 0 : i32
    return %arg0, %c0_i32, %c0_i32_0 : i32, i32, i32
  }
}

module attributes {stable_mosaic.version = 11 : i64} {
  func.func @_mha_kernel(%arg0: i32, %arg1: memref<1x16x32xf32, #tpu.memory_space<vmem>>, %arg2: memref<32x96xbf16, #tpu.memory_space<vmem>>, %arg3: memref<1x96xf32, #tpu.memory_space<vmem>>, %arg4: memref<2x16x32xbf16, #tpu.memory_space<vmem>>, %arg5: memref<1x32xf32, #tpu.memory_space<vmem>>, %arg6: memref<1x32xf32, #tpu.memory_space<vmem>>, %arg7: memref<1x32xf32, #tpu.memory_space<vmem>>, %arg8: memref<1x16x16xf32, #tpu.memory_space<vmem>>, %arg9: memref<1x16x1xf32, #tpu.memory_space<vmem>>, %arg10: memref<1x16x32xf32, #tpu.memory_space<vmem>>) attributes {dimension_semantics = [#tpu.dimension_semantics<parallel>], iteration_bounds = array<i64: 2>, scalar_prefetch = 0 : i64, scratch_operands = 0 : i64, tpu.core_type = #tpu.core_type<tc>, window_params = [{transform_indices = @transform_0, window_bounds = array<i64: 1, 16, 32>}, {pipeline_mode = #tpu.pipeline_mode<synchronous>, transform_indices = @transform_1, window_bounds = array<i64: 32, 96>}, {pipeline_mode = #tpu.pipeline_mode<synchronous>, transform_indices = @transform_2, window_bounds = array<i64: 1, 96>}, {pipeline_mode = #tpu.pipeline_mode<synchronous>, transform_indices = @transform_3, window_bounds = array<i64: 2, 16, 32>}, {pipeline_mode = #tpu.pipeline_mode<synchronous>, transform_indices = @transform_4, window_bounds = array<i64: 1, 32>}, {pipeline_mode = #tpu.pipeline_mode<synchronous>, transform_indices = @transform_5, window_bounds = array<i64: 1, 32>}, {pipeline_mode = #tpu.pipeline_mode<synchronous>, transform_indices = @transform_6, window_bounds = array<i64: 1, 32>}, {transform_indices = @transform_7, window_bounds = array<i64: 1, 16, 16>}, {transform_indices = @transform_8, window_bounds = array<i64: 1, 16, 1>}, {transform_indices = @transform_9, window_bounds = array<i64: 1, 16, 32>}]} {
    %c0 = arith.constant 0 : index
    %c0_0 = arith.constant 0 : index
    %c0_1 = arith.constant 0 : index
    %0 = vector.load %arg1[%c0, %c0_0, %c0_1] : memref<1x16x32xf32, #tpu.memory_space<vmem>>, vector<1x16x32xf32>
    %1 = vector.shape_cast %0 : vector<1x16x32xf32> to vector<16x32xf32>
    %2 = arith.truncf %1 : vector<16x32xf32> to vector<16x32xbf16>
    %c0_2 = arith.constant 0 : index
    %c0_3 = arith.constant 0 : index
    %3 = vector.load %arg2[%c0_2, %c0_3] : memref<32x96xbf16, #tpu.memory_space<vmem>>, vector<32x96xbf16>
    %cst = arith.constant dense<0.000000e+00> : vector<16x96xf32>
    %4 = tpu.matmul %2, %3, %cst {dimension_numbers = #tpu.dot_dimension_numbers<[1], [0], [0], [1], [0, 0, 1, 1], [], []>} : vector<16x32xbf16>, vector<32x96xbf16>, vector<16x96xf32> -> vector<16x96xf32>
    %c0_4 = arith.constant 0 : index
    %c0_5 = arith.constant 0 : index
    %5 = vector.load %arg3[%c0_4, %c0_5] : memref<1x96xf32, #tpu.memory_space<vmem>>, vector<1x96xf32>
    %6 = vector.broadcast %5 : vector<1x96xf32> to vector<16x96xf32>
    %7 = arith.addf %4, %6 : vector<16x96xf32>
    %c0_6 = arith.constant 0 : index
    %c0_7 = arith.constant 0 : index
    %c0_8 = arith.constant 0 : index
    %8 = vector.load %arg8[%c0_6, %c0_7, %c0_8] : memref<1x16x16xf32, #tpu.memory_space<vmem>>, vector<1x16x16xf32>
    %9 = vector.shape_cast %8 : vector<1x16x16xf32> to vector<16x16xf32>
    %cst_9 = arith.constant 0.000000e+00 : f32
    %10 = vector.broadcast %cst_9 : f32 to vector<16x32xf32>
    %11 = vector.extract_strided_slice %7 {offsets = [0, 0], sizes = [16, 16], strides = [1, 1]} : vector<16x96xf32> to vector<16x16xf32>
    %12 = arith.truncf %11 : vector<16x16xf32> to vector<16x16xbf16>
    %13 = vector.extract_strided_slice %7 {offsets = [0, 32], sizes = [16, 16], strides = [1, 1]} : vector<16x96xf32> to vector<16x16xf32>
    %14 = arith.truncf %13 : vector<16x16xf32> to vector<16x16xbf16>
    %15 = vector.extract_strided_slice %7 {offsets = [0, 64], sizes = [16, 16], strides = [1, 1]} : vector<16x96xf32> to vector<16x16xf32>
    %16 = arith.truncf %15 : vector<16x16xf32> to vector<16x16xbf16>
    %cst_10 = arith.constant dense<0.000000e+00> : vector<16x16xf32>
    %17 = tpu.matmul %12, %14, %cst_10 {dimension_numbers = #tpu.dot_dimension_numbers<[1], [1], [0], [0], [0, 0, 1, 0], [], []>} : vector<16x16xbf16>, vector<16x16xbf16>, vector<16x16xf32> -> vector<16x16xf32>
    %cst_11 = arith.constant 2.500000e-01 : f32
    %18 = vector.broadcast %cst_11 : f32 to vector<16x16xf32>
    %19 = arith.mulf %17, %18 : vector<16x16xf32>
    %20 = arith.addf %19, %9 : vector<16x16xf32>
    %cst_12 = arith.constant dense<0xFF800000> : vector<16xf32>
    %21 = vector.multi_reduction <maximumf>, %20, %cst_12 [1] : vector<16x16xf32> to vector<16xf32>
    %22 = vector.shape_cast %21 : vector<16xf32> to vector<16x1xf32>
    %23 = vector.broadcast %22 : vector<16x1xf32> to vector<16x16xf32>
    %24 = arith.subf %20, %23 : vector<16x16xf32>
    %25 = math.exp %24 : vector<16x16xf32>
    %cst_13 = arith.constant dense<0.000000e+00> : vector<16xf32>
    %26 = vector.multi_reduction <add>, %25, %cst_13 [1] : vector<16x16xf32> to vector<16xf32>
    %27 = vector.shape_cast %26 : vector<16xf32> to vector<16x1xf32>
    %28 = tpu.reciprocal %27 {approx = true} : vector<16x1xf32> -> vector<16x1xf32>
    %29 = vector.broadcast %28 : vector<16x1xf32> to vector<16x16xf32>
    %30 = arith.mulf %25, %29 : vector<16x16xf32>
    %31 = arith.truncf %30 : vector<16x16xf32> to vector<16x16xbf16>
    %cst_14 = arith.constant dense<0.000000e+00> : vector<16x16xf32>
    %32 = tpu.matmul %31, %16, %cst_14 {dimension_numbers = #tpu.dot_dimension_numbers<[1], [0], [0], [1], [0, 0, 1, 1], [], []>} : vector<16x16xbf16>, vector<16x16xbf16>, vector<16x16xf32> -> vector<16x16xf32>
    %33 = arith.truncf %32 : vector<16x16xf32> to vector<16x16xbf16>
    %c0_15 = arith.constant 0 : index
    %c0_16 = arith.constant 0 : index
    %c0_17 = arith.constant 0 : index
    %34 = vector.load %arg4[%c0_15, %c0_16, %c0_17] : memref<2x16x32xbf16, #tpu.memory_space<vmem>>, vector<1x16x32xbf16>
    %35 = vector.shape_cast %34 : vector<1x16x32xbf16> to vector<16x32xbf16>
    %cst_18 = arith.constant dense<0.000000e+00> : vector<16x32xf32>
    %36 = tpu.matmul %33, %35, %cst_18 {dimension_numbers = #tpu.dot_dimension_numbers<[1], [0], [0], [1], [0, 0, 1, 1], [], []>} : vector<16x16xbf16>, vector<16x32xbf16>, vector<16x32xf32> -> vector<16x32xf32>
    %37 = arith.addf %10, %36 : vector<16x32xf32>
    %38 = vector.extract_strided_slice %7 {offsets = [0, 16], sizes = [16, 16], strides = [1, 1]} : vector<16x96xf32> to vector<16x16xf32>
    %39 = arith.truncf %38 : vector<16x16xf32> to vector<16x16xbf16>
    %40 = vector.extract_strided_slice %7 {offsets = [0, 48], sizes = [16, 16], strides = [1, 1]} : vector<16x96xf32> to vector<16x16xf32>
    %41 = arith.truncf %40 : vector<16x16xf32> to vector<16x16xbf16>
    %42 = vector.extract_strided_slice %7 {offsets = [0, 80], sizes = [16, 16], strides = [1, 1]} : vector<16x96xf32> to vector<16x16xf32>
    %43 = arith.truncf %42 : vector<16x16xf32> to vector<16x16xbf16>
    %cst_19 = arith.constant dense<0.000000e+00> : vector<16x16xf32>
    %44 = tpu.matmul %39, %41, %cst_19 {dimension_numbers = #tpu.dot_dimension_numbers<[1], [1], [0], [0], [0, 0, 1, 0], [], []>} : vector<16x16xbf16>, vector<16x16xbf16>, vector<16x16xf32> -> vector<16x16xf32>
    %cst_20 = arith.constant 2.500000e-01 : f32
    %45 = vector.broadcast %cst_20 : f32 to vector<16x16xf32>
    %46 = arith.mulf %44, %45 : vector<16x16xf32>
    %47 = arith.addf %46, %9 : vector<16x16xf32>
    %cst_21 = arith.constant dense<0xFF800000> : vector<16xf32>
    %48 = vector.multi_reduction <maximumf>, %47, %cst_21 [1] : vector<16x16xf32> to vector<16xf32>
    %49 = vector.shape_cast %48 : vector<16xf32> to vector<16x1xf32>
    %50 = vector.broadcast %49 : vector<16x1xf32> to vector<16x16xf32>
    %51 = arith.subf %47, %50 : vector<16x16xf32>
    %52 = math.exp %51 : vector<16x16xf32>
    %cst_22 = arith.constant dense<0.000000e+00> : vector<16xf32>
    %53 = vector.multi_reduction <add>, %52, %cst_22 [1] : vector<16x16xf32> to vector<16xf32>
    %54 = vector.shape_cast %53 : vector<16xf32> to vector<16x1xf32>
    %55 = tpu.reciprocal %54 {approx = true} : vector<16x1xf32> -> vector<16x1xf32>
    %56 = vector.broadcast %55 : vector<16x1xf32> to vector<16x16xf32>
    %57 = arith.mulf %52, %56 : vector<16x16xf32>
    %58 = arith.truncf %57 : vector<16x16xf32> to vector<16x16xbf16>
    %cst_23 = arith.constant dense<0.000000e+00> : vector<16x16xf32>
    %59 = tpu.matmul %58, %43, %cst_23 {dimension_numbers = #tpu.dot_dimension_numbers<[1], [0], [0], [1], [0, 0, 1, 1], [], []>} : vector<16x16xbf16>, vector<16x16xbf16>, vector<16x16xf32> -> vector<16x16xf32>
    %60 = arith.truncf %59 : vector<16x16xf32> to vector<16x16xbf16>
    %c1 = arith.constant 1 : index
    %c0_24 = arith.constant 0 : index
    %c0_25 = arith.constant 0 : index
    %61 = vector.load %arg4[%c1, %c0_24, %c0_25] : memref<2x16x32xbf16, #tpu.memory_space<vmem>>, vector<1x16x32xbf16>
    %62 = vector.shape_cast %61 : vector<1x16x32xbf16> to vector<16x32xbf16>
    %cst_26 = arith.constant dense<0.000000e+00> : vector<16x32xf32>
    %63 = tpu.matmul %60, %62, %cst_26 {dimension_numbers = #tpu.dot_dimension_numbers<[1], [0], [0], [1], [0, 0, 1, 1], [], []>} : vector<16x16xbf16>, vector<16x32xbf16>, vector<16x32xf32> -> vector<16x32xf32>
    %64 = arith.addf %37, %63 : vector<16x32xf32>
    %c0_27 = arith.constant 0 : index
    %c0_28 = arith.constant 0 : index
    %65 = vector.load %arg5[%c0_27, %c0_28] : memref<1x32xf32, #tpu.memory_space<vmem>>, vector<1x32xf32>
    %66 = vector.broadcast %65 : vector<1x32xf32> to vector<16x32xf32>
    %67 = arith.addf %64, %66 : vector<16x32xf32>
    %68 = arith.addf %67, %1 : vector<16x32xf32>
    %cst_29 = arith.constant dense<0.000000e+00> : vector<16xf32>
    %69 = vector.multi_reduction <add>, %68, %cst_29 [1] : vector<16x32xf32> to vector<16xf32>
    %70 = vector.shape_cast %69 : vector<16xf32> to vector<16x1xf32>
    %cst_30 = arith.constant 3.200000e+01 : f32
    %71 = vector.broadcast %cst_30 : f32 to vector<16x1xf32>
    %72 = arith.divf %70, %71 : vector<16x1xf32>
    %73 = vector.broadcast %72 : vector<16x1xf32> to vector<16x32xf32>
    %74 = arith.subf %68, %73 : vector<16x32xf32>
    %75 = arith.mulf %74, %74 : vector<16x32xf32>
    %cst_31 = arith.constant dense<0.000000e+00> : vector<16xf32>
    %76 = vector.multi_reduction <add>, %75, %cst_31 [1] : vector<16x32xf32> to vector<16xf32>
    %77 = vector.shape_cast %76 : vector<16xf32> to vector<16x1xf32>
    %cst_32 = arith.constant 3.200000e+01 : f32
    %78 = vector.broadcast %cst_32 : f32 to vector<16x1xf32>
    %79 = arith.divf %77, %78 : vector<16x1xf32>
    %80 = vector.broadcast %72 : vector<16x1xf32> to vector<16x32xf32>
    %81 = arith.subf %68, %80 : vector<16x32xf32>
    %cst_33 = arith.constant 9.99999974E-6 : f32
    %82 = vector.broadcast %cst_33 : f32 to vector<16x1xf32>
    %83 = arith.addf %79, %82 : vector<16x1xf32>
    %84 = math.rsqrt %83 : vector<16x1xf32>
    %85 = vector.broadcast %84 : vector<16x1xf32> to vector<16x32xf32>
    %86 = arith.mulf %81, %85 : vector<16x32xf32>
    %c0_34 = arith.constant 0 : index
    %c0_35 = arith.constant 0 : index
    %87 = vector.load %arg6[%c0_34, %c0_35] : memref<1x32xf32, #tpu.memory_space<vmem>>, vector<1x32xf32>
    %88 = vector.broadcast %87 : vector<1x32xf32> to vector<16x32xf32>
    %89 = arith.mulf %86, %88 : vector<16x32xf32>
    %c0_36 = arith.constant 0 : index
    %c0_37 = arith.constant 0 : index
    %90 = vector.load %arg7[%c0_36, %c0_37] : memref<1x32xf32, #tpu.memory_space<vmem>>, vector<1x32xf32>
    %91 = vector.broadcast %90 : vector<1x32xf32> to vector<16x32xf32>
    %92 = arith.addf %89, %91 : vector<16x32xf32>
    %c0_38 = arith.constant 0 : index
    %c0_39 = arith.constant 0 : index
    %c0_40 = arith.constant 0 : index
    %93 = vector.load %arg9[%c0_38, %c0_39, %c0_40] : memref<1x16x1xf32, #tpu.memory_space<vmem>>, vector<1x16x1xf32>
    %94 = vector.shape_cast %93 : vector<1x16x1xf32> to vector<16x1xf32>
    %95 = vector.broadcast %94 : vector<16x1xf32> to vector<16x32xf32>
    %96 = arith.mulf %92, %95 : vector<16x32xf32>
    %c0_41 = arith.constant 0 : index
    %c0_42 = arith.constant 0 : index
    %c0_43 = arith.constant 0 : index
    %97 = vector.load %arg10[%c0_41, %c0_42, %c0_43] : memref<1x16x32xf32, #tpu.memory_space<vmem>>, vector<1x16x32xf32>
    %98 = vector.shape_cast %97 : vector<1x16x32xf32> to vector<16x32xf32>
    %99 = vector.shape_cast %96 : vector<16x32xf32> to vector<1x16x32xf32>
    tpu.vector_store %arg10[%c0_41, %c0_42, %c0_43], %99 {strides = array<i32>} : memref<1x16x32xf32, #tpu.memory_space<vmem>>, vector<1x16x32xf32>,
    return
  }
  func.func @transform_0(%arg0: i32) -> (i32, i32, i32) {
    %c0_i32 = arith.constant 0 : i32
    %c0_i32_0 = arith.constant 0 : i32
    %c0_i32_1 = arith.constant 0 : i32
    return %arg0, %c0_i32, %c0_i32_0 : i32, i32, i32
  }
  func.func @transform_1(%arg0: i32) -> (i32, i32) {
    %c0_i32 = arith.constant 0 : i32
    %c0_i32_0 = arith.constant 0 : i32
    %c0_i32_1 = arith.constant 0 : i32
    return %c0_i32, %c0_i32_0 : i32, i32
  }
  func.func @transform_2(%arg0: i32) -> (i32, i32) {
    %c0_i32 = arith.constant 0 : i32
    %c0_i32_0 = arith.constant 0 : i32
    %c0_i32_1 = arith.constant 0 : i32
    return %c0_i32, %c0_i32_0 : i32, i32
  }
  func.func @transform_3(%arg0: i32) -> (i32, i32, i32) {
    %c0_i32 = arith.constant 0 : i32
    %c0_i32_0 = arith.constant 0 : i32
    %c0_i32_1 = arith.constant 0 : i32
    %c0_i32_2 = arith.constant 0 : i32
    return %c0_i32, %c0_i32_0, %c0_i32_1 : i32, i32, i32
  }
  func.func @transform_4(%arg0: i32) -> (i32, i32) {
    %c0_i32 = arith.constant 0 : i32
    %c0_i32_0 = arith.constant 0 : i32
    %c0_i32_1 = arith.constant 0 : i32
    return %c0_i32, %c0_i32_0 : i32, i32
  }
  func.func @transform_5(%arg0: i32) -> (i32, i32) {
    %c0_i32 = arith.constant 0 : i32
    %c0_i32_0 = arith.constant 0 : i32
    %c0_i32_1 = arith.constant 0 : i32
    return %c0_i32, %c0_i32_0 : i32, i32
  }
  func.func @transform_6(%arg0: i32) -> (i32, i32) {
    %c0_i32 = arith.constant 0 : i32
    %c0_i32_0 = arith.constant 0 : i32
    %c0_i32_1 = arith.constant 0 : i32
    return %c0_i32, %c0_i32_0 : i32, i32
  }
  func.func @transform_7(%arg0: i32) -> (i32, i32, i32) {
    %c0_i32 = arith.constant 0 : i32
    %c0_i32_0 = arith.constant 0 : i32
    %c0_i32_1 = arith.constant 0 : i32
    return %arg0, %c0_i32, %c0_i32_0 : i32, i32, i32
  }
  func.func @transform_8(%arg0: i32) -> (i32, i32, i32) {
    %c0_i32 = arith.constant 0 : i32
    %c0_i32_0 = arith.constant 0 : i32
    %c0_i32_1 = arith.constant 0 : i32
    return %arg0, %c0_i32, %c0_i32_0 : i32, i32, i32
  }
  func.func @transform_9(%arg0: i32) -> (i32, i32, i32) {
    %c0_i32 = arith.constant 0 : i32
    %c0_i32_0 = arith.constant 0 : i32
    %c0_i32_1 = arith.constant 0 : i32
    return %arg0, %c0_i32, %c0_i32_0 : i32, i32, i32
  }
}

module attributes {stable_mosaic.version = 11 : i64} {
  func.func @_linear_kernel(%arg0: memref<32x32xbf16, #tpu.memory_space<vmem>>, %arg1: memref<32x16xbf16, #tpu.memory_space<vmem>>, %arg2: memref<1x16xf32, #tpu.memory_space<vmem>>, %arg3: memref<32x1xf32, #tpu.memory_space<vmem>>, %arg4: memref<32x16xf32, #tpu.memory_space<vmem>>) attributes {dimension_semantics = [], scalar_prefetch = 0 : i64, scratch_operands = 0 : i64, tpu.core_type = #tpu.core_type<tc>} {
    %c0 = arith.constant 0 : index
    %c0_0 = arith.constant 0 : index
    %0 = vector.load %arg0[%c0, %c0_0] : memref<32x32xbf16, #tpu.memory_space<vmem>>, vector<32x32xbf16>
    %c0_1 = arith.constant 0 : index
    %c0_2 = arith.constant 0 : index
    %1 = vector.load %arg1[%c0_1, %c0_2] : memref<32x16xbf16, #tpu.memory_space<vmem>>, vector<32x16xbf16>
    %cst = arith.constant dense<0.000000e+00> : vector<32x16xf32>
    %2 = tpu.matmul %0, %1, %cst {dimension_numbers = #tpu.dot_dimension_numbers<[1], [0], [0], [1], [0, 0, 1, 1], [], []>} : vector<32x32xbf16>, vector<32x16xbf16>, vector<32x16xf32> -> vector<32x16xf32>
    %c0_3 = arith.constant 0 : index
    %c0_4 = arith.constant 0 : index
    %3 = vector.load %arg2[%c0_3, %c0_4] : memref<1x16xf32, #tpu.memory_space<vmem>>, vector<1x16xf32>
    %4 = vector.broadcast %3 : vector<1x16xf32> to vector<32x16xf32>
    %5 = arith.addf %2, %4 : vector<32x16xf32>
    %c0_5 = arith.constant 0 : index
    %c0_6 = arith.constant 0 : index
    %6 = vector.load %arg3[%c0_5, %c0_6] : memref<32x1xf32, #tpu.memory_space<vmem>>, vector<32x1xf32>
    %7 = vector.broadcast %6 : vector<32x1xf32> to vector<32x16xf32>
    %8 = arith.mulf %5, %7 : vector<32x16xf32>
    %c0_7 = arith.constant 0 : index
    %c0_8 = arith.constant 0 : index
    %9 = vector.load %arg4[%c0_7, %c0_8] : memref<32x16xf32, #tpu.memory_space<vmem>>, vector<32x16xf32>
    tpu.vector_store %arg4[%c0_7, %c0_8], %8 {strides = array<i32>} : memref<32x16xf32, #tpu.memory_space<vmem>>, vector<32x16xf32>,
    return
  }
}

module attributes {stable_mosaic.version = 11 : i64} {
  func.func @_ffn_kernel(%arg0: i32, %arg1: memref<1x24x32xf32, #tpu.memory_space<vmem>>, %arg2: memref<9x32x64xbf16, #tpu.memory_space<vmem>>, %arg3: memref<1x64xf32, #tpu.memory_space<vmem>>, %arg4: memref<1x64x32xbf16, #tpu.memory_space<vmem>>, %arg5: memref<1x32xf32, #tpu.memory_space<vmem>>, %arg6: memref<1x32xf32, #tpu.memory_space<vmem>>, %arg7: memref<1x32xf32, #tpu.memory_space<vmem>>, %arg8: memref<1x16x1xf32, #tpu.memory_space<vmem>>, %arg9: memref<1x16x32xf32, #tpu.memory_space<vmem>>) attributes {dimension_semantics = [#tpu.dimension_semantics<parallel>], iteration_bounds = array<i64: 2>, scalar_prefetch = 0 : i64, scratch_operands = 0 : i64, tpu.core_type = #tpu.core_type<tc>, window_params = [{transform_indices = @transform_0, window_bounds = array<i64: 1, 24, 32>}, {pipeline_mode = #tpu.pipeline_mode<synchronous>, transform_indices = @transform_1, window_bounds = array<i64: 9, 32, 64>}, {pipeline_mode = #tpu.pipeline_mode<synchronous>, transform_indices = @transform_2, window_bounds = array<i64: 1, 64>}, {pipeline_mode = #tpu.pipeline_mode<synchronous>, transform_indices = @transform_3, window_bounds = array<i64: 1, 64, 32>}, {pipeline_mode = #tpu.pipeline_mode<synchronous>, transform_indices = @transform_4, window_bounds = array<i64: 1, 32>}, {pipeline_mode = #tpu.pipeline_mode<synchronous>, transform_indices = @transform_5, window_bounds = array<i64: 1, 32>}, {pipeline_mode = #tpu.pipeline_mode<synchronous>, transform_indices = @transform_6, window_bounds = array<i64: 1, 32>}, {transform_indices = @transform_7, window_bounds = array<i64: 1, 16, 1>}, {transform_indices = @transform_8, window_bounds = array<i64: 1, 16, 32>}]} {
    %c0 = arith.constant 0 : index
    %c0_0 = arith.constant 0 : index
    %c0_1 = arith.constant 0 : index
    %0 = vector.load %arg1[%c0, %c0_0, %c0_1] : memref<1x24x32xf32, #tpu.memory_space<vmem>>, vector<1x24x32xf32>
    %1 = vector.shape_cast %0 : vector<1x24x32xf32> to vector<24x32xf32>
    %2 = arith.truncf %1 : vector<24x32xf32> to vector<24x32xbf16>
    %cst = arith.constant 0.000000e+00 : f32
    %3 = vector.broadcast %cst : f32 to vector<16x64xf32>
    %4 = vector.extract_strided_slice %2 {offsets = [0, 0], sizes = [16, 32], strides = [1, 1]} : vector<24x32xbf16> to vector<16x32xbf16>
    %c0_2 = arith.constant 0 : index
    %c0_3 = arith.constant 0 : index
    %c0_4 = arith.constant 0 : index
    %5 = vector.load %arg2[%c0_2, %c0_3, %c0_4] : memref<9x32x64xbf16, #tpu.memory_space<vmem>>, vector<1x32x64xbf16>
    %6 = vector.shape_cast %5 : vector<1x32x64xbf16> to vector<32x64xbf16>
    %cst_5 = arith.constant dense<0.000000e+00> : vector<16x64xf32>
    %7 = tpu.matmul %4, %6, %cst_5 {dimension_numbers = #tpu.dot_dimension_numbers<[1], [0], [0], [1], [0, 0, 1, 1], [], []>} : vector<16x32xbf16>, vector<32x64xbf16>, vector<16x64xf32> -> vector<16x64xf32>
    %8 = arith.addf %3, %7 : vector<16x64xf32>
    %9 = vector.extract_strided_slice %2 {offsets = [1, 0], sizes = [16, 32], strides = [1, 1]} : vector<24x32xbf16> to vector<16x32xbf16>
    %c1 = arith.constant 1 : index
    %c0_6 = arith.constant 0 : index
    %c0_7 = arith.constant 0 : index
    %10 = vector.load %arg2[%c1, %c0_6, %c0_7] : memref<9x32x64xbf16, #tpu.memory_space<vmem>>, vector<1x32x64xbf16>
    %11 = vector.shape_cast %10 : vector<1x32x64xbf16> to vector<32x64xbf16>
    %cst_8 = arith.constant dense<0.000000e+00> : vector<16x64xf32>
    %12 = tpu.matmul %9, %11, %cst_8 {dimension_numbers = #tpu.dot_dimension_numbers<[1], [0], [0], [1], [0, 0, 1, 1], [], []>} : vector<16x32xbf16>, vector<32x64xbf16>, vector<16x64xf32> -> vector<16x64xf32>
    %13 = arith.addf %8, %12 : vector<16x64xf32>
    %14 = vector.extract_strided_slice %2 {offsets = [2, 0], sizes = [16, 32], strides = [1, 1]} : vector<24x32xbf16> to vector<16x32xbf16>
    %c2 = arith.constant 2 : index
    %c0_9 = arith.constant 0 : index
    %c0_10 = arith.constant 0 : index
    %15 = vector.load %arg2[%c2, %c0_9, %c0_10] : memref<9x32x64xbf16, #tpu.memory_space<vmem>>, vector<1x32x64xbf16>
    %16 = vector.shape_cast %15 : vector<1x32x64xbf16> to vector<32x64xbf16>
    %cst_11 = arith.constant dense<0.000000e+00> : vector<16x64xf32>
    %17 = tpu.matmul %14, %16, %cst_11 {dimension_numbers = #tpu.dot_dimension_numbers<[1], [0], [0], [1], [0, 0, 1, 1], [], []>} : vector<16x32xbf16>, vector<32x64xbf16>, vector<16x64xf32> -> vector<16x64xf32>
    %18 = arith.addf %13, %17 : vector<16x64xf32>
    %19 = vector.extract_strided_slice %2 {offsets = [3, 0], sizes = [16, 32], strides = [1, 1]} : vector<24x32xbf16> to vector<16x32xbf16>
    %c3 = arith.constant 3 : index
    %c0_12 = arith.constant 0 : index
    %c0_13 = arith.constant 0 : index
    %20 = vector.load %arg2[%c3, %c0_12, %c0_13] : memref<9x32x64xbf16, #tpu.memory_space<vmem>>, vector<1x32x64xbf16>
    %21 = vector.shape_cast %20 : vector<1x32x64xbf16> to vector<32x64xbf16>
    %cst_14 = arith.constant dense<0.000000e+00> : vector<16x64xf32>
    %22 = tpu.matmul %19, %21, %cst_14 {dimension_numbers = #tpu.dot_dimension_numbers<[1], [0], [0], [1], [0, 0, 1, 1], [], []>} : vector<16x32xbf16>, vector<32x64xbf16>, vector<16x64xf32> -> vector<16x64xf32>
    %23 = arith.addf %18, %22 : vector<16x64xf32>
    %24 = vector.extract_strided_slice %2 {offsets = [4, 0], sizes = [16, 32], strides = [1, 1]} : vector<24x32xbf16> to vector<16x32xbf16>
    %c4 = arith.constant 4 : index
    %c0_15 = arith.constant 0 : index
    %c0_16 = arith.constant 0 : index
    %25 = vector.load %arg2[%c4, %c0_15, %c0_16] : memref<9x32x64xbf16, #tpu.memory_space<vmem>>, vector<1x32x64xbf16>
    %26 = vector.shape_cast %25 : vector<1x32x64xbf16> to vector<32x64xbf16>
    %cst_17 = arith.constant dense<0.000000e+00> : vector<16x64xf32>
    %27 = tpu.matmul %24, %26, %cst_17 {dimension_numbers = #tpu.dot_dimension_numbers<[1], [0], [0], [1], [0, 0, 1, 1], [], []>} : vector<16x32xbf16>, vector<32x64xbf16>, vector<16x64xf32> -> vector<16x64xf32>
    %28 = arith.addf %23, %27 : vector<16x64xf32>
    %29 = vector.extract_strided_slice %2 {offsets = [5, 0], sizes = [16, 32], strides = [1, 1]} : vector<24x32xbf16> to vector<16x32xbf16>
    %c5 = arith.constant 5 : index
    %c0_18 = arith.constant 0 : index
    %c0_19 = arith.constant 0 : index
    %30 = vector.load %arg2[%c5, %c0_18, %c0_19] : memref<9x32x64xbf16, #tpu.memory_space<vmem>>, vector<1x32x64xbf16>
    %31 = vector.shape_cast %30 : vector<1x32x64xbf16> to vector<32x64xbf16>
    %cst_20 = arith.constant dense<0.000000e+00> : vector<16x64xf32>
    %32 = tpu.matmul %29, %31, %cst_20 {dimension_numbers = #tpu.dot_dimension_numbers<[1], [0], [0], [1], [0, 0, 1, 1], [], []>} : vector<16x32xbf16>, vector<32x64xbf16>, vector<16x64xf32> -> vector<16x64xf32>
    %33 = arith.addf %28, %32 : vector<16x64xf32>
    %34 = vector.extract_strided_slice %2 {offsets = [6, 0], sizes = [16, 32], strides = [1, 1]} : vector<24x32xbf16> to vector<16x32xbf16>
    %c6 = arith.constant 6 : index
    %c0_21 = arith.constant 0 : index
    %c0_22 = arith.constant 0 : index
    %35 = vector.load %arg2[%c6, %c0_21, %c0_22] : memref<9x32x64xbf16, #tpu.memory_space<vmem>>, vector<1x32x64xbf16>
    %36 = vector.shape_cast %35 : vector<1x32x64xbf16> to vector<32x64xbf16>
    %cst_23 = arith.constant dense<0.000000e+00> : vector<16x64xf32>
    %37 = tpu.matmul %34, %36, %cst_23 {dimension_numbers = #tpu.dot_dimension_numbers<[1], [0], [0], [1], [0, 0, 1, 1], [], []>} : vector<16x32xbf16>, vector<32x64xbf16>, vector<16x64xf32> -> vector<16x64xf32>
    %38 = arith.addf %33, %37 : vector<16x64xf32>
    %39 = vector.extract_strided_slice %2 {offsets = [7, 0], sizes = [16, 32], strides = [1, 1]} : vector<24x32xbf16> to vector<16x32xbf16>
    %c7 = arith.constant 7 : index
    %c0_24 = arith.constant 0 : index
    %c0_25 = arith.constant 0 : index
    %40 = vector.load %arg2[%c7, %c0_24, %c0_25] : memref<9x32x64xbf16, #tpu.memory_space<vmem>>, vector<1x32x64xbf16>
    %41 = vector.shape_cast %40 : vector<1x32x64xbf16> to vector<32x64xbf16>
    %cst_26 = arith.constant dense<0.000000e+00> : vector<16x64xf32>
    %42 = tpu.matmul %39, %41, %cst_26 {dimension_numbers = #tpu.dot_dimension_numbers<[1], [0], [0], [1], [0, 0, 1, 1], [], []>} : vector<16x32xbf16>, vector<32x64xbf16>, vector<16x64xf32> -> vector<16x64xf32>
    %43 = arith.addf %38, %42 : vector<16x64xf32>
    %44 = vector.extract_strided_slice %2 {offsets = [8, 0], sizes = [16, 32], strides = [1, 1]} : vector<24x32xbf16> to vector<16x32xbf16>
    %c8 = arith.constant 8 : index
    %c0_27 = arith.constant 0 : index
    %c0_28 = arith.constant 0 : index
    %45 = vector.load %arg2[%c8, %c0_27, %c0_28] : memref<9x32x64xbf16, #tpu.memory_space<vmem>>, vector<1x32x64xbf16>
    %46 = vector.shape_cast %45 : vector<1x32x64xbf16> to vector<32x64xbf16>
    %cst_29 = arith.constant dense<0.000000e+00> : vector<16x64xf32>
    %47 = tpu.matmul %44, %46, %cst_29 {dimension_numbers = #tpu.dot_dimension_numbers<[1], [0], [0], [1], [0, 0, 1, 1], [], []>} : vector<16x32xbf16>, vector<32x64xbf16>, vector<16x64xf32> -> vector<16x64xf32>
    %48 = arith.addf %43, %47 : vector<16x64xf32>
    %c0_30 = arith.constant 0 : index
    %c0_31 = arith.constant 0 : index
    %49 = vector.load %arg3[%c0_30, %c0_31] : memref<1x64xf32, #tpu.memory_space<vmem>>, vector<1x64xf32>
    %50 = vector.broadcast %49 : vector<1x64xf32> to vector<16x64xf32>
    %51 = arith.addf %48, %50 : vector<16x64xf32>
    %cst_32 = arith.constant 0.000000e+00 : f32
    %52 = vector.broadcast %cst_32 : f32 to vector<16x64xf32>
    %53 = arith.maximumf %51, %52 : vector<16x64xf32>
    %54 = arith.truncf %53 : vector<16x64xf32> to vector<16x64xbf16>
    %c0_33 = arith.constant 0 : index
    %c0_34 = arith.constant 0 : index
    %c0_35 = arith.constant 0 : index
    %55 = vector.load %arg4[%c0_33, %c0_34, %c0_35] : memref<1x64x32xbf16, #tpu.memory_space<vmem>>, vector<1x64x32xbf16>
    %56 = vector.shape_cast %55 : vector<1x64x32xbf16> to vector<64x32xbf16>
    %cst_36 = arith.constant dense<0.000000e+00> : vector<16x32xf32>
    %57 = tpu.matmul %54, %56, %cst_36 {dimension_numbers = #tpu.dot_dimension_numbers<[1], [0], [0], [1], [0, 0, 1, 1], [], []>} : vector<16x64xbf16>, vector<64x32xbf16>, vector<16x32xf32> -> vector<16x32xf32>
    %c0_37 = arith.constant 0 : index
    %c0_38 = arith.constant 0 : index
    %58 = vector.load %arg5[%c0_37, %c0_38] : memref<1x32xf32, #tpu.memory_space<vmem>>, vector<1x32xf32>
    %59 = vector.broadcast %58 : vector<1x32xf32> to vector<16x32xf32>
    %60 = arith.addf %57, %59 : vector<16x32xf32>
    %61 = vector.extract_strided_slice %1 {offsets = [4, 0], sizes = [16, 32], strides = [1, 1]} : vector<24x32xf32> to vector<16x32xf32>
    %62 = arith.addf %60, %61 : vector<16x32xf32>
    %cst_39 = arith.constant dense<0.000000e+00> : vector<16xf32>
    %63 = vector.multi_reduction <add>, %62, %cst_39 [1] : vector<16x32xf32> to vector<16xf32>
    %64 = vector.shape_cast %63 : vector<16xf32> to vector<16x1xf32>
    %cst_40 = arith.constant 3.200000e+01 : f32
    %65 = vector.broadcast %cst_40 : f32 to vector<16x1xf32>
    %66 = arith.divf %64, %65 : vector<16x1xf32>
    %67 = vector.broadcast %66 : vector<16x1xf32> to vector<16x32xf32>
    %68 = arith.subf %62, %67 : vector<16x32xf32>
    %69 = arith.mulf %68, %68 : vector<16x32xf32>
    %cst_41 = arith.constant dense<0.000000e+00> : vector<16xf32>
    %70 = vector.multi_reduction <add>, %69, %cst_41 [1] : vector<16x32xf32> to vector<16xf32>
    %71 = vector.shape_cast %70 : vector<16xf32> to vector<16x1xf32>
    %cst_42 = arith.constant 3.200000e+01 : f32
    %72 = vector.broadcast %cst_42 : f32 to vector<16x1xf32>
    %73 = arith.divf %71, %72 : vector<16x1xf32>
    %74 = vector.broadcast %66 : vector<16x1xf32> to vector<16x32xf32>
    %75 = arith.subf %62, %74 : vector<16x32xf32>
    %cst_43 = arith.constant 9.99999974E-6 : f32
    %76 = vector.broadcast %cst_43 : f32 to vector<16x1xf32>
    %77 = arith.addf %73, %76 : vector<16x1xf32>
    %78 = math.rsqrt %77 : vector<16x1xf32>
    %79 = vector.broadcast %78 : vector<16x1xf32> to vector<16x32xf32>
    %80 = arith.mulf %75, %79 : vector<16x32xf32>
    %c0_44 = arith.constant 0 : index
    %c0_45 = arith.constant 0 : index
    %81 = vector.load %arg6[%c0_44, %c0_45] : memref<1x32xf32, #tpu.memory_space<vmem>>, vector<1x32xf32>
    %82 = vector.broadcast %81 : vector<1x32xf32> to vector<16x32xf32>
    %83 = arith.mulf %80, %82 : vector<16x32xf32>
    %c0_46 = arith.constant 0 : index
    %c0_47 = arith.constant 0 : index
    %84 = vector.load %arg7[%c0_46, %c0_47] : memref<1x32xf32, #tpu.memory_space<vmem>>, vector<1x32xf32>
    %85 = vector.broadcast %84 : vector<1x32xf32> to vector<16x32xf32>
    %86 = arith.addf %83, %85 : vector<16x32xf32>
    %c0_48 = arith.constant 0 : index
    %c0_49 = arith.constant 0 : index
    %c0_50 = arith.constant 0 : index
    %87 = vector.load %arg8[%c0_48, %c0_49, %c0_50] : memref<1x16x1xf32, #tpu.memory_space<vmem>>, vector<1x16x1xf32>
    %88 = vector.shape_cast %87 : vector<1x16x1xf32> to vector<16x1xf32>
    %89 = vector.broadcast %88 : vector<16x1xf32> to vector<16x32xf32>
    %90 = arith.mulf %86, %89 : vector<16x32xf32>
    %c0_51 = arith.constant 0 : index
    %c0_52 = arith.constant 0 : index
    %c0_53 = arith.constant 0 : index
    %91 = vector.load %arg9[%c0_51, %c0_52, %c0_53] : memref<1x16x32xf32, #tpu.memory_space<vmem>>, vector<1x16x32xf32>
    %92 = vector.shape_cast %91 : vector<1x16x32xf32> to vector<16x32xf32>
    %93 = vector.shape_cast %90 : vector<16x32xf32> to vector<1x16x32xf32>
    tpu.vector_store %arg9[%c0_51, %c0_52, %c0_53], %93 {strides = array<i32>} : memref<1x16x32xf32, #tpu.memory_space<vmem>>, vector<1x16x32xf32>,
    return
  }
  func.func @transform_0(%arg0: i32) -> (i32, i32, i32) {
    %c0_i32 = arith.constant 0 : i32
    %c0_i32_0 = arith.constant 0 : i32
    %c0_i32_1 = arith.constant 0 : i32
    return %arg0, %c0_i32, %c0_i32_0 : i32, i32, i32
  }
  func.func @transform_1(%arg0: i32) -> (i32, i32, i32) {
    %c0_i32 = arith.constant 0 : i32
    %c0_i32_0 = arith.constant 0 : i32
    %c0_i32_1 = arith.constant 0 : i32
    %c0_i32_2 = arith.constant 0 : i32
    return %c0_i32, %c0_i32_0, %c0_i32_1 : i32, i32, i32
  }
  func.func @transform_2(%arg0: i32) -> (i32, i32) {
    %c0_i32 = arith.constant 0 : i32
    %c0_i32_0 = arith.constant 0 : i32
    %c0_i32_1 = arith.constant 0 : i32
    return %c0_i32, %c0_i32_0 : i32, i32
  }
  func.func @transform_3(%arg0: i32) -> (i32, i32, i32) {
    %c0_i32 = arith.constant 0 : i32
    %c0_i32_0 = arith.constant 0 : i32
    %c0_i32_1 = arith.constant 0 : i32
    %c0_i32_2 = arith.constant 0 : i32
    return %c0_i32, %c0_i32_0, %c0_i32_1 : i32, i32, i32
  }
  func.func @transform_4(%arg0: i32) -> (i32, i32) {
    %c0_i32 = arith.constant 0 : i32
    %c0_i32_0 = arith.constant 0 : i32
    %c0_i32_1 = arith.constant 0 : i32
    return %c0_i32, %c0_i32_0 : i32, i32
  }
  func.func @transform_5(%arg0: i32) -> (i32, i32) {
    %c0_i32 = arith.constant 0 : i32
    %c0_i32_0 = arith.constant 0 : i32
    %c0_i32_1 = arith.constant 0 : i32
    return %c0_i32, %c0_i32_0 : i32, i32
  }
  func.func @transform_6(%arg0: i32) -> (i32, i32) {
    %c0_i32 = arith.constant 0 : i32
    %c0_i32_0 = arith.constant 0 : i32
    %c0_i32_1 = arith.constant 0 : i32
    return %c0_i32, %c0_i32_0 : i32, i32
  }
  func.func @transform_7(%arg0: i32) -> (i32, i32, i32) {
    %c0_i32 = arith.constant 0 : i32
    %c0_i32_0 = arith.constant 0 : i32
    %c0_i32_1 = arith.constant 0 : i32
    return %arg0, %c0_i32, %c0_i32_0 : i32, i32, i32
  }
  func.func @transform_8(%arg0: i32) -> (i32, i32, i32) {
    %c0_i32 = arith.constant 0 : i32
    %c0_i32_0 = arith.constant 0 : i32
    %c0_i32_1 = arith.constant 0 : i32
    return %arg0, %c0_i32, %c0_i32_0 : i32, i32, i32
  }
}

module attributes {stable_mosaic.version = 11 : i64} {
  func.func @_conv_kernel(%arg0: i32, %arg1: memref<1x24x16xf32, #tpu.memory_space<vmem>>, %arg2: memref<8x16x128xbf16, #tpu.memory_space<vmem>>, %arg3: memref<1x17x128xf32, #tpu.memory_space<vmem>>) attributes {dimension_semantics = [#tpu.dimension_semantics<parallel>], iteration_bounds = array<i64: 2>, scalar_prefetch = 0 : i64, scratch_operands = 0 : i64, tpu.core_type = #tpu.core_type<tc>, window_params = [{transform_indices = @transform_0, window_bounds = array<i64: 1, 24, 16>}, {pipeline_mode = #tpu.pipeline_mode<synchronous>, transform_indices = @transform_1, window_bounds = array<i64: 8, 16, 128>}, {transform_indices = @transform_2, window_bounds = array<i64: 1, 17, 128>}]} {
    %c0 = arith.constant 0 : index
    %c0_0 = arith.constant 0 : index
    %c0_1 = arith.constant 0 : index
    %0 = vector.load %arg1[%c0, %c0_0, %c0_1] : memref<1x24x16xf32, #tpu.memory_space<vmem>>, vector<1x24x16xf32>
    %1 = vector.shape_cast %0 : vector<1x24x16xf32> to vector<24x16xf32>
    %2 = arith.truncf %1 : vector<24x16xf32> to vector<24x16xbf16>
    %cst = arith.constant 0.000000e+00 : f32
    %3 = vector.broadcast %cst : f32 to vector<17x128xf32>
    %4 = vector.extract_strided_slice %2 {offsets = [0, 0], sizes = [17, 16], strides = [1, 1]} : vector<24x16xbf16> to vector<17x16xbf16>
    %c0_2 = arith.constant 0 : index
    %c0_3 = arith.constant 0 : index
    %c0_4 = arith.constant 0 : index
    %5 = vector.load %arg2[%c0_2, %c0_3, %c0_4] : memref<8x16x128xbf16, #tpu.memory_space<vmem>>, vector<1x16x128xbf16>
    %6 = vector.shape_cast %5 : vector<1x16x128xbf16> to vector<16x128xbf16>
    %cst_5 = arith.constant dense<0.000000e+00> : vector<17x128xf32>
    %7 = tpu.matmul %4, %6, %cst_5 {dimension_numbers = #tpu.dot_dimension_numbers<[1], [0], [0], [1], [0, 0, 1, 1], [], []>} : vector<17x16xbf16>, vector<16x128xbf16>, vector<17x128xf32> -> vector<17x128xf32>
    %8 = arith.addf %3, %7 : vector<17x128xf32>
    %9 = vector.extract_strided_slice %2 {offsets = [1, 0], sizes = [17, 16], strides = [1, 1]} : vector<24x16xbf16> to vector<17x16xbf16>
    %c1 = arith.constant 1 : index
    %c0_6 = arith.constant 0 : index
    %c0_7 = arith.constant 0 : index
    %10 = vector.load %arg2[%c1, %c0_6, %c0_7] : memref<8x16x128xbf16, #tpu.memory_space<vmem>>, vector<1x16x128xbf16>
    %11 = vector.shape_cast %10 : vector<1x16x128xbf16> to vector<16x128xbf16>
    %cst_8 = arith.constant dense<0.000000e+00> : vector<17x128xf32>
    %12 = tpu.matmul %9, %11, %cst_8 {dimension_numbers = #tpu.dot_dimension_numbers<[1], [0], [0], [1], [0, 0, 1, 1], [], []>} : vector<17x16xbf16>, vector<16x128xbf16>, vector<17x128xf32> -> vector<17x128xf32>
    %13 = arith.addf %8, %12 : vector<17x128xf32>
    %14 = vector.extract_strided_slice %2 {offsets = [2, 0], sizes = [17, 16], strides = [1, 1]} : vector<24x16xbf16> to vector<17x16xbf16>
    %c2 = arith.constant 2 : index
    %c0_9 = arith.constant 0 : index
    %c0_10 = arith.constant 0 : index
    %15 = vector.load %arg2[%c2, %c0_9, %c0_10] : memref<8x16x128xbf16, #tpu.memory_space<vmem>>, vector<1x16x128xbf16>
    %16 = vector.shape_cast %15 : vector<1x16x128xbf16> to vector<16x128xbf16>
    %cst_11 = arith.constant dense<0.000000e+00> : vector<17x128xf32>
    %17 = tpu.matmul %14, %16, %cst_11 {dimension_numbers = #tpu.dot_dimension_numbers<[1], [0], [0], [1], [0, 0, 1, 1], [], []>} : vector<17x16xbf16>, vector<16x128xbf16>, vector<17x128xf32> -> vector<17x128xf32>
    %18 = arith.addf %13, %17 : vector<17x128xf32>
    %19 = vector.extract_strided_slice %2 {offsets = [3, 0], sizes = [17, 16], strides = [1, 1]} : vector<24x16xbf16> to vector<17x16xbf16>
    %c3 = arith.constant 3 : index
    %c0_12 = arith.constant 0 : index
    %c0_13 = arith.constant 0 : index
    %20 = vector.load %arg2[%c3, %c0_12, %c0_13] : memref<8x16x128xbf16, #tpu.memory_space<vmem>>, vector<1x16x128xbf16>
    %21 = vector.shape_cast %20 : vector<1x16x128xbf16> to vector<16x128xbf16>
    %cst_14 = arith.constant dense<0.000000e+00> : vector<17x128xf32>
    %22 = tpu.matmul %19, %21, %cst_14 {dimension_numbers = #tpu.dot_dimension_numbers<[1], [0], [0], [1], [0, 0, 1, 1], [], []>} : vector<17x16xbf16>, vector<16x128xbf16>, vector<17x128xf32> -> vector<17x128xf32>
    %23 = arith.addf %18, %22 : vector<17x128xf32>
    %24 = vector.extract_strided_slice %2 {offsets = [4, 0], sizes = [17, 16], strides = [1, 1]} : vector<24x16xbf16> to vector<17x16xbf16>
    %c4 = arith.constant 4 : index
    %c0_15 = arith.constant 0 : index
    %c0_16 = arith.constant 0 : index
    %25 = vector.load %arg2[%c4, %c0_15, %c0_16] : memref<8x16x128xbf16, #tpu.memory_space<vmem>>, vector<1x16x128xbf16>
    %26 = vector.shape_cast %25 : vector<1x16x128xbf16> to vector<16x128xbf16>
    %cst_17 = arith.constant dense<0.000000e+00> : vector<17x128xf32>
    %27 = tpu.matmul %24, %26, %cst_17 {dimension_numbers = #tpu.dot_dimension_numbers<[1], [0], [0], [1], [0, 0, 1, 1], [], []>} : vector<17x16xbf16>, vector<16x128xbf16>, vector<17x128xf32> -> vector<17x128xf32>
    %28 = arith.addf %23, %27 : vector<17x128xf32>
    %29 = vector.extract_strided_slice %2 {offsets = [5, 0], sizes = [17, 16], strides = [1, 1]} : vector<24x16xbf16> to vector<17x16xbf16>
    %c5 = arith.constant 5 : index
    %c0_18 = arith.constant 0 : index
    %c0_19 = arith.constant 0 : index
    %30 = vector.load %arg2[%c5, %c0_18, %c0_19] : memref<8x16x128xbf16, #tpu.memory_space<vmem>>, vector<1x16x128xbf16>
    %31 = vector.shape_cast %30 : vector<1x16x128xbf16> to vector<16x128xbf16>
    %cst_20 = arith.constant dense<0.000000e+00> : vector<17x128xf32>
    %32 = tpu.matmul %29, %31, %cst_20 {dimension_numbers = #tpu.dot_dimension_numbers<[1], [0], [0], [1], [0, 0, 1, 1], [], []>} : vector<17x16xbf16>, vector<16x128xbf16>, vector<17x128xf32> -> vector<17x128xf32>
    %33 = arith.addf %28, %32 : vector<17x128xf32>
    %34 = vector.extract_strided_slice %2 {offsets = [6, 0], sizes = [17, 16], strides = [1, 1]} : vector<24x16xbf16> to vector<17x16xbf16>
    %c6 = arith.constant 6 : index
    %c0_21 = arith.constant 0 : index
    %c0_22 = arith.constant 0 : index
    %35 = vector.load %arg2[%c6, %c0_21, %c0_22] : memref<8x16x128xbf16, #tpu.memory_space<vmem>>, vector<1x16x128xbf16>
    %36 = vector.shape_cast %35 : vector<1x16x128xbf16> to vector<16x128xbf16>
    %cst_23 = arith.constant dense<0.000000e+00> : vector<17x128xf32>
    %37 = tpu.matmul %34, %36, %cst_23 {dimension_numbers = #tpu.dot_dimension_numbers<[1], [0], [0], [1], [0, 0, 1, 1], [], []>} : vector<17x16xbf16>, vector<16x128xbf16>, vector<17x128xf32> -> vector<17x128xf32>
    %38 = arith.addf %33, %37 : vector<17x128xf32>
    %39 = vector.extract_strided_slice %2 {offsets = [7, 0], sizes = [17, 16], strides = [1, 1]} : vector<24x16xbf16> to vector<17x16xbf16>
    %c7 = arith.constant 7 : index
    %c0_24 = arith.constant 0 : index
    %c0_25 = arith.constant 0 : index
    %40 = vector.load %arg2[%c7, %c0_24, %c0_25] : memref<8x16x128xbf16, #tpu.memory_space<vmem>>, vector<1x16x128xbf16>
    %41 = vector.shape_cast %40 : vector<1x16x128xbf16> to vector<16x128xbf16>
    %cst_26 = arith.constant dense<0.000000e+00> : vector<17x128xf32>
    %42 = tpu.matmul %39, %41, %cst_26 {dimension_numbers = #tpu.dot_dimension_numbers<[1], [0], [0], [1], [0, 0, 1, 1], [], []>} : vector<17x16xbf16>, vector<16x128xbf16>, vector<17x128xf32> -> vector<17x128xf32>
    %43 = arith.addf %38, %42 : vector<17x128xf32>
    %cst_27 = arith.constant 0.000000e+00 : f32
    %44 = vector.broadcast %cst_27 : f32 to vector<17x128xf32>
    %45 = arith.maximumf %43, %44 : vector<17x128xf32>
    %c0_28 = arith.constant 0 : index
    %c0_29 = arith.constant 0 : index
    %c0_30 = arith.constant 0 : index
    %46 = vector.load %arg3[%c0_28, %c0_29, %c0_30] : memref<1x17x128xf32, #tpu.memory_space<vmem>>, vector<1x17x128xf32>
    %47 = vector.shape_cast %46 : vector<1x17x128xf32> to vector<17x128xf32>
    %48 = vector.shape_cast %45 : vector<17x128xf32> to vector<1x17x128xf32>
    tpu.vector_store %arg3[%c0_28, %c0_29, %c0_30], %48 {strides = array<i32>} : memref<1x17x128xf32, #tpu.memory_space<vmem>>, vector<1x17x128xf32>,
    return
  }
  func.func @transform_0(%arg0: i32) -> (i32, i32, i32) {
    %c0_i32 = arith.constant 0 : i32
    %c0_i32_0 = arith.constant 0 : i32
    %c0_i32_1 = arith.constant 0 : i32
    return %arg0, %c0_i32, %c0_i32_0 : i32, i32, i32
  }
  func.func @transform_1(%arg0: i32) -> (i32, i32, i32) {
    %c0_i32 = arith.constant 0 : i32
    %c0_i32_0 = arith.constant 0 : i32
    %c0_i32_1 = arith.constant 0 : i32
    %c0_i32_2 = arith.constant 0 : i32
    return %c0_i32, %c0_i32_0, %c0_i32_1 : i32, i32, i32
  }
  func.func @transform_2(%arg0: i32) -> (i32, i32, i32) {
    %c0_i32 = arith.constant 0 : i32
    %c0_i32_0 = arith.constant 0 : i32
    %c0_i32_1 = arith.constant 0 : i32
    return %arg0, %c0_i32, %c0_i32_0 : i32, i32, i32
  }
}

module attributes {stable_mosaic.version = 11 : i64} {
  func.func @_conv_kernel(%arg0: i32, %arg1: memref<1x18x128xf32, #tpu.memory_space<vmem>>, %arg2: memref<3x128x32xbf16, #tpu.memory_space<vmem>>, %arg3: memref<1x16x32xf32, #tpu.memory_space<vmem>>) attributes {dimension_semantics = [#tpu.dimension_semantics<parallel>], iteration_bounds = array<i64: 2>, scalar_prefetch = 0 : i64, scratch_operands = 0 : i64, tpu.core_type = #tpu.core_type<tc>, window_params = [{transform_indices = @transform_0, window_bounds = array<i64: 1, 18, 128>}, {pipeline_mode = #tpu.pipeline_mode<synchronous>, transform_indices = @transform_1, window_bounds = array<i64: 3, 128, 32>}, {transform_indices = @transform_2, window_bounds = array<i64: 1, 16, 32>}]} {
    %c0 = arith.constant 0 : index
    %c0_0 = arith.constant 0 : index
    %c0_1 = arith.constant 0 : index
    %0 = vector.load %arg1[%c0, %c0_0, %c0_1] : memref<1x18x128xf32, #tpu.memory_space<vmem>>, vector<1x18x128xf32>
    %1 = vector.shape_cast %0 : vector<1x18x128xf32> to vector<18x128xf32>
    %2 = arith.truncf %1 : vector<18x128xf32> to vector<18x128xbf16>
    %cst = arith.constant 0.000000e+00 : f32
    %3 = vector.broadcast %cst : f32 to vector<16x32xf32>
    %4 = vector.extract_strided_slice %2 {offsets = [0, 0], sizes = [16, 128], strides = [1, 1]} : vector<18x128xbf16> to vector<16x128xbf16>
    %c0_2 = arith.constant 0 : index
    %c0_3 = arith.constant 0 : index
    %c0_4 = arith.constant 0 : index
    %5 = vector.load %arg2[%c0_2, %c0_3, %c0_4] : memref<3x128x32xbf16, #tpu.memory_space<vmem>>, vector<1x128x32xbf16>
    %6 = vector.shape_cast %5 : vector<1x128x32xbf16> to vector<128x32xbf16>
    %cst_5 = arith.constant dense<0.000000e+00> : vector<16x32xf32>
    %7 = tpu.matmul %4, %6, %cst_5 {dimension_numbers = #tpu.dot_dimension_numbers<[1], [0], [0], [1], [0, 0, 1, 1], [], []>} : vector<16x128xbf16>, vector<128x32xbf16>, vector<16x32xf32> -> vector<16x32xf32>
    %8 = arith.addf %3, %7 : vector<16x32xf32>
    %9 = vector.extract_strided_slice %2 {offsets = [1, 0], sizes = [16, 128], strides = [1, 1]} : vector<18x128xbf16> to vector<16x128xbf16>
    %c1 = arith.constant 1 : index
    %c0_6 = arith.constant 0 : index
    %c0_7 = arith.constant 0 : index
    %10 = vector.load %arg2[%c1, %c0_6, %c0_7] : memref<3x128x32xbf16, #tpu.memory_space<vmem>>, vector<1x128x32xbf16>
    %11 = vector.shape_cast %10 : vector<1x128x32xbf16> to vector<128x32xbf16>
    %cst_8 = arith.constant dense<0.000000e+00> : vector<16x32xf32>
    %12 = tpu.matmul %9, %11, %cst_8 {dimension_numbers = #tpu.dot_dimension_numbers<[1], [0], [0], [1], [0, 0, 1, 1], [], []>} : vector<16x128xbf16>, vector<128x32xbf16>, vector<16x32xf32> -> vector<16x32xf32>
    %13 = arith.addf %8, %12 : vector<16x32xf32>
    %14 = vector.extract_strided_slice %2 {offsets = [2, 0], sizes = [16, 128], strides = [1, 1]} : vector<18x128xbf16> to vector<16x128xbf16>
    %c2 = arith.constant 2 : index
    %c0_9 = arith.constant 0 : index
    %c0_10 = arith.constant 0 : index
    %15 = vector.load %arg2[%c2, %c0_9, %c0_10] : memref<3x128x32xbf16, #tpu.memory_space<vmem>>, vector<1x128x32xbf16>
    %16 = vector.shape_cast %15 : vector<1x128x32xbf16> to vector<128x32xbf16>
    %cst_11 = arith.constant dense<0.000000e+00> : vector<16x32xf32>
    %17 = tpu.matmul %14, %16, %cst_11 {dimension_numbers = #tpu.dot_dimension_numbers<[1], [0], [0], [1], [0, 0, 1, 1], [], []>} : vector<16x128xbf16>, vector<128x32xbf16>, vector<16x32xf32> -> vector<16x32xf32>
    %18 = arith.addf %13, %17 : vector<16x32xf32>
    %cst_12 = arith.constant 0.000000e+00 : f32
    %19 = vector.broadcast %cst_12 : f32 to vector<16x32xf32>
    %20 = arith.maximumf %18, %19 : vector<16x32xf32>
    %c0_13 = arith.constant 0 : index
    %c0_14 = arith.constant 0 : index
    %c0_15 = arith.constant 0 : index
    %21 = vector.load %arg3[%c0_13, %c0_14, %c0_15] : memref<1x16x32xf32, #tpu.memory_space<vmem>>, vector<1x16x32xf32>
    %22 = vector.shape_cast %21 : vector<1x16x32xf32> to vector<16x32xf32>
    %23 = vector.shape_cast %20 : vector<16x32xf32> to vector<1x16x32xf32>
    tpu.vector_store %arg3[%c0_13, %c0_14, %c0_15], %23 {strides = array<i32>} : memref<1x16x32xf32, #tpu.memory_space<vmem>>, vector<1x16x32xf32>,
    return
  }
  func.func @transform_0(%arg0: i32) -> (i32, i32, i32) {
    %c0_i32 = arith.constant 0 : i32
    %c0_i32_0 = arith.constant 0 : i32
    %c0_i32_1 = arith.constant 0 : i32
    return %arg0, %c0_i32, %c0_i32_0 : i32, i32, i32
  }
  func.func @transform_1(%arg0: i32) -> (i32, i32, i32) {
    %c0_i32 = arith.constant 0 : i32
    %c0_i32_0 = arith.constant 0 : i32
    %c0_i32_1 = arith.constant 0 : i32
    %c0_i32_2 = arith.constant 0 : i32
    return %c0_i32, %c0_i32_0, %c0_i32_1 : i32, i32, i32
  }
  func.func @transform_2(%arg0: i32) -> (i32, i32, i32) {
    %c0_i32 = arith.constant 0 : i32
    %c0_i32_0 = arith.constant 0 : i32
    %c0_i32_1 = arith.constant 0 : i32
    return %arg0, %c0_i32, %c0_i32_0 : i32, i32, i32
  }
}

module attributes {stable_mosaic.version = 11 : i64} {
  func.func @_conv_kernel(%arg0: i32, %arg1: memref<1x18x32xf32, #tpu.memory_space<vmem>>, %arg2: memref<3x32x16xbf16, #tpu.memory_space<vmem>>, %arg3: memref<1x16x16xf32, #tpu.memory_space<vmem>>) attributes {dimension_semantics = [#tpu.dimension_semantics<parallel>], iteration_bounds = array<i64: 2>, scalar_prefetch = 0 : i64, scratch_operands = 0 : i64, tpu.core_type = #tpu.core_type<tc>, window_params = [{transform_indices = @transform_0, window_bounds = array<i64: 1, 18, 32>}, {pipeline_mode = #tpu.pipeline_mode<synchronous>, transform_indices = @transform_1, window_bounds = array<i64: 3, 32, 16>}, {transform_indices = @transform_2, window_bounds = array<i64: 1, 16, 16>}]} {
    %c0 = arith.constant 0 : index
    %c0_0 = arith.constant 0 : index
    %c0_1 = arith.constant 0 : index
    %0 = vector.load %arg1[%c0, %c0_0, %c0_1] : memref<1x18x32xf32, #tpu.memory_space<vmem>>, vector<1x18x32xf32>
    %1 = vector.shape_cast %0 : vector<1x18x32xf32> to vector<18x32xf32>
    %2 = arith.truncf %1 : vector<18x32xf32> to vector<18x32xbf16>
    %cst = arith.constant 0.000000e+00 : f32
    %3 = vector.broadcast %cst : f32 to vector<16x16xf32>
    %4 = vector.extract_strided_slice %2 {offsets = [0, 0], sizes = [16, 32], strides = [1, 1]} : vector<18x32xbf16> to vector<16x32xbf16>
    %c0_2 = arith.constant 0 : index
    %c0_3 = arith.constant 0 : index
    %c0_4 = arith.constant 0 : index
    %5 = vector.load %arg2[%c0_2, %c0_3, %c0_4] : memref<3x32x16xbf16, #tpu.memory_space<vmem>>, vector<1x32x16xbf16>
    %6 = vector.shape_cast %5 : vector<1x32x16xbf16> to vector<32x16xbf16>
    %cst_5 = arith.constant dense<0.000000e+00> : vector<16x16xf32>
    %7 = tpu.matmul %4, %6, %cst_5 {dimension_numbers = #tpu.dot_dimension_numbers<[1], [0], [0], [1], [0, 0, 1, 1], [], []>} : vector<16x32xbf16>, vector<32x16xbf16>, vector<16x16xf32> -> vector<16x16xf32>
    %8 = arith.addf %3, %7 : vector<16x16xf32>
    %9 = vector.extract_strided_slice %2 {offsets = [1, 0], sizes = [16, 32], strides = [1, 1]} : vector<18x32xbf16> to vector<16x32xbf16>
    %c1 = arith.constant 1 : index
    %c0_6 = arith.constant 0 : index
    %c0_7 = arith.constant 0 : index
    %10 = vector.load %arg2[%c1, %c0_6, %c0_7] : memref<3x32x16xbf16, #tpu.memory_space<vmem>>, vector<1x32x16xbf16>
    %11 = vector.shape_cast %10 : vector<1x32x16xbf16> to vector<32x16xbf16>
    %cst_8 = arith.constant dense<0.000000e+00> : vector<16x16xf32>
    %12 = tpu.matmul %9, %11, %cst_8 {dimension_numbers = #tpu.dot_dimension_numbers<[1], [0], [0], [1], [0, 0, 1, 1], [], []>} : vector<16x32xbf16>, vector<32x16xbf16>, vector<16x16xf32> -> vector<16x16xf32>
    %13 = arith.addf %8, %12 : vector<16x16xf32>
    %14 = vector.extract_strided_slice %2 {offsets = [2, 0], sizes = [16, 32], strides = [1, 1]} : vector<18x32xbf16> to vector<16x32xbf16>
    %c2 = arith.constant 2 : index
    %c0_9 = arith.constant 0 : index
    %c0_10 = arith.constant 0 : index
    %15 = vector.load %arg2[%c2, %c0_9, %c0_10] : memref<3x32x16xbf16, #tpu.memory_space<vmem>>, vector<1x32x16xbf16>
    %16 = vector.shape_cast %15 : vector<1x32x16xbf16> to vector<32x16xbf16>
    %cst_11 = arith.constant dense<0.000000e+00> : vector<16x16xf32>
    %17 = tpu.matmul %14, %16, %cst_11 {dimension_numbers = #tpu.dot_dimension_numbers<[1], [0], [0], [1], [0, 0, 1, 1], [], []>} : vector<16x32xbf16>, vector<32x16xbf16>, vector<16x16xf32> -> vector<16x16xf32>
    %18 = arith.addf %13, %17 : vector<16x16xf32>
    %c0_12 = arith.constant 0 : index
    %c0_13 = arith.constant 0 : index
    %c0_14 = arith.constant 0 : index
    %19 = vector.load %arg3[%c0_12, %c0_13, %c0_14] : memref<1x16x16xf32, #tpu.memory_space<vmem>>, vector<1x16x16xf32>
    %20 = vector.shape_cast %19 : vector<1x16x16xf32> to vector<16x16xf32>
    %21 = vector.shape_cast %18 : vector<16x16xf32> to vector<1x16x16xf32>
    tpu.vector_store %arg3[%c0_12, %c0_13, %c0_14], %21 {strides = array<i32>} : memref<1x16x16xf32, #tpu.memory_space<vmem>>, vector<1x16x16xf32>,
    return
  }
  func.func @transform_0(%arg0: i32) -> (i32, i32, i32) {
    %c0_i32 = arith.constant 0 : i32
    %c0_i32_0 = arith.constant 0 : i32
    %c0_i32_1 = arith.constant 0 : i32
    return %arg0, %c0_i32, %c0_i32_0 : i32, i32, i32
  }
  func.func @transform_1(%arg0: i32) -> (i32, i32, i32) {
    %c0_i32 = arith.constant 0 : i32
    %c0_i32_0 = arith.constant 0 : i32
    %c0_i32_1 = arith.constant 0 : i32
    %c0_i32_2 = arith.constant 0 : i32
    return %c0_i32, %c0_i32_0, %c0_i32_1 : i32, i32, i32
  }
  func.func @transform_2(%arg0: i32) -> (i32, i32, i32) {
    %c0_i32 = arith.constant 0 : i32
    %c0_i32_0 = arith.constant 0 : i32
    %c0_i32_1 = arith.constant 0 : i32
    return %arg0, %c0_i32, %c0_i32_0 : i32, i32, i32
  }
}

module attributes {stable_mosaic.version = 11 : i64} {
  func.func @_highway_stack_kernel(%arg0: memref<32x16xf32, #tpu.memory_space<vmem>>, %arg1: memref<4x16x16xbf16, #tpu.memory_space<vmem>>, %arg2: memref<4x1x16xf32, #tpu.memory_space<vmem>>, %arg3: memref<4x16x16xbf16, #tpu.memory_space<vmem>>, %arg4: memref<4x1x16xf32, #tpu.memory_space<vmem>>, %arg5: memref<32x16xf32, #tpu.memory_space<vmem>>) attributes {dimension_semantics = [], scalar_prefetch = 0 : i64, scratch_operands = 0 : i64, tpu.core_type = #tpu.core_type<tc>} {
    %c0 = arith.constant 0 : index
    %c0_0 = arith.constant 0 : index
    %0 = vector.load %arg0[%c0, %c0_0] : memref<32x16xf32, #tpu.memory_space<vmem>>, vector<32x16xf32>
    %1 = arith.truncf %0 : vector<32x16xf32> to vector<32x16xbf16>
    %c0_1 = arith.constant 0 : index
    %c0_2 = arith.constant 0 : index
    %c0_3 = arith.constant 0 : index
    %2 = vector.load %arg1[%c0_1, %c0_2, %c0_3] : memref<4x16x16xbf16, #tpu.memory_space<vmem>>, vector<1x16x16xbf16>
    %3 = vector.shape_cast %2 : vector<1x16x16xbf16> to vector<16x16xbf16>
    %cst = arith.constant dense<0.000000e+00> : vector<32x16xf32>
    %4 = tpu.matmul %1, %3, %cst {dimension_numbers = #tpu.dot_dimension_numbers<[1], [0], [0], [1], [0, 0, 1, 1], [], []>} : vector<32x16xbf16>, vector<16x16xbf16>, vector<32x16xf32> -> vector<32x16xf32>
    %c0_4 = arith.constant 0 : index
    %c0_5 = arith.constant 0 : index
    %c0_6 = arith.constant 0 : index
    %5 = vector.load %arg2[%c0_4, %c0_5, %c0_6] : memref<4x1x16xf32, #tpu.memory_space<vmem>>, vector<1x1x16xf32>
    %6 = vector.shape_cast %5 : vector<1x1x16xf32> to vector<1x16xf32>
    %7 = vector.broadcast %6 : vector<1x16xf32> to vector<32x16xf32>
    %8 = arith.addf %4, %7 : vector<32x16xf32>
    %cst_7 = arith.constant 0.000000e+00 : f32
    %9 = vector.broadcast %cst_7 : f32 to vector<32x16xf32>
    %10 = arith.maximumf %8, %9 : vector<32x16xf32>
    %c0_8 = arith.constant 0 : index
    %c0_9 = arith.constant 0 : index
    %c0_10 = arith.constant 0 : index
    %11 = vector.load %arg3[%c0_8, %c0_9, %c0_10] : memref<4x16x16xbf16, #tpu.memory_space<vmem>>, vector<1x16x16xbf16>
    %12 = vector.shape_cast %11 : vector<1x16x16xbf16> to vector<16x16xbf16>
    %cst_11 = arith.constant dense<0.000000e+00> : vector<32x16xf32>
    %13 = tpu.matmul %1, %12, %cst_11 {dimension_numbers = #tpu.dot_dimension_numbers<[1], [0], [0], [1], [0, 0, 1, 1], [], []>} : vector<32x16xbf16>, vector<16x16xbf16>, vector<32x16xf32> -> vector<32x16xf32>
    %c0_12 = arith.constant 0 : index
    %c0_13 = arith.constant 0 : index
    %c0_14 = arith.constant 0 : index
    %14 = vector.load %arg4[%c0_12, %c0_13, %c0_14] : memref<4x1x16xf32, #tpu.memory_space<vmem>>, vector<1x1x16xf32>
    %15 = vector.shape_cast %14 : vector<1x1x16xf32> to vector<1x16xf32>
    %16 = vector.broadcast %15 : vector<1x16xf32> to vector<32x16xf32>
    %17 = arith.addf %13, %16 : vector<32x16xf32>
    %18 = arith.negf %17 : vector<32x16xf32>
    %19 = math.exp %18 : vector<32x16xf32>
    %cst_15 = arith.constant 1.000000e+00 : f32
    %20 = vector.broadcast %cst_15 : f32 to vector<32x16xf32>
    %21 = arith.addf %20, %19 : vector<32x16xf32>
    %22 = arith.divf %20, %21 : vector<32x16xf32>
    %23 = arith.mulf %10, %22 : vector<32x16xf32>
    %cst_16 = arith.constant 1.000000e+00 : f32
    %24 = vector.broadcast %cst_16 : f32 to vector<32x16xf32>
    %25 = arith.subf %24, %22 : vector<32x16xf32>
    %26 = arith.mulf %0, %25 : vector<32x16xf32>
    %27 = arith.addf %23, %26 : vector<32x16xf32>
    %28 = arith.truncf %27 : vector<32x16xf32> to vector<32x16xbf16>
    %c1 = arith.constant 1 : index
    %c0_17 = arith.constant 0 : index
    %c0_18 = arith.constant 0 : index
    %29 = vector.load %arg1[%c1, %c0_17, %c0_18] : memref<4x16x16xbf16, #tpu.memory_space<vmem>>, vector<1x16x16xbf16>
    %30 = vector.shape_cast %29 : vector<1x16x16xbf16> to vector<16x16xbf16>
    %cst_19 = arith.constant dense<0.000000e+00> : vector<32x16xf32>
    %31 = tpu.matmul %28, %30, %cst_19 {dimension_numbers = #tpu.dot_dimension_numbers<[1], [0], [0], [1], [0, 0, 1, 1], [], []>} : vector<32x16xbf16>, vector<16x16xbf16>, vector<32x16xf32> -> vector<32x16xf32>
    %c1_20 = arith.constant 1 : index
    %c0_21 = arith.constant 0 : index
    %c0_22 = arith.constant 0 : index
    %32 = vector.load %arg2[%c1_20, %c0_21, %c0_22] : memref<4x1x16xf32, #tpu.memory_space<vmem>>, vector<1x1x16xf32>
    %33 = vector.shape_cast %32 : vector<1x1x16xf32> to vector<1x16xf32>
    %34 = vector.broadcast %33 : vector<1x16xf32> to vector<32x16xf32>
    %35 = arith.addf %31, %34 : vector<32x16xf32>
    %cst_23 = arith.constant 0.000000e+00 : f32
    %36 = vector.broadcast %cst_23 : f32 to vector<32x16xf32>
    %37 = arith.maximumf %35, %36 : vector<32x16xf32>
    %c1_24 = arith.constant 1 : index
    %c0_25 = arith.constant 0 : index
    %c0_26 = arith.constant 0 : index
    %38 = vector.load %arg3[%c1_24, %c0_25, %c0_26] : memref<4x16x16xbf16, #tpu.memory_space<vmem>>, vector<1x16x16xbf16>
    %39 = vector.shape_cast %38 : vector<1x16x16xbf16> to vector<16x16xbf16>
    %cst_27 = arith.constant dense<0.000000e+00> : vector<32x16xf32>
    %40 = tpu.matmul %28, %39, %cst_27 {dimension_numbers = #tpu.dot_dimension_numbers<[1], [0], [0], [1], [0, 0, 1, 1], [], []>} : vector<32x16xbf16>, vector<16x16xbf16>, vector<32x16xf32> -> vector<32x16xf32>
    %c1_28 = arith.constant 1 : index
    %c0_29 = arith.constant 0 : index
    %c0_30 = arith.constant 0 : index
    %41 = vector.load %arg4[%c1_28, %c0_29, %c0_30] : memref<4x1x16xf32, #tpu.memory_space<vmem>>, vector<1x1x16xf32>
    %42 = vector.shape_cast %41 : vector<1x1x16xf32> to vector<1x16xf32>
    %43 = vector.broadcast %42 : vector<1x16xf32> to vector<32x16xf32>
    %44 = arith.addf %40, %43 : vector<32x16xf32>
    %45 = arith.negf %44 : vector<32x16xf32>
    %46 = math.exp %45 : vector<32x16xf32>
    %cst_31 = arith.constant 1.000000e+00 : f32
    %47 = vector.broadcast %cst_31 : f32 to vector<32x16xf32>
    %48 = arith.addf %47, %46 : vector<32x16xf32>
    %49 = arith.divf %47, %48 : vector<32x16xf32>
    %50 = arith.mulf %37, %49 : vector<32x16xf32>
    %cst_32 = arith.constant 1.000000e+00 : f32
    %51 = vector.broadcast %cst_32 : f32 to vector<32x16xf32>
    %52 = arith.subf %51, %49 : vector<32x16xf32>
    %53 = arith.mulf %27, %52 : vector<32x16xf32>
    %54 = arith.addf %50, %53 : vector<32x16xf32>
    %55 = arith.truncf %54 : vector<32x16xf32> to vector<32x16xbf16>
    %c2 = arith.constant 2 : index
    %c0_33 = arith.constant 0 : index
    %c0_34 = arith.constant 0 : index
    %56 = vector.load %arg1[%c2, %c0_33, %c0_34] : memref<4x16x16xbf16, #tpu.memory_space<vmem>>, vector<1x16x16xbf16>
    %57 = vector.shape_cast %56 : vector<1x16x16xbf16> to vector<16x16xbf16>
    %cst_35 = arith.constant dense<0.000000e+00> : vector<32x16xf32>
    %58 = tpu.matmul %55, %57, %cst_35 {dimension_numbers = #tpu.dot_dimension_numbers<[1], [0], [0], [1], [0, 0, 1, 1], [], []>} : vector<32x16xbf16>, vector<16x16xbf16>, vector<32x16xf32> -> vector<32x16xf32>
    %c2_36 = arith.constant 2 : index
    %c0_37 = arith.constant 0 : index
    %c0_38 = arith.constant 0 : index
    %59 = vector.load %arg2[%c2_36, %c0_37, %c0_38] : memref<4x1x16xf32, #tpu.memory_space<vmem>>, vector<1x1x16xf32>
    %60 = vector.shape_cast %59 : vector<1x1x16xf32> to vector<1x16xf32>
    %61 = vector.broadcast %60 : vector<1x16xf32> to vector<32x16xf32>
    %62 = arith.addf %58, %61 : vector<32x16xf32>
    %cst_39 = arith.constant 0.000000e+00 : f32
    %63 = vector.broadcast %cst_39 : f32 to vector<32x16xf32>
    %64 = arith.maximumf %62, %63 : vector<32x16xf32>
    %c2_40 = arith.constant 2 : index
    %c0_41 = arith.constant 0 : index
    %c0_42 = arith.constant 0 : index
    %65 = vector.load %arg3[%c2_40, %c0_41, %c0_42] : memref<4x16x16xbf16, #tpu.memory_space<vmem>>, vector<1x16x16xbf16>
    %66 = vector.shape_cast %65 : vector<1x16x16xbf16> to vector<16x16xbf16>
    %cst_43 = arith.constant dense<0.000000e+00> : vector<32x16xf32>
    %67 = tpu.matmul %55, %66, %cst_43 {dimension_numbers = #tpu.dot_dimension_numbers<[1], [0], [0], [1], [0, 0, 1, 1], [], []>} : vector<32x16xbf16>, vector<16x16xbf16>, vector<32x16xf32> -> vector<32x16xf32>
    %c2_44 = arith.constant 2 : index
    %c0_45 = arith.constant 0 : index
    %c0_46 = arith.constant 0 : index
    %68 = vector.load %arg4[%c2_44, %c0_45, %c0_46] : memref<4x1x16xf32, #tpu.memory_space<vmem>>, vector<1x1x16xf32>
    %69 = vector.shape_cast %68 : vector<1x1x16xf32> to vector<1x16xf32>
    %70 = vector.broadcast %69 : vector<1x16xf32> to vector<32x16xf32>
    %71 = arith.addf %67, %70 : vector<32x16xf32>
    %72 = arith.negf %71 : vector<32x16xf32>
    %73 = math.exp %72 : vector<32x16xf32>
    %cst_47 = arith.constant 1.000000e+00 : f32
    %74 = vector.broadcast %cst_47 : f32 to vector<32x16xf32>
    %75 = arith.addf %74, %73 : vector<32x16xf32>
    %76 = arith.divf %74, %75 : vector<32x16xf32>
    %77 = arith.mulf %64, %76 : vector<32x16xf32>
    %cst_48 = arith.constant 1.000000e+00 : f32
    %78 = vector.broadcast %cst_48 : f32 to vector<32x16xf32>
    %79 = arith.subf %78, %76 : vector<32x16xf32>
    %80 = arith.mulf %54, %79 : vector<32x16xf32>
    %81 = arith.addf %77, %80 : vector<32x16xf32>
    %82 = arith.truncf %81 : vector<32x16xf32> to vector<32x16xbf16>
    %c3 = arith.constant 3 : index
    %c0_49 = arith.constant 0 : index
    %c0_50 = arith.constant 0 : index
    %83 = vector.load %arg1[%c3, %c0_49, %c0_50] : memref<4x16x16xbf16, #tpu.memory_space<vmem>>, vector<1x16x16xbf16>
    %84 = vector.shape_cast %83 : vector<1x16x16xbf16> to vector<16x16xbf16>
    %cst_51 = arith.constant dense<0.000000e+00> : vector<32x16xf32>
    %85 = tpu.matmul %82, %84, %cst_51 {dimension_numbers = #tpu.dot_dimension_numbers<[1], [0], [0], [1], [0, 0, 1, 1], [], []>} : vector<32x16xbf16>, vector<16x16xbf16>, vector<32x16xf32> -> vector<32x16xf32>
    %c3_52 = arith.constant 3 : index
    %c0_53 = arith.constant 0 : index
    %c0_54 = arith.constant 0 : index
    %86 = vector.load %arg2[%c3_52, %c0_53, %c0_54] : memref<4x1x16xf32, #tpu.memory_space<vmem>>, vector<1x1x16xf32>
    %87 = vector.shape_cast %86 : vector<1x1x16xf32> to vector<1x16xf32>
    %88 = vector.broadcast %87 : vector<1x16xf32> to vector<32x16xf32>
    %89 = arith.addf %85, %88 : vector<32x16xf32>
    %cst_55 = arith.constant 0.000000e+00 : f32
    %90 = vector.broadcast %cst_55 : f32 to vector<32x16xf32>
    %91 = arith.maximumf %89, %90 : vector<32x16xf32>
    %c3_56 = arith.constant 3 : index
    %c0_57 = arith.constant 0 : index
    %c0_58 = arith.constant 0 : index
    %92 = vector.load %arg3[%c3_56, %c0_57, %c0_58] : memref<4x16x16xbf16, #tpu.memory_space<vmem>>, vector<1x16x16xbf16>
    %93 = vector.shape_cast %92 : vector<1x16x16xbf16> to vector<16x16xbf16>
    %cst_59 = arith.constant dense<0.000000e+00> : vector<32x16xf32>
    %94 = tpu.matmul %82, %93, %cst_59 {dimension_numbers = #tpu.dot_dimension_numbers<[1], [0], [0], [1], [0, 0, 1, 1], [], []>} : vector<32x16xbf16>, vector<16x16xbf16>, vector<32x16xf32> -> vector<32x16xf32>
    %c3_60 = arith.constant 3 : index
    %c0_61 = arith.constant 0 : index
    %c0_62 = arith.constant 0 : index
    %95 = vector.load %arg4[%c3_60, %c0_61, %c0_62] : memref<4x1x16xf32, #tpu.memory_space<vmem>>, vector<1x1x16xf32>
    %96 = vector.shape_cast %95 : vector<1x1x16xf32> to vector<1x16xf32>
    %97 = vector.broadcast %96 : vector<1x16xf32> to vector<32x16xf32>
    %98 = arith.addf %94, %97 : vector<32x16xf32>
    %99 = arith.negf %98 : vector<32x16xf32>
    %100 = math.exp %99 : vector<32x16xf32>
    %cst_63 = arith.constant 1.000000e+00 : f32
    %101 = vector.broadcast %cst_63 : f32 to vector<32x16xf32>
    %102 = arith.addf %101, %100 : vector<32x16xf32>
    %103 = arith.divf %101, %102 : vector<32x16xf32>
    %104 = arith.mulf %91, %103 : vector<32x16xf32>
    %cst_64 = arith.constant 1.000000e+00 : f32
    %105 = vector.broadcast %cst_64 : f32 to vector<32x16xf32>
    %106 = arith.subf %105, %103 : vector<32x16xf32>
    %107 = arith.mulf %81, %106 : vector<32x16xf32>
    %108 = arith.addf %104, %107 : vector<32x16xf32>
    %c0_65 = arith.constant 0 : index
    %c0_66 = arith.constant 0 : index
    %109 = vector.load %arg5[%c0_65, %c0_66] : memref<32x16xf32, #tpu.memory_space<vmem>>, vector<32x16xf32>
    tpu.vector_store %arg5[%c0_65, %c0_66], %108 {strides = array<i32>} : memref<32x16xf32, #tpu.memory_space<vmem>>, vector<32x16xf32>,
    return
  }
}

module attributes {stable_mosaic.version = 11 : i64} {
  func.func @_linear_kernel(%arg0: memref<32x16xbf16, #tpu.memory_space<vmem>>, %arg1: memref<16x48xbf16, #tpu.memory_space<vmem>>, %arg2: memref<1x48xf32, #tpu.memory_space<vmem>>, %arg3: memref<32x48xf32, #tpu.memory_space<vmem>>) attributes {dimension_semantics = [], scalar_prefetch = 0 : i64, scratch_operands = 0 : i64, tpu.core_type = #tpu.core_type<tc>} {
    %c0 = arith.constant 0 : index
    %c0_0 = arith.constant 0 : index
    %0 = vector.load %arg0[%c0, %c0_0] : memref<32x16xbf16, #tpu.memory_space<vmem>>, vector<32x16xbf16>
    %c0_1 = arith.constant 0 : index
    %c0_2 = arith.constant 0 : index
    %1 = vector.load %arg1[%c0_1, %c0_2] : memref<16x48xbf16, #tpu.memory_space<vmem>>, vector<16x48xbf16>
    %cst = arith.constant dense<0.000000e+00> : vector<32x48xf32>
    %2 = tpu.matmul %0, %1, %cst {dimension_numbers = #tpu.dot_dimension_numbers<[1], [0], [0], [1], [0, 0, 1, 1], [], []>} : vector<32x16xbf16>, vector<16x48xbf16>, vector<32x48xf32> -> vector<32x48xf32>
    %c0_3 = arith.constant 0 : index
    %c0_4 = arith.constant 0 : index
    %3 = vector.load %arg2[%c0_3, %c0_4] : memref<1x48xf32, #tpu.memory_space<vmem>>, vector<1x48xf32>
    %4 = vector.broadcast %3 : vector<1x48xf32> to vector<32x48xf32>
    %5 = arith.addf %2, %4 : vector<32x48xf32>
    %c0_5 = arith.constant 0 : index
    %c0_6 = arith.constant 0 : index
    %6 = vector.load %arg3[%c0_5, %c0_6] : memref<32x48xf32, #tpu.memory_space<vmem>>, vector<32x48xf32>
    tpu.vector_store %arg3[%c0_5, %c0_6], %5 {strides = array<i32>} : memref<32x48xf32, #tpu.memory_space<vmem>>, vector<32x48xf32>,
    return
  }
}

module attributes {stable_mosaic.version = 11 : i64} {
  func.func @_gru_kernel(%arg0: memref<16x2x48xf32, #tpu.memory_space<vmem>>, %arg1: memref<16x48xf32, #tpu.memory_space<vmem>>, %arg2: memref<1x48xf32, #tpu.memory_space<vmem>>, %arg3: memref<16x2x16xf32, #tpu.memory_space<vmem>>, %arg4: memref<2x16xf32, #tpu.memory_space<vmem>>) attributes {dimension_semantics = [], scalar_prefetch = 0 : i64, scratch_operands = 1 : i64, tpu.core_type = #tpu.core_type<tc>} {
    %cst = arith.constant 0.000000e+00 : f32
    %0 = vector.broadcast %cst : f32 to vector<2x16xf32>
    %c0 = arith.constant 0 : index
    %c0_0 = arith.constant 0 : index
    %1 = vector.load %arg4[%c0, %c0_0] : memref<2x16xf32, #tpu.memory_space<vmem>>, vector<2x16xf32>
    tpu.vector_store %arg4[%c0, %c0_0], %0 {strides = array<i32>} : memref<2x16xf32, #tpu.memory_space<vmem>>, vector<2x16xf32>,
    %c0_1 = arith.constant 0 : index
    %c0_2 = arith.constant 0 : index
    %2 = vector.load %arg1[%c0_1, %c0_2] : memref<16x48xf32, #tpu.memory_space<vmem>>, vector<16x48xf32>
    %c0_3 = arith.constant 0 : index
    %c0_4 = arith.constant 0 : index
    %3 = vector.load %arg2[%c0_3, %c0_4] : memref<1x48xf32, #tpu.memory_space<vmem>>, vector<1x48xf32>
    %c0_i32 = arith.constant 0 : i32
    %c16_i32 = arith.constant 16 : i32
    %4 = arith.addi %c0_i32, %c16_i32 : i32
    %c1_i32 = arith.constant 1 : i32
    scf.for %arg5 = %c0_i32 to %4 step %c1_i32  : i32 {
      %c1_i32_6 = arith.constant 1 : i32
      %5 = arith.muli %arg5, %c1_i32_6 : i32
      %c0_i32_7 = arith.constant 0 : i32
      %6 = arith.addi %c0_i32_7, %5 : i32
      %c0_8 = arith.constant 0 : index
      %c0_9 = arith.constant 0 : index
      %7 = vector.load %arg4[%c0_8, %c0_9] : memref<2x16xf32, #tpu.memory_space<vmem>>, vector<2x16xf32>
      %cst_10 = arith.constant dense<0.000000e+00> : vector<2x48xf32>
      %8 = tpu.matmul %7, %2, %cst_10 {dimension_numbers = #tpu.dot_dimension_numbers<[1], [0], [0], [1], [0, 0, 1, 1], [], []>} : vector<2x16xf32>, vector<16x48xf32>, vector<2x48xf32> -> vector<2x48xf32>
      %9 = vector.broadcast %3 : vector<1x48xf32> to vector<2x48xf32>
      %10 = arith.addf %8, %9 : vector<2x48xf32>
      %11 = arith.index_cast %6 : i32 to index
      %c0_11 = arith.constant 0 : index
      %c0_12 = arith.constant 0 : index
      %12 = vector.load %arg0[%11, %c0_11, %c0_12] : memref<16x2x48xf32, #tpu.memory_space<vmem>>, vector<1x2x48xf32>
      %13 = vector.shape_cast %12 : vector<1x2x48xf32> to vector<2x48xf32>
      %14 = vector.extract_strided_slice %13 {offsets = [0, 0], sizes = [2, 16], strides = [1, 1]} : vector<2x48xf32> to vector<2x16xf32>
      %15 = vector.extract_strided_slice %10 {offsets = [0, 0], sizes = [2, 16], strides = [1, 1]} : vector<2x48xf32> to vector<2x16xf32>
      %16 = arith.addf %14, %15 : vector<2x16xf32>
      %17 = arith.negf %16 : vector<2x16xf32>
      %18 = math.exp %17 : vector<2x16xf32>
      %cst_13 = arith.constant 1.000000e+00 : f32
      %19 = vector.broadcast %cst_13 : f32 to vector<2x16xf32>
      %20 = arith.addf %19, %18 : vector<2x16xf32>
      %21 = arith.divf %19, %20 : vector<2x16xf32>
      %22 = vector.extract_strided_slice %13 {offsets = [0, 16], sizes = [2, 16], strides = [1, 1]} : vector<2x48xf32> to vector<2x16xf32>
      %23 = vector.extract_strided_slice %10 {offsets = [0, 16], sizes = [2, 16], strides = [1, 1]} : vector<2x48xf32> to vector<2x16xf32>
      %24 = arith.addf %22, %23 : vector<2x16xf32>
      %25 = arith.negf %24 : vector<2x16xf32>
      %26 = math.exp %25 : vector<2x16xf32>
      %cst_14 = arith.constant 1.000000e+00 : f32
      %27 = vector.broadcast %cst_14 : f32 to vector<2x16xf32>
      %28 = arith.addf %27, %26 : vector<2x16xf32>
      %29 = arith.divf %27, %28 : vector<2x16xf32>
      %30 = vector.extract_strided_slice %13 {offsets = [0, 32], sizes = [2, 16], strides = [1, 1]} : vector<2x48xf32> to vector<2x16xf32>
      %31 = vector.extract_strided_slice %10 {offsets = [0, 32], sizes = [2, 16], strides = [1, 1]} : vector<2x48xf32> to vector<2x16xf32>
      %32 = arith.mulf %21, %31 : vector<2x16xf32>
      %33 = arith.addf %30, %32 : vector<2x16xf32>
      %34 = math.tanh %33 : vector<2x16xf32>
      %cst_15 = arith.constant 1.000000e+00 : f32
      %35 = vector.broadcast %cst_15 : f32 to vector<2x16xf32>
      %36 = arith.subf %35, %29 : vector<2x16xf32>
      %37 = arith.mulf %36, %34 : vector<2x16xf32>
      %38 = arith.mulf %29, %7 : vector<2x16xf32>
      %39 = arith.addf %37, %38 : vector<2x16xf32>
      %c0_16 = arith.constant 0 : index
      %c0_17 = arith.constant 0 : index
      %40 = vector.load %arg4[%c0_16, %c0_17] : memref<2x16xf32, #tpu.memory_space<vmem>>, vector<2x16xf32>
      tpu.vector_store %arg4[%c0_16, %c0_17], %39 {strides = array<i32>} : memref<2x16xf32, #tpu.memory_space<vmem>>, vector<2x16xf32>,
      %41 = arith.index_cast %6 : i32 to index
      %c0_18 = arith.constant 0 : index
      %c0_19 = arith.constant 0 : index
      %42 = vector.load %arg3[%41, %c0_18, %c0_19] : memref<16x2x16xf32, #tpu.memory_space<vmem>>, vector<1x2x16xf32>
      %43 = vector.shape_cast %42 : vector<1x2x16xf32> to vector<2x16xf32>
      %44 = vector.shape_cast %39 : vector<2x16xf32> to vector<1x2x16xf32>
      tpu.vector_store %arg3[%41, %c0_18, %c0_19], %44 {strides = array<i32>} : memref<16x2x16xf32, #tpu.memory_space<vmem>>, vector<1x2x16xf32>,
    }
    %c16_i32_5 = arith.constant 16 : i32
    return
  }
}

module attributes {stable_mosaic.version = 11 : i64} {
  func.func @_linear_kernel(%arg0: memref<32x32xbf16, #tpu.memory_space<vmem>>, %arg1: memref<32x16xbf16, #tpu.memory_space<vmem>>, %arg2: memref<1x16xf32, #tpu.memory_space<vmem>>, %arg3: memref<32x16xf32, #tpu.memory_space<vmem>>, %arg4: memref<32x1xf32, #tpu.memory_space<vmem>>, %arg5: memref<32x16xf32, #tpu.memory_space<vmem>>) attributes {dimension_semantics = [], scalar_prefetch = 0 : i64, scratch_operands = 0 : i64, tpu.core_type = #tpu.core_type<tc>} {
    %c0 = arith.constant 0 : index
    %c0_0 = arith.constant 0 : index
    %0 = vector.load %arg0[%c0, %c0_0] : memref<32x32xbf16, #tpu.memory_space<vmem>>, vector<32x32xbf16>
    %c0_1 = arith.constant 0 : index
    %c0_2 = arith.constant 0 : index
    %1 = vector.load %arg1[%c0_1, %c0_2] : memref<32x16xbf16, #tpu.memory_space<vmem>>, vector<32x16xbf16>
    %cst = arith.constant dense<0.000000e+00> : vector<32x16xf32>
    %2 = tpu.matmul %0, %1, %cst {dimension_numbers = #tpu.dot_dimension_numbers<[1], [0], [0], [1], [0, 0, 1, 1], [], []>} : vector<32x32xbf16>, vector<32x16xbf16>, vector<32x16xf32> -> vector<32x16xf32>
    %c0_3 = arith.constant 0 : index
    %c0_4 = arith.constant 0 : index
    %3 = vector.load %arg2[%c0_3, %c0_4] : memref<1x16xf32, #tpu.memory_space<vmem>>, vector<1x16xf32>
    %4 = vector.broadcast %3 : vector<1x16xf32> to vector<32x16xf32>
    %5 = arith.addf %2, %4 : vector<32x16xf32>
    %c0_5 = arith.constant 0 : index
    %c0_6 = arith.constant 0 : index
    %6 = vector.load %arg3[%c0_5, %c0_6] : memref<32x16xf32, #tpu.memory_space<vmem>>, vector<32x16xf32>
    %7 = arith.addf %5, %6 : vector<32x16xf32>
    %c0_7 = arith.constant 0 : index
    %c0_8 = arith.constant 0 : index
    %8 = vector.load %arg4[%c0_7, %c0_8] : memref<32x1xf32, #tpu.memory_space<vmem>>, vector<32x1xf32>
    %9 = vector.broadcast %8 : vector<32x1xf32> to vector<32x16xf32>
    %10 = arith.mulf %7, %9 : vector<32x16xf32>
    %c0_9 = arith.constant 0 : index
    %c0_10 = arith.constant 0 : index
    %11 = vector.load %arg5[%c0_9, %c0_10] : memref<32x16xf32, #tpu.memory_space<vmem>>, vector<32x16xf32>
    tpu.vector_store %arg5[%c0_9, %c0_10], %10 {strides = array<i32>} : memref<32x16xf32, #tpu.memory_space<vmem>>, vector<32x16xf32>,
    return
  }
}

module attributes {stable_mosaic.version = 11 : i64} {
  func.func @_conv_ln_relu_kernel(%arg0: i32, %arg1: memref<1x10x32xf32, #tpu.memory_space<vmem>>, %arg2: memref<3x32x32xbf16, #tpu.memory_space<vmem>>, %arg3: memref<1x32xf32, #tpu.memory_space<vmem>>, %arg4: memref<1x32xf32, #tpu.memory_space<vmem>>, %arg5: memref<1x32xf32, #tpu.memory_space<vmem>>, %arg6: memref<1x8x32xf32, #tpu.memory_space<vmem>>) attributes {dimension_semantics = [#tpu.dimension_semantics<parallel>], iteration_bounds = array<i64: 2>, scalar_prefetch = 0 : i64, scratch_operands = 0 : i64, tpu.core_type = #tpu.core_type<tc>, window_params = [{transform_indices = @transform_0, window_bounds = array<i64: 1, 10, 32>}, {pipeline_mode = #tpu.pipeline_mode<synchronous>, transform_indices = @transform_1, window_bounds = array<i64: 3, 32, 32>}, {pipeline_mode = #tpu.pipeline_mode<synchronous>, transform_indices = @transform_2, window_bounds = array<i64: 1, 32>}, {pipeline_mode = #tpu.pipeline_mode<synchronous>, transform_indices = @transform_3, window_bounds = array<i64: 1, 32>}, {pipeline_mode = #tpu.pipeline_mode<synchronous>, transform_indices = @transform_4, window_bounds = array<i64: 1, 32>}, {transform_indices = @transform_5, window_bounds = array<i64: 1, 8, 32>}]} {
    %c0 = arith.constant 0 : index
    %c0_0 = arith.constant 0 : index
    %c0_1 = arith.constant 0 : index
    %0 = vector.load %arg1[%c0, %c0_0, %c0_1] : memref<1x10x32xf32, #tpu.memory_space<vmem>>, vector<1x10x32xf32>
    %1 = vector.shape_cast %0 : vector<1x10x32xf32> to vector<10x32xf32>
    %2 = arith.truncf %1 : vector<10x32xf32> to vector<10x32xbf16>
    %cst = arith.constant 0.000000e+00 : f32
    %3 = vector.broadcast %cst : f32 to vector<8x32xf32>
    %4 = vector.extract_strided_slice %2 {offsets = [0, 0], sizes = [8, 32], strides = [1, 1]} : vector<10x32xbf16> to vector<8x32xbf16>
    %c0_2 = arith.constant 0 : index
    %c0_3 = arith.constant 0 : index
    %c0_4 = arith.constant 0 : index
    %5 = vector.load %arg2[%c0_2, %c0_3, %c0_4] : memref<3x32x32xbf16, #tpu.memory_space<vmem>>, vector<1x32x32xbf16>
    %6 = vector.shape_cast %5 : vector<1x32x32xbf16> to vector<32x32xbf16>
    %cst_5 = arith.constant dense<0.000000e+00> : vector<8x32xf32>
    %7 = tpu.matmul %4, %6, %cst_5 {dimension_numbers = #tpu.dot_dimension_numbers<[1], [0], [0], [1], [0, 0, 1, 1], [], []>} : vector<8x32xbf16>, vector<32x32xbf16>, vector<8x32xf32> -> vector<8x32xf32>
    %8 = arith.addf %3, %7 : vector<8x32xf32>
    %9 = vector.extract_strided_slice %2 {offsets = [1, 0], sizes = [8, 32], strides = [1, 1]} : vector<10x32xbf16> to vector<8x32xbf16>
    %c1 = arith.constant 1 : index
    %c0_6 = arith.constant 0 : index
    %c0_7 = arith.constant 0 : index
    %10 = vector.load %arg2[%c1, %c0_6, %c0_7] : memref<3x32x32xbf16, #tpu.memory_space<vmem>>, vector<1x32x32xbf16>
    %11 = vector.shape_cast %10 : vector<1x32x32xbf16> to vector<32x32xbf16>
    %cst_8 = arith.constant dense<0.000000e+00> : vector<8x32xf32>
    %12 = tpu.matmul %9, %11, %cst_8 {dimension_numbers = #tpu.dot_dimension_numbers<[1], [0], [0], [1], [0, 0, 1, 1], [], []>} : vector<8x32xbf16>, vector<32x32xbf16>, vector<8x32xf32> -> vector<8x32xf32>
    %13 = arith.addf %8, %12 : vector<8x32xf32>
    %14 = vector.extract_strided_slice %2 {offsets = [2, 0], sizes = [8, 32], strides = [1, 1]} : vector<10x32xbf16> to vector<8x32xbf16>
    %c2 = arith.constant 2 : index
    %c0_9 = arith.constant 0 : index
    %c0_10 = arith.constant 0 : index
    %15 = vector.load %arg2[%c2, %c0_9, %c0_10] : memref<3x32x32xbf16, #tpu.memory_space<vmem>>, vector<1x32x32xbf16>
    %16 = vector.shape_cast %15 : vector<1x32x32xbf16> to vector<32x32xbf16>
    %cst_11 = arith.constant dense<0.000000e+00> : vector<8x32xf32>
    %17 = tpu.matmul %14, %16, %cst_11 {dimension_numbers = #tpu.dot_dimension_numbers<[1], [0], [0], [1], [0, 0, 1, 1], [], []>} : vector<8x32xbf16>, vector<32x32xbf16>, vector<8x32xf32> -> vector<8x32xf32>
    %18 = arith.addf %13, %17 : vector<8x32xf32>
    %c0_12 = arith.constant 0 : index
    %c0_13 = arith.constant 0 : index
    %19 = vector.load %arg3[%c0_12, %c0_13] : memref<1x32xf32, #tpu.memory_space<vmem>>, vector<1x32xf32>
    %20 = vector.broadcast %19 : vector<1x32xf32> to vector<8x32xf32>
    %21 = arith.addf %18, %20 : vector<8x32xf32>
    %cst_14 = arith.constant dense<0.000000e+00> : vector<8xf32>
    %22 = vector.multi_reduction <add>, %21, %cst_14 [1] : vector<8x32xf32> to vector<8xf32>
    %23 = vector.shape_cast %22 : vector<8xf32> to vector<8x1xf32>
    %cst_15 = arith.constant 3.200000e+01 : f32
    %24 = vector.broadcast %cst_15 : f32 to vector<8x1xf32>
    %25 = arith.divf %23, %24 : vector<8x1xf32>
    %26 = vector.broadcast %25 : vector<8x1xf32> to vector<8x32xf32>
    %27 = arith.subf %21, %26 : vector<8x32xf32>
    %28 = arith.mulf %27, %27 : vector<8x32xf32>
    %cst_16 = arith.constant dense<0.000000e+00> : vector<8xf32>
    %29 = vector.multi_reduction <add>, %28, %cst_16 [1] : vector<8x32xf32> to vector<8xf32>
    %30 = vector.shape_cast %29 : vector<8xf32> to vector<8x1xf32>
    %cst_17 = arith.constant 3.200000e+01 : f32
    %31 = vector.broadcast %cst_17 : f32 to vector<8x1xf32>
    %32 = arith.divf %30, %31 : vector<8x1xf32>
    %33 = vector.broadcast %25 : vector<8x1xf32> to vector<8x32xf32>
    %34 = arith.subf %21, %33 : vector<8x32xf32>
    %cst_18 = arith.constant 9.99999974E-6 : f32
    %35 = vector.broadcast %cst_18 : f32 to vector<8x1xf32>
    %36 = arith.addf %32, %35 : vector<8x1xf32>
    %37 = math.rsqrt %36 : vector<8x1xf32>
    %38 = vector.broadcast %37 : vector<8x1xf32> to vector<8x32xf32>
    %39 = arith.mulf %34, %38 : vector<8x32xf32>
    %c0_19 = arith.constant 0 : index
    %c0_20 = arith.constant 0 : index
    %40 = vector.load %arg4[%c0_19, %c0_20] : memref<1x32xf32, #tpu.memory_space<vmem>>, vector<1x32xf32>
    %41 = vector.broadcast %40 : vector<1x32xf32> to vector<8x32xf32>
    %42 = arith.mulf %39, %41 : vector<8x32xf32>
    %c0_21 = arith.constant 0 : index
    %c0_22 = arith.constant 0 : index
    %43 = vector.load %arg5[%c0_21, %c0_22] : memref<1x32xf32, #tpu.memory_space<vmem>>, vector<1x32xf32>
    %44 = vector.broadcast %43 : vector<1x32xf32> to vector<8x32xf32>
    %45 = arith.addf %42, %44 : vector<8x32xf32>
    %cst_23 = arith.constant 0.000000e+00 : f32
    %46 = vector.broadcast %cst_23 : f32 to vector<8x32xf32>
    %47 = arith.maximumf %45, %46 : vector<8x32xf32>
    %c0_24 = arith.constant 0 : index
    %c0_25 = arith.constant 0 : index
    %c0_26 = arith.constant 0 : index
    %48 = vector.load %arg6[%c0_24, %c0_25, %c0_26] : memref<1x8x32xf32, #tpu.memory_space<vmem>>, vector<1x8x32xf32>
    %49 = vector.shape_cast %48 : vector<1x8x32xf32> to vector<8x32xf32>
    %50 = vector.shape_cast %47 : vector<8x32xf32> to vector<1x8x32xf32>
    tpu.vector_store %arg6[%c0_24, %c0_25, %c0_26], %50 {strides = array<i32>} : memref<1x8x32xf32, #tpu.memory_space<vmem>>, vector<1x8x32xf32>,
    return
  }
  func.func @transform_0(%arg0: i32) -> (i32, i32, i32) {
    %c0_i32 = arith.constant 0 : i32
    %c0_i32_0 = arith.constant 0 : i32
    %c0_i32_1 = arith.constant 0 : i32
    return %arg0, %c0_i32, %c0_i32_0 : i32, i32, i32
  }
  func.func @transform_1(%arg0: i32) -> (i32, i32, i32) {
    %c0_i32 = arith.constant 0 : i32
    %c0_i32_0 = arith.constant 0 : i32
    %c0_i32_1 = arith.constant 0 : i32
    %c0_i32_2 = arith.constant 0 : i32
    return %c0_i32, %c0_i32_0, %c0_i32_1 : i32, i32, i32
  }
  func.func @transform_2(%arg0: i32) -> (i32, i32) {
    %c0_i32 = arith.constant 0 : i32
    %c0_i32_0 = arith.constant 0 : i32
    %c0_i32_1 = arith.constant 0 : i32
    return %c0_i32, %c0_i32_0 : i32, i32
  }
  func.func @transform_3(%arg0: i32) -> (i32, i32) {
    %c0_i32 = arith.constant 0 : i32
    %c0_i32_0 = arith.constant 0 : i32
    %c0_i32_1 = arith.constant 0 : i32
    return %c0_i32, %c0_i32_0 : i32, i32
  }
  func.func @transform_4(%arg0: i32) -> (i32, i32) {
    %c0_i32 = arith.constant 0 : i32
    %c0_i32_0 = arith.constant 0 : i32
    %c0_i32_1 = arith.constant 0 : i32
    return %c0_i32, %c0_i32_0 : i32, i32
  }
  func.func @transform_5(%arg0: i32) -> (i32, i32, i32) {
    %c0_i32 = arith.constant 0 : i32
    %c0_i32_0 = arith.constant 0 : i32
    %c0_i32_1 = arith.constant 0 : i32
    return %arg0, %c0_i32, %c0_i32_0 : i32, i32, i32
  }
}

module attributes {stable_mosaic.version = 11 : i64} {
  func.func @_conv_ln_relu_head_kernel(%arg0: i32, %arg1: memref<1x10x32xf32, #tpu.memory_space<vmem>>, %arg2: memref<3x32x32xbf16, #tpu.memory_space<vmem>>, %arg3: memref<1x32xf32, #tpu.memory_space<vmem>>, %arg4: memref<1x32xf32, #tpu.memory_space<vmem>>, %arg5: memref<1x32xf32, #tpu.memory_space<vmem>>, %arg6: memref<1x32xf32, #tpu.memory_space<vmem>>, %arg7: memref<1x1xf32, #tpu.memory_space<vmem>>, %arg8: memref<1x8x1xf32, #tpu.memory_space<vmem>>) attributes {dimension_semantics = [#tpu.dimension_semantics<parallel>], iteration_bounds = array<i64: 2>, scalar_prefetch = 0 : i64, scratch_operands = 0 : i64, tpu.core_type = #tpu.core_type<tc>, window_params = [{transform_indices = @transform_0, window_bounds = array<i64: 1, 10, 32>}, {pipeline_mode = #tpu.pipeline_mode<synchronous>, transform_indices = @transform_1, window_bounds = array<i64: 3, 32, 32>}, {pipeline_mode = #tpu.pipeline_mode<synchronous>, transform_indices = @transform_2, window_bounds = array<i64: 1, 32>}, {pipeline_mode = #tpu.pipeline_mode<synchronous>, transform_indices = @transform_3, window_bounds = array<i64: 1, 32>}, {pipeline_mode = #tpu.pipeline_mode<synchronous>, transform_indices = @transform_4, window_bounds = array<i64: 1, 32>}, {pipeline_mode = #tpu.pipeline_mode<synchronous>, transform_indices = @transform_5, window_bounds = array<i64: 1, 32>}, {pipeline_mode = #tpu.pipeline_mode<synchronous>, transform_indices = @transform_6, window_bounds = array<i64: 1, 1>}, {transform_indices = @transform_7, window_bounds = array<i64: 1, 8, 1>}]} {
    %c0 = arith.constant 0 : index
    %c0_0 = arith.constant 0 : index
    %c0_1 = arith.constant 0 : index
    %0 = vector.load %arg1[%c0, %c0_0, %c0_1] : memref<1x10x32xf32, #tpu.memory_space<vmem>>, vector<1x10x32xf32>
    %1 = vector.shape_cast %0 : vector<1x10x32xf32> to vector<10x32xf32>
    %2 = arith.truncf %1 : vector<10x32xf32> to vector<10x32xbf16>
    %cst = arith.constant 0.000000e+00 : f32
    %3 = vector.broadcast %cst : f32 to vector<8x32xf32>
    %4 = vector.extract_strided_slice %2 {offsets = [0, 0], sizes = [8, 32], strides = [1, 1]} : vector<10x32xbf16> to vector<8x32xbf16>
    %c0_2 = arith.constant 0 : index
    %c0_3 = arith.constant 0 : index
    %c0_4 = arith.constant 0 : index
    %5 = vector.load %arg2[%c0_2, %c0_3, %c0_4] : memref<3x32x32xbf16, #tpu.memory_space<vmem>>, vector<1x32x32xbf16>
    %6 = vector.shape_cast %5 : vector<1x32x32xbf16> to vector<32x32xbf16>
    %cst_5 = arith.constant dense<0.000000e+00> : vector<8x32xf32>
    %7 = tpu.matmul %4, %6, %cst_5 {dimension_numbers = #tpu.dot_dimension_numbers<[1], [0], [0], [1], [0, 0, 1, 1], [], []>} : vector<8x32xbf16>, vector<32x32xbf16>, vector<8x32xf32> -> vector<8x32xf32>
    %8 = arith.addf %3, %7 : vector<8x32xf32>
    %9 = vector.extract_strided_slice %2 {offsets = [1, 0], sizes = [8, 32], strides = [1, 1]} : vector<10x32xbf16> to vector<8x32xbf16>
    %c1 = arith.constant 1 : index
    %c0_6 = arith.constant 0 : index
    %c0_7 = arith.constant 0 : index
    %10 = vector.load %arg2[%c1, %c0_6, %c0_7] : memref<3x32x32xbf16, #tpu.memory_space<vmem>>, vector<1x32x32xbf16>
    %11 = vector.shape_cast %10 : vector<1x32x32xbf16> to vector<32x32xbf16>
    %cst_8 = arith.constant dense<0.000000e+00> : vector<8x32xf32>
    %12 = tpu.matmul %9, %11, %cst_8 {dimension_numbers = #tpu.dot_dimension_numbers<[1], [0], [0], [1], [0, 0, 1, 1], [], []>} : vector<8x32xbf16>, vector<32x32xbf16>, vector<8x32xf32> -> vector<8x32xf32>
    %13 = arith.addf %8, %12 : vector<8x32xf32>
    %14 = vector.extract_strided_slice %2 {offsets = [2, 0], sizes = [8, 32], strides = [1, 1]} : vector<10x32xbf16> to vector<8x32xbf16>
    %c2 = arith.constant 2 : index
    %c0_9 = arith.constant 0 : index
    %c0_10 = arith.constant 0 : index
    %15 = vector.load %arg2[%c2, %c0_9, %c0_10] : memref<3x32x32xbf16, #tpu.memory_space<vmem>>, vector<1x32x32xbf16>
    %16 = vector.shape_cast %15 : vector<1x32x32xbf16> to vector<32x32xbf16>
    %cst_11 = arith.constant dense<0.000000e+00> : vector<8x32xf32>
    %17 = tpu.matmul %14, %16, %cst_11 {dimension_numbers = #tpu.dot_dimension_numbers<[1], [0], [0], [1], [0, 0, 1, 1], [], []>} : vector<8x32xbf16>, vector<32x32xbf16>, vector<8x32xf32> -> vector<8x32xf32>
    %18 = arith.addf %13, %17 : vector<8x32xf32>
    %c0_12 = arith.constant 0 : index
    %c0_13 = arith.constant 0 : index
    %19 = vector.load %arg3[%c0_12, %c0_13] : memref<1x32xf32, #tpu.memory_space<vmem>>, vector<1x32xf32>
    %20 = vector.broadcast %19 : vector<1x32xf32> to vector<8x32xf32>
    %21 = arith.addf %18, %20 : vector<8x32xf32>
    %cst_14 = arith.constant dense<0.000000e+00> : vector<8xf32>
    %22 = vector.multi_reduction <add>, %21, %cst_14 [1] : vector<8x32xf32> to vector<8xf32>
    %23 = vector.shape_cast %22 : vector<8xf32> to vector<8x1xf32>
    %cst_15 = arith.constant 3.200000e+01 : f32
    %24 = vector.broadcast %cst_15 : f32 to vector<8x1xf32>
    %25 = arith.divf %23, %24 : vector<8x1xf32>
    %26 = vector.broadcast %25 : vector<8x1xf32> to vector<8x32xf32>
    %27 = arith.subf %21, %26 : vector<8x32xf32>
    %28 = arith.mulf %27, %27 : vector<8x32xf32>
    %cst_16 = arith.constant dense<0.000000e+00> : vector<8xf32>
    %29 = vector.multi_reduction <add>, %28, %cst_16 [1] : vector<8x32xf32> to vector<8xf32>
    %30 = vector.shape_cast %29 : vector<8xf32> to vector<8x1xf32>
    %cst_17 = arith.constant 3.200000e+01 : f32
    %31 = vector.broadcast %cst_17 : f32 to vector<8x1xf32>
    %32 = arith.divf %30, %31 : vector<8x1xf32>
    %33 = vector.broadcast %25 : vector<8x1xf32> to vector<8x32xf32>
    %34 = arith.subf %21, %33 : vector<8x32xf32>
    %cst_18 = arith.constant 9.99999974E-6 : f32
    %35 = vector.broadcast %cst_18 : f32 to vector<8x1xf32>
    %36 = arith.addf %32, %35 : vector<8x1xf32>
    %37 = math.rsqrt %36 : vector<8x1xf32>
    %38 = vector.broadcast %37 : vector<8x1xf32> to vector<8x32xf32>
    %39 = arith.mulf %34, %38 : vector<8x32xf32>
    %c0_19 = arith.constant 0 : index
    %c0_20 = arith.constant 0 : index
    %40 = vector.load %arg4[%c0_19, %c0_20] : memref<1x32xf32, #tpu.memory_space<vmem>>, vector<1x32xf32>
    %41 = vector.broadcast %40 : vector<1x32xf32> to vector<8x32xf32>
    %42 = arith.mulf %39, %41 : vector<8x32xf32>
    %c0_21 = arith.constant 0 : index
    %c0_22 = arith.constant 0 : index
    %43 = vector.load %arg5[%c0_21, %c0_22] : memref<1x32xf32, #tpu.memory_space<vmem>>, vector<1x32xf32>
    %44 = vector.broadcast %43 : vector<1x32xf32> to vector<8x32xf32>
    %45 = arith.addf %42, %44 : vector<8x32xf32>
    %cst_23 = arith.constant 0.000000e+00 : f32
    %46 = vector.broadcast %cst_23 : f32 to vector<8x32xf32>
    %47 = arith.maximumf %45, %46 : vector<8x32xf32>
    %c0_24 = arith.constant 0 : index
    %c0_25 = arith.constant 0 : index
    %48 = vector.load %arg6[%c0_24, %c0_25] : memref<1x32xf32, #tpu.memory_space<vmem>>, vector<1x32xf32>
    %49 = vector.broadcast %48 : vector<1x32xf32> to vector<8x32xf32>
    %50 = arith.mulf %47, %49 : vector<8x32xf32>
    %cst_26 = arith.constant dense<0.000000e+00> : vector<8xf32>
    %51 = vector.multi_reduction <add>, %50, %cst_26 [1] : vector<8x32xf32> to vector<8xf32>
    %52 = vector.shape_cast %51 : vector<8xf32> to vector<8x1xf32>
    %c0_27 = arith.constant 0 : index
    %c0_28 = arith.constant 0 : index
    %53 = vector.load %arg7[%c0_27, %c0_28] : memref<1x1xf32, #tpu.memory_space<vmem>>, vector<1x1xf32>
    %54 = vector.broadcast %53 : vector<1x1xf32> to vector<8x1xf32>
    %55 = arith.addf %52, %54 : vector<8x1xf32>
    %cst_29 = arith.constant 0.000000e+00 : f32
    %56 = vector.broadcast %cst_29 : f32 to vector<8x1xf32>
    %57 = arith.maximumf %55, %56 : vector<8x1xf32>
    %c0_30 = arith.constant 0 : index
    %c0_31 = arith.constant 0 : index
    %c0_32 = arith.constant 0 : index
    %58 = vector.load %arg8[%c0_30, %c0_31, %c0_32] : memref<1x8x1xf32, #tpu.memory_space<vmem>>, vector<1x8x1xf32>
    %59 = vector.shape_cast %58 : vector<1x8x1xf32> to vector<8x1xf32>
    %60 = vector.shape_cast %57 : vector<8x1xf32> to vector<1x8x1xf32>
    tpu.vector_store %arg8[%c0_30, %c0_31, %c0_32], %60 {strides = array<i32>} : memref<1x8x1xf32, #tpu.memory_space<vmem>>, vector<1x8x1xf32>,
    return
  }
  func.func @transform_0(%arg0: i32) -> (i32, i32, i32) {
    %c0_i32 = arith.constant 0 : i32
    %c0_i32_0 = arith.constant 0 : i32
    %c0_i32_1 = arith.constant 0 : i32
    return %arg0, %c0_i32, %c0_i32_0 : i32, i32, i32
  }
  func.func @transform_1(%arg0: i32) -> (i32, i32, i32) {
    %c0_i32 = arith.constant 0 : i32
    %c0_i32_0 = arith.constant 0 : i32
    %c0_i32_1 = arith.constant 0 : i32
    %c0_i32_2 = arith.constant 0 : i32
    return %c0_i32, %c0_i32_0, %c0_i32_1 : i32, i32, i32
  }
  func.func @transform_2(%arg0: i32) -> (i32, i32) {
    %c0_i32 = arith.constant 0 : i32
    %c0_i32_0 = arith.constant 0 : i32
    %c0_i32_1 = arith.constant 0 : i32
    return %c0_i32, %c0_i32_0 : i32, i32
  }
  func.func @transform_3(%arg0: i32) -> (i32, i32) {
    %c0_i32 = arith.constant 0 : i32
    %c0_i32_0 = arith.constant 0 : i32
    %c0_i32_1 = arith.constant 0 : i32
    return %c0_i32, %c0_i32_0 : i32, i32
  }
  func.func @transform_4(%arg0: i32) -> (i32, i32) {
    %c0_i32 = arith.constant 0 : i32
    %c0_i32_0 = arith.constant 0 : i32
    %c0_i32_1 = arith.constant 0 : i32
    return %c0_i32, %c0_i32_0 : i32, i32
  }
  func.func @transform_5(%arg0: i32) -> (i32, i32) {
    %c0_i32 = arith.constant 0 : i32
    %c0_i32_0 = arith.constant 0 : i32
    %c0_i32_1 = arith.constant 0 : i32
    return %c0_i32, %c0_i32_0 : i32, i32
  }
  func.func @transform_6(%arg0: i32) -> (i32, i32) {
    %c0_i32 = arith.constant 0 : i32
    %c0_i32_0 = arith.constant 0 : i32
    %c0_i32_1 = arith.constant 0 : i32
    return %c0_i32, %c0_i32_0 : i32, i32
  }
  func.func @transform_7(%arg0: i32) -> (i32, i32, i32) {
    %c0_i32 = arith.constant 0 : i32
    %c0_i32_0 = arith.constant 0 : i32
    %c0_i32_1 = arith.constant 0 : i32
    return %arg0, %c0_i32, %c0_i32_0 : i32, i32, i32
  }
}

</mosaic_0001>

<bundles_post_ra>
// kernel: sub.25
= control target key start
LH: loop header
LB: loop body
LE: loop exit
PB: predicated region body
PF: predicated region fallthrough
CT: control target
= control target key end

     0   :  { %s34_s0 = inlined_call_operand.vmem [shape: s32[2,8], index: 0, kind: input, shape index: {}]   ;;  %s35_s1 = inlined_call_operand.vmem [shape: s32[2,8], index: 1, kind: input, shape index: {}]   ;;  %s36_s2 = inlined_call_operand.vmem [shape: s32[2,8], index: 2, kind: output, shape index: {}]  }
   0x1   :  { %v3_v0 = vld [vmem:[%s34_s0] sm:$0x3] }
   0x2   :  { %v4_v1 = vld [vmem:[%s35_s1] sm:$0x3] }
   0x3   :  { %v7_v2 = vsub.s32 %v3_v0, %v4_v1 }
   0x5   :  { %9 = vst [vmem:[%s36_s2] sm:$0x3] %v7_v2 }

// kernel: fastspeech_forward.27
= control target key start
LH: loop header
LB: loop body
LE: loop exit
PB: predicated region body
PF: predicated region fallthrough
CT: control target
= control target key end

     0   :  { %s349_s9 = smov 0   ;;  %s369_s0 = inlined_call_operand.vmem [shape: bf16[2,16,8], index: 0, kind: input, shape index: {}]   ;;  %s370_s1 = inlined_call_operand.vmem [shape: bf16[2,8,32], index: 1, kind: input, shape index: {}]   ;;  %s371_s2 = inlined_call_operand.vmem [shape: f32[2,16,32], index: 2, kind: output, shape index: {}]  }
   0x1 LB: > { %s289_s10 = sadd.s32 4294967295, %s330_s9   ;;  %p293_p0 = scmp.ge.s32.totalorder %s330_s9, 1  ;;  %s330_s9 = sphi %s349_s9, %s12_s9  }
   0x2   : > { %p121_p1 = scmp.lt.s32.totalorder %s330_s9, 3 }
   0x4   : > { %p122_p2 = pnand %p293_p0, %p121_p1 }
   0x5   : > { %p147_p3 = scmp.lt.s32.totalorder (!%p122_p2), %s289_s10, 1 }
   0x6   : > { %125 = sbr.rel (%p122_p2) target bundleno = 218 (0xda), region = 28 }
   0xb   : > { %v332_v0 = vmov 0.0   ;;  %vm333_vm0 = vmmov 0   ;;  %s373_s10 = smov (!%p147_p3, %s289_s10), 1  ;;  %vm174_vm1 = vcmask 1043456   ;;  %vm170_vm2 = vcmask 64512  }
   0xc   : > { %307 = vmatprep.subr.bf16.mxu0 %v332_v0  ;;  %309 = vmatprep.mubr.msk.bf16.mxu0 %vm333_vm0, %v332_v0  ;;  %s296_s11 = sshll.u32 %s373_s10, 2  ;;  %s303_s12 = sshll.u32 %s373_s10, 3  ;;  %vm219_vm3 = vcmask 261120  }
   0xd   : > { %s155_s15 = scalar_lea.vmem %s370_s1, %s296_s11  ;;  %s151_s18 = scalar_lea.vmem %s369_s0, %s303_s12 }
   0xe   : > { %v164_v1 = vld [vmem:[%s155_s15] sm:$0xf]  ;;  %s304_s19 = sshll.u32 %s373_s10, 4 }
   0xf   : > { %v176_v2 = vsel %vm174_vm1, %v164_v1, 0  ;;  %v323_v3 = vld [vmem:[%s151_s18] sm:$0xff]   ;;  %s160_s22 = scalar_lea.vmem %s371_s2, %s304_s19 }
  0x10   : > { %308 = vmatpush3.bf16.msra.mxu0 %v176_v2 }
  0x13   : > { %310 = vmatmul.mubr.msk.bf16.vlgmr.msra.gmra.mxu0 %vm170_vm2, %v323_v3 }
  0xd3   : > { %v212_v4 = vpop.f32.mrf.mxu0 }
  0xd4   : > { %220 = vst.msk [vmem:[%s160_s22] sm:$0xff] %vm219_vm3, %v212_v4 }
  0xd5   : > { %v311_v5 = vpop.f32.mrf.mxu0 }
  0xd7   : > { %v215_v6 = vpop.f32.mrf.mxu0 }
  0xd8   : > { %221 = vst.msk [vmem:[%s160_s22 + $0x8] sm:$0xff] %vm219_vm3, %v215_v6 }
  0xd9   : > { %v312_v7 = vpop.f32.mrf.mxu0 }
  0xda PF: > { %s12_s9 = sadd.s32 1, %s330_s9  }
  0xdb   : > { %p9_p4 = scmp.ge.s32.totalorder %s12_s9, 4  }
  0xdd   :  { %11 = sbr.rel (!%p9_p4) target bundleno = 1 (0x1), region = 61 }

// kernel: fastspeech_forward.21
= control target key start
LH: loop header
LB: loop body
LE: loop exit
PB: predicated region body
PF: predicated region fallthrough
CT: control target
= control target key end

     0   :  { %s1073_s30 = smov 0   ;;  %s1169_s0 = inlined_call_operand.vmem [shape: f32[2,8,32], index: 0, kind: input, shape index: {}]   ;;  %s1170_s1 = inlined_call_operand.vmem [shape: bf16[32,96], index: 1, kind: input, shape index: {}]   ;;  %s1171_s2 = inlined_call_operand.vmem [shape: f32[1,96], index: 2, kind: input, shape index: {}]   ;;  %s1172_s3 = inlined_call_operand.vmem [shape: bf16[2,16,32], index: 3, kind: input, shape index: {}]   ;;  %s1173_s4 = inlined_call_operand.vmem [shape: f32[1,32], index: 4, kind: input, shape index: {}]   ;;  %s1174_s5 = inlined_call_operand.vmem [shape: f32[1,32], index: 5, kind: input, shape index: {}]   ;;  %s1175_s6 = inlined_call_operand.vmem [shape: f32[1,32], index: 6, kind: input, shape index: {}]   ;;  %s1176_s7 = inlined_call_operand.vmem [shape: f32[2,8,8], index: 7, kind: input, shape index: {}]   ;;  %s1177_s8 = inlined_call_operand.vmem [shape: f32[2,8,1], index: 8, kind: input, shape index: {}]   ;;  %s1178_s9 = inlined_call_operand.vmem [shape: f32[2,8,32], index: 9, kind: output, shape index: {}]  }
   0x1 LB: > { %s889_s10 = sadd.s32 4294967295, %s1013_s30   ;;  %p893_p0 = scmp.ge.s32.totalorder %s1013_s30, 1  ;;  %s1013_s30 = sphi %s1073_s30, %s19_s30  }
   0x2   : > { %p304_p1 = scmp.lt.s32.totalorder %s1013_s30, 3 }
   0x4   : > { %p305_p2 = pnand %p893_p0, %p304_p1 }
   0x5   : > { %p346_p3 = scmp.lt.s32.totalorder (!%p305_p2), %s889_s10, 1  ;;  %s1017_s21 = smov (!%p305_p2), 112  }
   0x6   : > { %308 = sbr.rel (%p305_p2) target bundleno = 1564 (0x61c), region = 56  ;;  %s1018_s22 = smov (!%p305_p2), 96  }
   0x7   : > { %s1019_s23 = smov (!%p305_p2), 80   ;;  %s1020_s27 = smov (!%p305_p2), 64  }
   0x8   : > { %s1021_s28 = smov (!%p305_p2), 48  }
   0xb   : > { %v993_v0 = vld [vmem:[%s1170_s1 + $0x8] sm:$0xff]   ;;  %v1015_v1 = vmov 0.0   ;;  %v994_v2 = vld [vmem:[%s1170_s1] sm:$0xff]   ;;  %vm1016_vm0 = vmmov 0   ;;  %s1180_s10 = smov (!%p346_p3, %s889_s10), 1  ;;  %vm388_vm1 = vcmask 261120  }
   0xc   : > { %932 = vmatprep.subr.bf16.mxu0 %v1015_v1  ;;  %940 = vmatprep.subr.bf16.mxu1 %v1015_v1  ;;  %s1094_s15 = sshll.u32 %s1180_s10, 3  ;;  %v898_v5 = vld [vmem:[%s1171_s2] ss:$0 sm:$0xff]  ;;  %vm437_vm2 = vcmask 130048   ;;  %vm486_vm3 = vcmask 64512   ;;  %vm504_vm4 = vcmask 1043456  }
   0xd   : > { %933 = vmatpush3.bf16.msra.mxu0 %v993_v0  ;;  %936 = vmatprep.mubr.msk.bf16.mxu0 %vm1016_vm0, %v1015_v1  ;;  %s349_s18 = scalar_lea.vmem %s1169_s0, %s1094_s15  ;;  %s353_s26 = scalar_lea.vmem %s1176_s7, %s1094_s15  ;;  %v995_v54 = vld [vmem:[%s1172_s3] sm:$0xff]   ;;  %v996_v55 = vld [vmem:[%s1172_s3 + $0x8] sm:$0xff]  }
   0xe   : > { %934 = vmatprep.subr.bf16.mxu0 %v1015_v1  ;;  %942 = vmatprep.mubr.msk.bf16.mxu1 %vm1016_vm0, %v1015_v1  ;;  %v1101_v3 = vld [vmem:[%s349_s18] sm:$0xff]  ;;  %s357_s18 = scalar_lea.vmem %s1177_s8, %s1094_s15  ;;  %s361_s25 = scalar_lea.vmem %s1178_s9, %s1094_s15 }
   0xf   : > { %v364_v4 = vpack.c.bf16 %v1101_v3, %v1101_v3  ;;  %v432_v18 = vld [vmem:[%s353_s26] sm:$0xff] }
  0x11   : > { %935 = vmatpush3.bf16.msra.mxu0 %v994_v2 }
  0x12   : > { %946 = vmatprep.subr.bf16.mxu0 %v1015_v1 }
  0x14   : > { %937 = vmatmul.mubr.msk.bf16.vlgmr.msra.gmra.mxu0 %vm388_vm1, %v364_v4 }
  0x15   : > { %948 = vmatprep.mubr.msk.bf16.mxu0 %vm1016_vm0, %v1015_v1 }
  0xd4   : > { %v426_v6 = vpop.f32.mrf.mxu0 }
  0xd5   : > { %v427_v7 = vadd.f32 %v898_v5, %v426_v6 }
  0xd6   : > { %v938_v8 = vpop.f32.mrf.mxu0 }
  0xd7   : > { %v433_v9 = vpack.c.bf16 %v427_v7, %v427_v7  ;;  %v912_v8 = vld [vmem:[%s1173_s4] ss:$0 sm:$0xff] }
  0xd8   : > { %v429_v10 = vpop.f32.mrf.mxu0 }
  0xd9   : > { %551 = vrot.lane.b32.xlu1 %v433_v9, %s1017_s21  ;;  %435 = vrot.lane.b32.xlu0 %v433_v9, %s1018_s22 }
  0xda   : > { %v939_v11 = vpop.f32.mrf.mxu0 }
  0xdd   : > { %553 = vrot.lane.b32.xlu0 %v433_v9, %s1019_s23 }
 0x14b   : > { %v436_v12 = vpop.permute.xlu0 %435  ;;  %v552_v16 = vpop.permute.xlu1 %551 }
 0x14c   : > { %v442_v13 = vsel %vm437_vm2, %v436_v12, 0 }
 0x14d   : > { %941 = vmatpush3.bf16.xpose.msra.mxu1 %v442_v13 }
 0x14e   : > { %952 = vmatprep.subr.bf16.mxu1 %v1015_v1 }
 0x14f   : > { %v554_v14 = vpop.permute.xlu0 %553 }
 0x150   : > { %v559_v15 = vsel %vm437_vm2, %v554_v14, 0 }
 0x154   : > { %943 = vmatmul.mubr.msk.bf16.vlgmr.msra.gmra.mxu1 %vm437_vm2, %v433_v9 }
 0x155   : > { %953 = vmatpush3.bf16.xpose.msra.mxu1 %v559_v15  ;;  %954 = vmatprep.mubr.msk.bf16.mxu1 %vm1016_vm0, %v1015_v1 }
 0x156   : > { %964 = vmatprep.subr.bf16.mxu1 %v1015_v1 }
 0x15c   : > { %955 = vmatmul.mubr.msk.bf16.vlgmr.msra.gmra.mxu1 %vm437_vm2, %v552_v16  ;;  %v1022_v16 = vmov 0  }
 0x15d   : > { %966 = vmatprep.mubr.msk.bf16.mxu1 %vm1016_vm0, %v1015_v1  ;;  %965 = vmatpush3.bf16.msra.mxu1 %v996_v55 }
 0x15e   : > { %992 = vset.pattern.permute.xlu0 %v1022_v16 }
 0x214   : > { %v478_v17 = vpop.f32.mrf.mxu1 }
 0x215   : > { %v484_v19 = vmul.f32 0.25, %v478_v17 }
 0x216   : > { %v944_v20 = vpop.f32.mrf.mxu1 }
 0x217   : > { %v485_v21 = vadd.f32 %v484_v19, %v432_v18 }
 0x218   : > { %v481_v22 = vpop.f32.mrf.mxu1 }
 0x219   : > { %v487_v23 = vsel %vm486_vm3, %v485_v21, -inf  ;;  %v804_v22 = vld [vmem:[%s357_s18] sm:$0xff] }
 0x21a   : > { %488 = vmax.xlane.f32.xlu1 %v487_v23  ;;  %v945_v24 = vpop.f32.mrf.mxu1 }
 0x21c   : > { %v595_v25 = vpop.f32.mrf.mxu1 }
 0x21d   : > { %v601_v26 = vmul.f32 0.25, %v595_v25 }
 0x21e   : > { %v956_v27 = vpop.f32.mrf.mxu1 }
 0x21f   : > { %v602_v28 = vadd.f32 %v601_v26, %v432_v18  ;;  %v913_v26 = vld [vmem:[%s1174_s5] ss:$0 sm:$0xff] }
 0x220   : > { %v598_v29 = vpop.f32.mrf.mxu1 }
 0x221   : > { %v603_v30 = vsel %vm486_vm3, %v602_v28, -inf }
 0x222   : > { %604 = vmax.xlane.f32.xlu0 %v603_v30  ;;  %v957_v31 = vpop.f32.mrf.mxu1 }
 0x2a3   : > { %v489_v32 = vpop.xlane.xlu1 %488 }
 0x2a4   : > { %v490_v33 = vsub.f32 %v485_v21, %v489_v32 }
 0x2a6   : > { %v491_v34 = vmul.f32 1.442695, %v490_v33 }
 0x2a8   : > { %997 = vpow2.f32 %v491_v34 }
 0x2ab   : > { %v605_v35 = vpop.xlane.xlu0 %604 }
 0x2ac   : > { %v606_v36 = vsub.f32 %v602_v28, %v605_v35  ;;  %v914_v28 = vld [vmem:[%s1175_s6] ss:$0 sm:$0xff] }
 0x2ae   : > { %v607_v37 = vmul.f32 1.442695, %v606_v36 }
 0x2b0   : > { %999 = vpow2.f32 %v607_v37 }
 0x2b5   : > { %v998_v38 = vpop.eup %997 }
 0x2b6   : > { %v493_v39 = vsel %vm486_vm3, %v998_v38, 0.0 }
 0x2b7   : > { %494 = vadd.xlane.f32.xlu0 %v493_v39 }
 0x2bd   : > { %v1000_v40 = vpop.eup %999 }
 0x2be   : > { %v609_v41 = vsel %vm486_vm3, %v1000_v40, 0.0 }
 0x2bf   : > { %610 = vadd.xlane.f32.xlu1 %v609_v41 }
 0x2cd   : > { %499 = vrot.lane.b32.xlu0 %v433_v9, %s1020_s27 }
 0x2d0   : > { %615 = vrot.lane.b32.xlu1 %v433_v9, %s1021_s28 }
 0x340   : > { %v495_v42 = vpop.xlane.xlu0 %494 }
 0x341   : > { %1001 = vrcp.f32 %v495_v42 }
 0x344   : > { %v500_v43 = vpop.permute.xlu0 %499 }
 0x345   : > { %v506_v44 = vsel %vm504_vm4, %v500_v43, 0 }
 0x346   : > { %947 = vmatpush3.bf16.msra.mxu0 %v506_v44 }
 0x347   : > { %958 = vmatprep.subr.bf16.mxu0 %v1015_v1 }
 0x348   : > { %v611_v45 = vpop.xlane.xlu1 %610 }
 0x349   : > { %1003 = vrcp.f32 %v611_v45 }
 0x34c   : > { %v616_v48 = vpop.permute.xlu1 %615 }
 0x34d   : > { %v621_v50 = vsel %vm504_vm4, %v616_v48, 0 }
 0x34e   : > { %v1002_v46 = vpop.eup %1001 }
 0x34f   : > { %v497_v47 = vmul.f32 %v1002_v46, %v998_v38 }
 0x351   : > { %v498_v49 = vpack.c.bf16 %v497_v47, %v497_v47 }
 0x353   : > { %949 = vmatmul.mubr.msk.bf16.vlgmr.msra.gmra.mxu0 %vm486_vm3, %v498_v49 }
 0x354   : > { %959 = vmatpush3.bf16.msra.mxu0 %v621_v50  ;;  %960 = vmatprep.mubr.msk.bf16.mxu0 %vm1016_vm0, %v1015_v1 }
 0x355   : > { %970 = vmatprep.subr.bf16.mxu0 %v1015_v1 }
 0x356   : > { %v1004_v51 = vpop.eup %1003 }
 0x357   : > { %v613_v52 = vmul.f32 %v1004_v51, %v1000_v40 }
 0x359   : > { %v614_v53 = vpack.c.bf16 %v613_v52, %v613_v52 }
 0x35b   : > { %961 = vmatmul.mubr.msk.bf16.vlgmr.msra.gmra.mxu0 %vm486_vm3, %v614_v53 }
 0x35c   : > { %972 = vmatprep.mubr.msk.bf16.mxu0 %vm1016_vm0, %v1015_v1  ;;  %971 = vmatpush3.bf16.msra.mxu0 %v995_v54 }
 0x413   : > { %v542_v56 = vpop.f32.mrf.mxu0 }
 0x414   : > { %v548_v57 = vpack.c.bf16 %v542_v56, %v542_v56 }
 0x415   : > { %v950_v58 = vpop.f32.mrf.mxu0 }
 0x416   : > { %973 = vmatmul.mubr.msk.bf16.vlgmr.msra.gmra.mxu0 %vm437_vm2, %v548_v57 }
 0x417   : > { %v545_v59 = vpop.f32.mrf.mxu0 }
 0x419   : > { %v951_v60 = vpop.f32.mrf.mxu0 }
 0x41b   : > { %v657_v61 = vpop.f32.mrf.mxu0 }
 0x41c   : > { %v663_v62 = vpack.c.bf16 %v657_v61, %v657_v61 }
 0x41d   : > { %v962_v63 = vpop.f32.mrf.mxu0 }
 0x41e   : > { %967 = vmatmul.mubr.msk.bf16.vlgmr.msra.gmra.mxu1 %vm437_vm2, %v663_v62 }
 0x41f   : > { %v660_v0 = vpop.f32.mrf.mxu0 }
 0x421   : > { %v963_v1 = vpop.f32.mrf.mxu0 }
 0x4d6   : > { %v759_v2 = vpop.f32.mrf.mxu0 }
 0x4d8   : > { %v974_v4 = vpop.f32.mrf.mxu0 }
 0x4da   : > { %v762_v5 = vpop.f32.mrf.mxu0 }
 0x4dc   : > { %v975_v6 = vpop.f32.mrf.mxu0 }
 0x4de   : > { %v710_v7 = vpop.f32.mrf.mxu1 }
 0x4df   : > { %v760_v9 = vadd.f32 %v759_v2, %v710_v7 }
 0x4e0   : > { %v968_v10 = vpop.f32.mrf.mxu1 }
 0x4e1   : > { %v772_v11 = vadd.f32 %v912_v8, %v760_v9 }
 0x4e2   : > { %v713_v12 = vpop.f32.mrf.mxu1 }
 0x4e3   : > { %v773_v13 = vadd.f32 %v772_v11, %v1101_v3 }
 0x4e4   : > { %v969_v14 = vpop.f32.mrf.mxu1 }
 0x4e5   : > { %v774_v15 = vsel %vm388_vm1, %v773_v13, 0.0 }
 0x4e6   : > { %775 = vadd.xlane.f32.xlu1 %v774_v15 }
 0x56f   : > { %v776_v17 = vpop.xlane.xlu1 %775 }
 0x570   : > { %v778_v18 = vmul.f32 0.03125, %v776_v17 }
 0x572   : > { %v779_v19 = vsub.f32 %v773_v13, %v778_v18 }
 0x574   : > { %v780_v20 = vmul.f32 %v779_v19, %v779_v19 }
 0x576   : > { %v781_v21 = vsel %vm388_vm1, %v780_v20, 0.0 }
 0x577   : > { %782 = vadd.xlane.f32.xlu0 %v781_v21 }
 0x58d   : > { %807 = vperm.xlu0 %992, %v804_v22  }
 0x600   : > { %v783_v3 = vpop.xlane.xlu0 %782 }
 0x601   : > { %v784_v23 = vmul.f32 0.03125, %v783_v3 }
 0x603   : > { %v785_v24 = vadd.f32 1e-05, %v784_v23 }
 0x605   : > { %1005 = vrsqrt.f32 %v785_v24 }
 0x608   : > { %v808_v30 = vpop.permute.xlu0 %807 }
 0x612   : > { %v1006_v25 = vpop.eup %1005 }
 0x613   : > { %v787_v27 = vmul.f32 %v1006_v25, %v779_v19 }
 0x615   : > { %v795_v29 = vmul.f32 %v913_v26, %v787_v27 }
 0x617   : > { %v803_v31 = vadd.f32 %v914_v28, %v795_v29 }
 0x619   : > { %v810_v32 = vmul.f32 %v808_v30, %v803_v31 }
 0x61b   : > { %811 = vst.msk [vmem:[%s361_s25] sm:$0xff] %vm388_vm1, %v810_v32 }
 0x61c PF: > { %s19_s30 = sadd.s32 1, %s1013_s30  }
 0x61d   : > { %p16_p4 = scmp.ge.s32.totalorder %s19_s30, 4  }
 0x61f   :  { %18 = sbr.rel (!%p16_p4) target bundleno = 1 (0x1), region = 93 }

// kernel: fastspeech_forward.22
= control target key start
LH: loop header
LB: loop body
LE: loop exit
PB: predicated region body
PF: predicated region fallthrough
CT: control target
= control target key end

     0   :  { %s1385_s27 = smov 0   ;;  %s1558_s0 = inlined_call_operand.vmem [shape: f32[2,16,32], index: 0, kind: input, shape index: {}]   ;;  %s1559_s1 = inlined_call_operand.vmem [shape: bf16[9,32,64], index: 1, kind: input, shape index: {}]   ;;  %s1560_s2 = inlined_call_operand.vmem [shape: f32[1,64], index: 2, kind: input, shape index: {}]   ;;  %s1561_s3 = inlined_call_operand.vmem [shape: bf16[1,64,32], index: 3, kind: input, shape index: {}]   ;;  %s1562_s4 = inlined_call_operand.vmem [shape: f32[1,32], index: 4, kind: input, shape index: {}]   ;;  %s1563_s5 = inlined_call_operand.vmem [shape: f32[1,32], index: 5, kind: input, shape index: {}]   ;;  %s1564_s6 = inlined_call_operand.vmem [shape: f32[1,32], index: 6, kind: input, shape index: {}]   ;;  %s1565_s7 = inlined_call_operand.vmem [shape: f32[2,8,1], index: 7, kind: input, shape index: {}]   ;;  %s1566_s8 = inlined_call_operand.vmem [shape: f32[2,8,32], index: 8, kind: output, shape index: {}]  }
   0x1 LB: > { %s1096_s28 = sadd.s32 4294967295, %s1335_s27   ;;  %p1100_p0 = scmp.ge.s32.totalorder %s1335_s27, 1  ;;  %s1335_s27 = sphi %s1385_s27, %s18_s27  }
   0x2   : > { %p271_p1 = scmp.lt.s32.totalorder %s1335_s27, 3 }
   0x4   : > { %p272_p2 = pnand %p1100_p0, %p271_p1 }
   0x5   : > { %p308_p3 = scmp.lt.s32.totalorder (!%p272_p2), %s1096_s28, 1 }
   0x6   : > { %275 = sbr.rel (%p272_p2) target bundleno = 764 (0x2fc), region = 52 }
   0xb   : > { %v1305_v0 = vld [vmem:[%s1559_s1 + $0x18] sm:$0xff]   ;;  %v1337_v1 = vmov 0.0   ;;  %v1306_v2 = vld [vmem:[%s1559_s1 + $0x8] sm:$0xff]   ;;  %v1307_v3 = vld [vmem:[%s1559_s1 + $0x10] sm:$0xff]   ;;  %vm1338_vm0 = vmmov 0   ;;  %s1568_s28 = smov (!%p308_p3, %s1096_s28), 1 }
   0xc   : > { %1208 = vmatprep.subr.bf16.mxu0 %v1337_v1  ;;  %1216 = vmatprep.subr.bf16.mxu1 %v1337_v1  ;;  %v1308_v4 = vld [vmem:[%s1559_s1] sm:$0xff]   ;;  %s1175_s15 = sshll.u32 %s1568_s28, 4  ;;  %v1310_v5 = vld [vmem:[%s1559_s1 + $0x38] sm:$0xff]   ;;  %vm353_vm1 = vcmask 261120   ;;  %v1312_v11 = vld [vmem:[%s1559_s1 + $0x30] sm:$0xff]   ;;  %vm941_vm2 = vcmask 523264  }
   0xd   : > { %1209 = vmatpush3.bf16.msra.mxu0 %v1305_v0  ;;  %1212 = vmatprep.mubr.msk.bf16.mxu0 %vm1338_vm0, %v1337_v1  ;;  %s312_s18 = scalar_lea.vmem %s1558_s0, %s1175_s15  ;;  %v1309_v15 = vld [vmem:[%s1559_s1 + $0x28] sm:$0xff]   ;;  %v1314_v18 = vld [vmem:[%s1559_s1 + $0x58] sm:$0xff]   ;;  %v1311_v19 = vld [vmem:[%s1559_s1 + $0x20] sm:$0xff]   ;;  %vm987_vm3 = vcmask 1043456   ;;  %s1103_s19 = sshll.u32 %s1568_s28, 3 }
   0xe   : > { %1217 = vmatpush3.bf16.msra.mxu1 %v1306_v2  ;;  %1210 = vmatprep.subr.bf16.mxu0 %v1337_v1  ;;  %v1423_v6 = vld [vmem:[%s312_s18] sm:$0xff]  ;;  %v1425_v7 = vld [vmem:[%s312_s18 + $0x8] sm:$0xff]  ;;  %v1316_v21 = vld [vmem:[%s1559_s1 + $0x50] sm:$0xff]   ;;  %s316_s22 = scalar_lea.vmem %s1565_s7, %s1103_s19  ;;  %s320_s30 = scalar_lea.vmem %s1566_s8, %s1103_s19 }
   0xf   : > { %1218 = vmatprep.subr.bf16.mxu1 %v1337_v1  ;;  %1220 = vmatprep.mubr.msk.bf16.mxu1 %vm1338_vm0, %v1337_v1  ;;  %v1430_v8 = vpack.c.bf16 %v1425_v7, %v1423_v6  ;;  %v1313_v24 = vld [vmem:[%s1559_s1 + $0x48] sm:$0xff]   ;;  %v1318_v26 = vld [vmem:[%s1559_s1 + $0x78] sm:$0xff]   ;;  %v1315_v27 = vld [vmem:[%s1559_s1 + $0x40] sm:$0xff]  }
  0x10   : > { %v1320_v30 = vld [vmem:[%s1559_s1 + $0x70] sm:$0xff]   ;;  %v1317_v32 = vld [vmem:[%s1559_s1 + $0x68] sm:$0xff]   ;;  %v1319_v34 = vld [vmem:[%s1559_s1 + $0x60] sm:$0xff]  }
  0x11   : > { %1211 = vmatpush3.bf16.msra.mxu0 %v1307_v3  ;;  %v335_v9 = vshrl.u32 %v1430_v8, 16  ;;  %v337_v10 = vshll.u32 %v1430_v8, 16  ;;  %v457_v20 = vrot.slane %v1430_v8, 1  ;;  %v583_v31 = vrot.slane %v1430_v8, 2  ;;  %v1321_v36 = vld [vmem:[%s1559_s1 + $0x88] sm:$0xff]   ;;  %v1322_v37 = vld [vmem:[%s1559_s1 + $0x80] sm:$0xff]  }
  0x12   : > { %1219 = vmatpush3.bf16.msra.mxu1 %v1308_v4  ;;  %1224 = vmatprep.subr.bf16.mxu0 %v1337_v1  ;;  %v709_v35 = vrot.slane %v1430_v8, 3  ;;  %v835_v38 = vrot.slane %v1430_v8, 4  ;;  %v1323_v39 = vld [vmem:[%s1561_s3 + $0x18] sm:$0xff]   ;;  %v1324_v40 = vld [vmem:[%s1561_s3 + $0x10] sm:$0xff]   ;;  %v1325_v41 = vld [vmem:[%s1561_s3 + $0x8] sm:$0xff]  }
  0x13   : > { %1232 = vmatprep.subr.bf16.mxu1 %v1337_v1  ;;  %v339_v12 = vrot.slane %v337_v10, 1  ;;  %v519_v13 = vrot.slane %v335_v9, 1  ;;  %v520_v14 = vrot.slane %v337_v10, 2  ;;  %v645_v22 = vrot.slane %v335_v9, 2  ;;  %v1326_v42 = vld [vmem:[%s1561_s3] sm:$0xff]  }
  0x14   : > { %v646_v23 = vrot.slane %v337_v10, 3  ;;  %v771_v28 = vrot.slane %v335_v9, 3  ;;  %v772_v29 = vrot.slane %v337_v10, 4 }
  0x15   : > { %1221 = vmatmul.mubr.msk.bf16.vlgmr.msra.gmra.mxu1 %vm353_vm1, %v1430_v8  ;;  %v340_v16 = vor.u32 %v339_v12, %v335_v9  ;;  %v521_v17 = vor.u32 %v520_v14, %v519_v13 }
  0x16   : > { %1233 = vmatpush3.bf16.msra.mxu1 %v1310_v5  ;;  %1236 = vmatprep.mubr.msk.bf16.mxu1 %vm1338_vm0, %v1337_v1  ;;  %v647_v25 = vor.u32 %v646_v23, %v645_v22  ;;  %v773_v33 = vor.u32 %v772_v29, %v771_v28  ;;  %v988_v29 = vrot.slane %v1423_v6, 4  ;;  %v1023_v6 = vld [vmem:[%s316_s22] sm:$0xff] }
  0x17   : > { %1234 = vmatprep.subr.bf16.mxu1 %v1337_v1  ;;  %1213 = vmatmul.mubr.msk.bf16.vlgmr.msra.gmra.mxu0 %vm353_vm1, %v340_v16 }
  0x18   : > { %1225 = vmatpush3.bf16.msra.mxu0 %v1309_v15  ;;  %1228 = vmatprep.mubr.msk.bf16.mxu0 %vm1338_vm0, %v1337_v1 }
  0x19   : > { %1226 = vmatprep.subr.bf16.mxu0 %v1337_v1 }
  0x1a   : > { %1235 = vmatpush3.bf16.msra.mxu1 %v1312_v11 }
  0x1b   : > { %1248 = vmatprep.subr.bf16.mxu1 %v1337_v1 }
  0x1c   : > { %1227 = vmatpush3.bf16.msra.mxu0 %v1311_v19 }
  0x1d   : > { %1237 = vmatmul.mubr.msk.bf16.vlgmr.msra.gmra.mxu1 %vm353_vm1, %v521_v17  ;;  %1240 = vmatprep.subr.bf16.mxu0 %v1337_v1 }
  0x1e   : > { %1249 = vmatpush3.bf16.msra.mxu1 %v1314_v18  ;;  %1252 = vmatprep.mubr.msk.bf16.mxu1 %vm1338_vm0, %v1337_v1 }
  0x1f   : > { %1250 = vmatprep.subr.bf16.mxu1 %v1337_v1  ;;  %1229 = vmatmul.mubr.msk.bf16.vlgmr.msra.gmra.mxu0 %vm353_vm1, %v457_v20 }
  0x20   : > { %1241 = vmatpush3.bf16.msra.mxu0 %v1313_v24  ;;  %1244 = vmatprep.mubr.msk.bf16.mxu0 %vm1338_vm0, %v1337_v1 }
  0x21   : > { %1242 = vmatprep.subr.bf16.mxu0 %v1337_v1 }
  0x22   : > { %1251 = vmatpush3.bf16.msra.mxu1 %v1316_v21  ;;  %v1164_v21 = vld [vmem:[%s1560_s2] ss:$0 sm:$0xff] }
  0x23   : > { %1264 = vmatprep.subr.bf16.mxu1 %v1337_v1 }
  0x24   : > { %1243 = vmatpush3.bf16.msra.mxu0 %v1315_v27 }
  0x25   : > { %1253 = vmatmul.mubr.msk.bf16.vlgmr.msra.gmra.mxu1 %vm353_vm1, %v647_v25  ;;  %1256 = vmatprep.subr.bf16.mxu0 %v1337_v1 }
  0x26   : > { %1265 = vmatpush3.bf16.msra.mxu1 %v1318_v26  ;;  %1268 = vmatprep.mubr.msk.bf16.mxu1 %vm1338_vm0, %v1337_v1 }
  0x27   : > { %1266 = vmatprep.subr.bf16.mxu1 %v1337_v1  ;;  %1245 = vmatmul.mubr.msk.bf16.vlgmr.msra.gmra.mxu0 %vm353_vm1, %v583_v31  ;;  %v1165_v31 = vld [vmem:[%s1562_s4] ss:$0 sm:$0xff] }
  0x28   : > { %1257 = vmatpush3.bf16.msra.mxu0 %v1317_v32  ;;  %1260 = vmatprep.mubr.msk.bf16.mxu0 %vm1338_vm0, %v1337_v1 }
  0x29   : > { %1258 = vmatprep.subr.bf16.mxu0 %v1337_v1 }
  0x2a   : > { %1267 = vmatpush3.bf16.msra.mxu1 %v1320_v30  ;;  %v989_v30 = vrot.slane %v1425_v7, 4 }
  0x2b   : > { %1280 = vmatprep.subr.bf16.mxu1 %v1337_v1 }
  0x2c   : > { %1259 = vmatpush3.bf16.msra.mxu0 %v1319_v34 }
  0x2d   : > { %1269 = vmatmul.mubr.msk.bf16.vlgmr.msra.gmra.mxu1 %vm353_vm1, %v773_v33  ;;  %1272 = vmatprep.subr.bf16.mxu0 %v1337_v1  ;;  %v990_v33 = vsel %vm987_vm3, %v988_v29, %v989_v30 }
  0x2e   : > { %1288 = vmatprep.mubr.msk.bf16.mxu1 %vm1338_vm0, %v1337_v1  ;;  %1281 = vmatpush3.bf16.msra.mxu1 %v1323_v39 }
  0x2f   : > { %1261 = vmatmul.mubr.msk.bf16.vlgmr.msra.gmra.mxu0 %vm353_vm1, %v709_v35  ;;  %1282 = vmatprep.subr.bf16.mxu1 %v1337_v1 }
  0x30   : > { %1273 = vmatpush3.bf16.msra.mxu0 %v1321_v36  ;;  %1276 = vmatprep.mubr.msk.bf16.mxu0 %vm1338_vm0, %v1337_v1 }
  0x31   : > { %1274 = vmatprep.subr.bf16.mxu0 %v1337_v1 }
  0x32   : > { %1283 = vmatpush3.bf16.msra.mxu1 %v1324_v40  ;;  %v1339_v40 = vmov 0  }
  0x33   : > { %1284 = vmatprep.subr.bf16.mxu1 %v1337_v1  ;;  %1303 = vset.pattern.permute.xlu1 %v1339_v40 }
  0x34   : > { %1275 = vmatpush3.bf16.msra.mxu0 %v1322_v37  ;;  %1304 = vset.pattern.permute.xlu0 %v1339_v40 }
  0x35   : > { %1026 = vperm.xlu1 %1303, %v1023_v6  }
  0x36   : > { %1285 = vmatpush3.bf16.msra.mxu1 %v1325_v41 }
  0x37   : > { %1277 = vmatmul.mubr.msk.bf16.vlgmr.msra.gmra.mxu0 %vm353_vm1, %v835_v38  ;;  %1286 = vmatprep.subr.bf16.mxu1 %v1337_v1 }
  0x3a   : > { %1287 = vmatpush3.bf16.msra.mxu1 %v1326_v42 }
  0xd5   : > { %v445_v43 = vpop.f32.mrf.mxu1 }
  0xd7   : > { %v1222_v44 = vpop.f32.mrf.mxu1  ;;  %v391_v46 = vpop.f32.mrf.mxu0 }
  0xd8   : > { %v446_v60 = vadd.f32 %v445_v43, %v391_v46 }
  0xd9   : > { %v448_v45 = vpop.f32.mrf.mxu1  ;;  %v1214_v48 = vpop.f32.mrf.mxu0 }
  0xdb   : > { %v1223_v47 = vpop.f32.mrf.mxu1  ;;  %v394_v50 = vpop.f32.mrf.mxu0 }
  0xdd   : > { %v571_v49 = vpop.f32.mrf.mxu1  ;;  %v1215_v52 = vpop.f32.mrf.mxu0 }
  0xdf   : > { %v1238_v51 = vpop.f32.mrf.mxu1  ;;  %v507_v54 = vpop.f32.mrf.mxu0 }
  0xe0   : > { %v513_v63 = vadd.f32 %v507_v54, %v446_v60  ;;  %v1172_v51 = vld [vmem:[%s1564_s6] ss:$0 sm:$0xff] }
  0xe1   : > { %v574_v53 = vpop.f32.mrf.mxu1  ;;  %v1230_v56 = vpop.f32.mrf.mxu0 }
  0xe2   : > { %v577_v4 = vadd.f32 %v571_v49, %v513_v63  ;;  %v1171_v49 = vld [vmem:[%s1563_s5] ss:$0 sm:$0xff]  ;;  %v1027_v53 = vpop.permute.xlu1 %1026 }
  0xe3   : > { %v1239_v55 = vpop.f32.mrf.mxu1  ;;  %v510_v58 = vpop.f32.mrf.mxu0 }
  0xe5   : > { %v697_v57 = vpop.f32.mrf.mxu1  ;;  %v1231_v61 = vpop.f32.mrf.mxu0 }
  0xe7   : > { %v1254_v59 = vpop.f32.mrf.mxu1  ;;  %v633_v0 = vpop.f32.mrf.mxu0 }
  0xe8   : > { %v639_v9 = vadd.f32 %v633_v0, %v577_v4 }
  0xe9   : > { %v700_v62 = vpop.f32.mrf.mxu1  ;;  %v1246_v2 = vpop.f32.mrf.mxu0 }
  0xea   : > { %v703_v14 = vadd.f32 %v697_v57, %v639_v9 }
  0xeb   : > { %v1255_v1 = vpop.f32.mrf.mxu1  ;;  %v636_v5 = vpop.f32.mrf.mxu0 }
  0xed   : > { %v823_v3 = vpop.f32.mrf.mxu1  ;;  %v1247_v10 = vpop.f32.mrf.mxu0 }
  0xef   : > { %v1270_v8 = vpop.f32.mrf.mxu1  ;;  %v759_v12 = vpop.f32.mrf.mxu0 }
  0xf0   : > { %v765_v16 = vadd.f32 %v759_v12, %v703_v14 }
  0xf1   : > { %v826_v11 = vpop.f32.mrf.mxu1  ;;  %v1262_v15 = vpop.f32.mrf.mxu0 }
  0xf2   : > { %v829_v19 = vadd.f32 %v823_v3, %v765_v16 }
  0xf3   : > { %v1271_v13 = vpop.f32.mrf.mxu1  ;;  %v762_v17 = vpop.f32.mrf.mxu0 }
  0xf5   : > { %v1263_v18 = vpop.f32.mrf.mxu0 }
  0xf7   : > { %v885_v20 = vpop.f32.mrf.mxu0 }
  0xf8   : > { %v891_v22 = vadd.f32 %v885_v20, %v829_v19 }
  0xf9   : > { %v1278_v23 = vpop.f32.mrf.mxu0 }
  0xfa   : > { %v899_v24 = vadd.f32 %v1164_v21, %v891_v22 }
  0xfb   : > { %v888_v25 = vpop.f32.mrf.mxu0 }
  0xfc   : > { %v900_v26 = vmax.f32 %v899_v24, 0.0 }
  0xfd   : > { %v1279_v27 = vpop.f32.mrf.mxu0 }
  0xfe   : > { %v901_v28 = vpack.c.bf16 %v900_v26, %v900_v26 }
 0x100   : > { %1289 = vmatmul.mubr.msk.bf16.vlgmr.msra.gmra.mxu1 %vm941_vm2, %v901_v28 }
 0x1c0   : > { %v979_v32 = vpop.f32.mrf.mxu1 }
 0x1c1   : > { %v980_v34 = vadd.f32 %v1165_v31, %v979_v32 }
 0x1c2   : > { %v1290_v35 = vpop.f32.mrf.mxu1 }
 0x1c3   : > { %v992_v36 = vadd.f32 %v990_v33, %v980_v34 }
 0x1c4   : > { %v982_v37 = vpop.f32.mrf.mxu1 }
 0x1c5   : > { %v993_v38 = vsel %vm353_vm1, %v992_v36, 0.0 }
 0x1c6   : > { %994 = vadd.xlane.f32.xlu0 %v993_v38  ;;  %v1291_v39 = vpop.f32.mrf.mxu1 }
 0x24f   : > { %v995_v7 = vpop.xlane.xlu0 %994 }
 0x250   : > { %v997_v41 = vmul.f32 0.03125, %v995_v7 }
 0x252   : > { %v998_v42 = vsub.f32 %v992_v36, %v997_v41 }
 0x254   : > { %v999_v43 = vmul.f32 %v998_v42, %v998_v42 }
 0x256   : > { %v1000_v44 = vsel %vm353_vm1, %v999_v43, 0.0 }
 0x257   : > { %1001 = vadd.xlane.f32.xlu0 %v1000_v44 }
 0x2e0   : > { %v1002_v45 = vpop.xlane.xlu0 %1001 }
 0x2e1   : > { %v1003_v46 = vmul.f32 0.03125, %v1002_v45 }
 0x2e3   : > { %v1004_v47 = vadd.f32 1e-05, %v1003_v46 }
 0x2e5   : > { %1327 = vrsqrt.f32 %v1004_v47 }
 0x2f2   : > { %v1328_v48 = vpop.eup %1327 }
 0x2f3   : > { %v1006_v50 = vmul.f32 %v1328_v48, %v998_v42 }
 0x2f5   : > { %v1014_v52 = vmul.f32 %v1171_v49, %v1006_v50 }
 0x2f7   : > { %v1022_v54 = vadd.f32 %v1172_v51, %v1014_v52 }
 0x2f9   : > { %v1029_v55 = vmul.f32 %v1027_v53, %v1022_v54 }
 0x2fb   : > { %1030 = vst.msk [vmem:[%s320_s30] sm:$0xff] %vm353_vm1, %v1029_v55 }
 0x2fc PF: > { %s18_s27 = sadd.s32 1, %s1335_s27  }
 0x2fd   : > { %p15_p4 = scmp.ge.s32.totalorder %s18_s27, 4  }
 0x2ff   :  { %17 = sbr.rel (!%p15_p4) target bundleno = 1 (0x1), region = 93 }

// kernel: fastspeech_forward.28
= control target key start
LH: loop header
LB: loop body
LE: loop exit
PB: predicated region body
PF: predicated region fallthrough
CT: control target
= control target key end

     0   :  { %s1159_s30 = smov 0   ;;  %s1273_s0 = inlined_call_operand.vmem [shape: f32[2,16,32], index: 0, kind: input, shape index: {}]   ;;  %s1274_s1 = inlined_call_operand.vmem [shape: bf16[32,96], index: 1, kind: input, shape index: {}]   ;;  %s1275_s2 = inlined_call_operand.vmem [shape: f32[1,96], index: 2, kind: input, shape index: {}]   ;;  %s1276_s3 = inlined_call_operand.vmem [shape: bf16[2,16,32], index: 3, kind: input, shape index: {}]   ;;  %s1277_s4 = inlined_call_operand.vmem [shape: f32[1,32], index: 4, kind: input, shape index: {}]   ;;  %s1278_s5 = inlined_call_operand.vmem [shape: f32[1,32], index: 5, kind: input, shape index: {}]   ;;  %s1279_s6 = inlined_call_operand.vmem [shape: f32[1,32], index: 6, kind: input, shape index: {}]   ;;  %s1280_s7 = inlined_call_operand.vmem [shape: f32[2,16,16], index: 7, kind: input, shape index: {}]   ;;  %s1281_s8 = inlined_call_operand.vmem [shape: f32[2,16,1], index: 8, kind: input, shape index: {}]   ;;  %s1282_s9 = inlined_call_operand.vmem [shape: f32[2,16,32], index: 9, kind: output, shape index: {}]  }
   0x1 LB: > { %s956_s10 = sadd.s32 4294967295, %s1099_s30   ;;  %p960_p0 = scmp.ge.s32.totalorder %s1099_s30, 1  ;;  %s1099_s30 = sphi %s1159_s30, %s19_s30  }
   0x2   : > { %p307_p1 = scmp.lt.s32.totalorder %s1099_s30, 3 }
   0x4   : > { %p308_p2 = pnand %p960_p0, %p307_p1 }
   0x5   : > { %p353_p3 = scmp.lt.s32.totalorder (!%p308_p2), %s956_s10, 1  ;;  %s1103_s21 = smov (!%p308_p2), 112  }
   0x6   : > { %311 = sbr.rel (%p308_p2) target bundleno = 1580 (0x62c), region = 56  ;;  %s1104_s22 = smov (!%p308_p2), 96  }
   0x7   : > { %s1105_s23 = smov (!%p308_p2), 80   ;;  %s1106_s27 = smov (!%p308_p2), 48  }
   0x8   : > { %s1107_s28 = smov (!%p308_p2), 64  }
   0xb   : > { %v1069_v0 = vld [vmem:[%s1274_s1 + $0x8] sm:$0xff]   ;;  %v1101_v1 = vmov 0.0   ;;  %v1070_v2 = vld [vmem:[%s1274_s1] sm:$0xff]   ;;  %vm1102_vm0 = vmmov 0   ;;  %s1284_s10 = smov (!%p353_p3, %s956_s10), 1  ;;  %vm400_vm1 = vcmask 261120  }
   0xc   : > { %1007 = vmatprep.subr.bf16.mxu0 %v1101_v1  ;;  %1015 = vmatprep.subr.bf16.mxu1 %v1101_v1  ;;  %s1180_s15 = sshll.u32 %s1284_s10, 4  ;;  %v969_v7 = vld [vmem:[%s1275_s2] ss:$0 sm:$0xff]  ;;  %vm451_vm2 = vcmask 130048  }
   0xd   : > { %1008 = vmatpush3.bf16.msra.mxu0 %v1069_v0  ;;  %1011 = vmatprep.mubr.msk.bf16.mxu0 %vm1102_vm0, %v1101_v1  ;;  %s357_s18 = scalar_lea.vmem %s1273_s0, %s1180_s15  ;;  %s362_s26 = scalar_lea.vmem %s1280_s7, %s1180_s15 }
   0xe   : > { %1009 = vmatprep.subr.bf16.mxu0 %v1101_v1  ;;  %1017 = vmatprep.mubr.msk.bf16.mxu1 %vm1102_vm0, %v1101_v1  ;;  %v1187_v3 = vld [vmem:[%s357_s18] sm:$0xff]  ;;  %v1189_v4 = vld [vmem:[%s357_s18 + $0x8] sm:$0xff]  ;;  %s367_s18 = scalar_lea.vmem %s1281_s8, %s1180_s15  ;;  %s372_s25 = scalar_lea.vmem %s1282_s9, %s1180_s15 }
   0xf   : > { %v376_v5 = vpack.c.bf16 %v1189_v4, %v1187_v3  ;;  %v445_v20 = vld [vmem:[%s362_s26] sm:$0xff]  ;;  %v446_v25 = vld [vmem:[%s362_s26 + $0x8] sm:$0xff] }
  0x11   : > { %1010 = vmatpush3.bf16.msra.mxu0 %v1070_v2 }
  0x12   : > { %1021 = vmatprep.subr.bf16.mxu0 %v1101_v1 }
  0x14   : > { %1012 = vmatmul.mubr.msk.bf16.vlgmr.msra.gmra.mxu0 %vm400_vm1, %v376_v5 }
  0x15   : > { %1023 = vmatprep.mubr.msk.bf16.mxu0 %vm1102_vm0, %v1101_v1 }
  0xd4   : > { %v438_v6 = vpop.f32.mrf.mxu0 }
  0xd5   : > { %v439_v10 = vadd.f32 %v969_v7, %v438_v6 }
  0xd6   : > { %v1013_v8 = vpop.f32.mrf.mxu0 }
  0xd8   : > { %v441_v9 = vpop.f32.mrf.mxu0 }
  0xd9   : > { %v442_v11 = vadd.f32 %v969_v7, %v441_v9 }
  0xda   : > { %v1014_v12 = vpop.f32.mrf.mxu0 }
  0xdb   : > { %v1199_v13 = vpack.c.bf16 %v442_v11, %v439_v10 }
  0xdd   : > { %576 = vrot.lane.b32.xlu1 %v1199_v13, %s1103_s21  ;;  %449 = vrot.lane.b32.xlu0 %v1199_v13, %s1104_s22 }
  0xe1   : > { %578 = vrot.lane.b32.xlu0 %v1199_v13, %s1105_s23 }
 0x14f   : > { %v450_v14 = vpop.permute.xlu0 %449  ;;  %v577_v18 = vpop.permute.xlu1 %576 }
 0x150   : > { %v456_v15 = vsel %vm451_vm2, %v450_v14, 0 }
 0x151   : > { %1016 = vmatpush3.bf16.xpose.msra.mxu1 %v456_v15 }
 0x152   : > { %1027 = vmatprep.subr.bf16.mxu1 %v1101_v1 }
 0x153   : > { %v579_v16 = vpop.permute.xlu0 %578 }
 0x154   : > { %v584_v17 = vsel %vm451_vm2, %v579_v16, 0  ;;  %v1071_v16 = vld [vmem:[%s1276_s3] sm:$0xff]  }
 0x158   : > { %1018 = vmatmul.mubr.msk.bf16.vlgmr.msra.gmra.mxu1 %vm451_vm2, %v1199_v13 }
 0x159   : > { %1028 = vmatpush3.bf16.xpose.msra.mxu1 %v584_v17  ;;  %1029 = vmatprep.mubr.msk.bf16.mxu1 %vm1102_vm0, %v1101_v1  ;;  %v1072_v17 = vld [vmem:[%s1276_s3 + $0x8] sm:$0xff]  }
 0x15a   : > { %1039 = vmatprep.subr.bf16.mxu1 %v1101_v1 }
 0x160   : > { %1030 = vmatmul.mubr.msk.bf16.vlgmr.msra.gmra.mxu1 %vm451_vm2, %v577_v18 }
 0x161   : > { %1041 = vmatprep.mubr.msk.bf16.mxu1 %vm1102_vm0, %v1101_v1  ;;  %1040 = vmatpush3.bf16.msra.mxu1 %v1072_v17 }
 0x218   : > { %v492_v19 = vpop.f32.mrf.mxu1 }
 0x219   : > { %v499_v21 = vmul.f32 0.25, %v492_v19 }
 0x21a   : > { %v1019_v22 = vpop.f32.mrf.mxu1 }
 0x21b   : > { %v501_v23 = vadd.f32 %v499_v21, %v445_v20 }
 0x21c   : > { %v495_v24 = vpop.f32.mrf.mxu1 }
 0x21d   : > { %v500_v26 = vmul.f32 0.25, %v495_v24  ;;  %v503_v27 = vsel %vm451_vm2, %v501_v23, -inf }
 0x21e   : > { %504 = vmax.xlane.f32.xlu1 %v503_v27  ;;  %v1020_v28 = vpop.f32.mrf.mxu1 }
 0x21f   : > { %v502_v29 = vadd.f32 %v500_v26, %v446_v25 }
 0x220   : > { %v620_v30 = vpop.f32.mrf.mxu1 }
 0x221   : > { %v627_v31 = vmul.f32 0.25, %v620_v30  ;;  %v506_v32 = vsel %vm451_vm2, %v502_v29, -inf }
 0x222   : > { %507 = vmax.xlane.f32.xlu0 %v506_v32  ;;  %v1031_v33 = vpop.f32.mrf.mxu1  ;;  %v983_v32 = vld [vmem:[%s1277_s4] ss:$0 sm:$0xff] }
 0x223   : > { %v629_v34 = vadd.f32 %v627_v31, %v445_v20 }
 0x224   : > { %v623_v35 = vpop.f32.mrf.mxu1 }
 0x225   : > { %v628_v36 = vmul.f32 0.25, %v623_v35  ;;  %v631_v37 = vsel %vm451_vm2, %v629_v34, -inf }
 0x226   : > { %632 = vmax.xlane.f32.xlu0 %v631_v37  ;;  %v1032_v38 = vpop.f32.mrf.mxu1 }
 0x227   : > { %v630_v39 = vadd.f32 %v628_v36, %v446_v25 }
 0x229   : > { %v634_v40 = vsel %vm451_vm2, %v630_v39, -inf }
 0x22a   : > { %635 = vmax.xlane.f32.xlu1 %v634_v40 }
 0x2a7   : > { %v505_v41 = vpop.xlane.xlu1 %504 }
 0x2a8   : > { %v509_v42 = vsub.f32 %v501_v23, %v505_v41 }
 0x2aa   : > { %v511_v43 = vmul.f32 1.442695, %v509_v42 }
 0x2ab   : > { %v508_v44 = vpop.xlane.xlu0 %507 }
 0x2ac   : > { %1073 = vpow2.f32 %v511_v43  ;;  %v510_v45 = vsub.f32 %v502_v29, %v508_v44  ;;  %v1108_v44 = vmov 0  }
 0x2ad   : > { %1067 = vset.pattern.permute.xlu0 %v1108_v44  ;;  %1068 = vset.pattern.permute.xlu1 %v1108_v44 }
 0x2ae   : > { %v513_v46 = vmul.f32 1.442695, %v510_v45 }
 0x2af   : > { %v633_v47 = vpop.xlane.xlu0 %632 }
 0x2b0   : > { %1075 = vpow2.f32 %v513_v46  ;;  %v637_v48 = vsub.f32 %v629_v34, %v633_v47 }
 0x2b2   : > { %v639_v49 = vmul.f32 1.442695, %v637_v48 }
 0x2b3   : > { %v636_v50 = vpop.xlane.xlu1 %635 }
 0x2b4   : > { %1077 = vpow2.f32 %v639_v49  ;;  %v638_v51 = vsub.f32 %v630_v39, %v636_v50 }
 0x2b6   : > { %v641_v52 = vmul.f32 1.442695, %v638_v51 }
 0x2b8   : > { %1079 = vpow2.f32 %v641_v52 }
 0x2b9   : > { %v1074_v53 = vpop.eup %1073 }
 0x2ba   : > { %v515_v54 = vsel %vm451_vm2, %v1074_v53, 0.0 }
 0x2bb   : > { %516 = vadd.xlane.f32.xlu0 %v515_v54  ;;  %v861_v54 = vld [vmem:[%s367_s18] sm:$0xff] }
 0x2bd   : > { %v1076_v55 = vpop.eup %1075 }
 0x2be   : > { %v518_v56 = vsel %vm451_vm2, %v1076_v55, 0.0 }
 0x2bf   : > { %519 = vadd.xlane.f32.xlu1 %v518_v56 }
 0x2c1   : > { %v1078_v57 = vpop.eup %1077 }
 0x2c2   : > { %v643_v58 = vsel %vm451_vm2, %v1078_v57, 0.0 }
 0x2c3   : > { %644 = vadd.xlane.f32.xlu0 %v643_v58 }
 0x2c5   : > { %v1080_v59 = vpop.eup %1079 }
 0x2c6   : > { %v646_v60 = vsel %vm451_vm2, %v1080_v59, 0.0 }
 0x2c7   : > { %647 = vadd.xlane.f32.xlu1 %v646_v60 }
 0x2d8   : > { %654 = vrot.lane.b32.xlu1 %v1199_v13, %s1106_s27 }
 0x2d9   : > { %526 = vrot.lane.b32.xlu0 %v1199_v13, %s1107_s28 }
 0x344   : > { %v517_v61 = vpop.xlane.xlu0 %516 }
 0x345   : > { %1081 = vrcp.f32 %v517_v61 }
 0x348   : > { %v520_v62 = vpop.xlane.xlu1 %519 }
 0x349   : > { %1083 = vrcp.f32 %v520_v62  ;;  %v984_v62 = vld [vmem:[%s1278_s5] ss:$0 sm:$0xff] }
 0x34c   : > { %v645_v63 = vpop.xlane.xlu0 %644 }
 0x34d   : > { %1085 = vrcp.f32 %v645_v63 }
 0x350   : > { %v648_v0 = vpop.xlane.xlu1 %647  ;;  %v527_v2 = vpop.permute.xlu0 %526 }
 0x351   : > { %1087 = vrcp.f32 %v648_v0  ;;  %1022 = vmatpush3.bf16.msra.mxu0 %v527_v2  ;;  %v985_v0 = vld [vmem:[%s1279_s6] ss:$0 sm:$0xff] }
 0x352   : > { %1033 = vmatprep.subr.bf16.mxu0 %v1101_v1  ;;  %v1082_v5 = vpop.eup %1081 }
 0x353   : > { %v523_v7 = vmul.f32 %v1082_v5, %v1074_v53  ;;  %v862_v53 = vld [vmem:[%s367_s18 + $0x8] sm:$0xff] }
 0x354   : > { %v655_v10 = vpop.permute.xlu1 %654 }
 0x356   : > { %v1084_v6 = vpop.eup %1083 }
 0x357   : > { %v524_v8 = vmul.f32 %v1084_v6, %v1076_v55 }
 0x359   : > { %v525_v9 = vpack.c.bf16 %v524_v8, %v523_v7 }
 0x35a   : > { %v1086_v11 = vpop.eup %1085 }
 0x35b   : > { %1024 = vmatmul.mubr.msk.bf16.vlgmr.msra.gmra.mxu0 %vm451_vm2, %v525_v9  ;;  %v651_v13 = vmul.f32 %v1086_v11, %v1078_v57 }
 0x35c   : > { %1034 = vmatpush3.bf16.msra.mxu0 %v655_v10  ;;  %1035 = vmatprep.mubr.msk.bf16.mxu0 %vm1102_vm0, %v1101_v1 }
 0x35d   : > { %1045 = vmatprep.subr.bf16.mxu0 %v1101_v1 }
 0x35e   : > { %v1088_v12 = vpop.eup %1087 }
 0x35f   : > { %v652_v14 = vmul.f32 %v1088_v12, %v1080_v59 }
 0x361   : > { %v653_v15 = vpack.c.bf16 %v652_v14, %v651_v13 }
 0x363   : > { %1036 = vmatmul.mubr.msk.bf16.vlgmr.msra.gmra.mxu0 %vm451_vm2, %v653_v15 }
 0x364   : > { %1047 = vmatprep.mubr.msk.bf16.mxu0 %vm1102_vm0, %v1101_v1  ;;  %1046 = vmatpush3.bf16.msra.mxu0 %v1071_v16 }
 0x41b   : > { %v566_v18 = vpop.f32.mrf.mxu0 }
 0x41d   : > { %v1025_v19 = vpop.f32.mrf.mxu0 }
 0x41f   : > { %v569_v20 = vpop.f32.mrf.mxu0 }
 0x420   : > { %v573_v21 = vpack.c.bf16 %v569_v20, %v566_v18 }
 0x421   : > { %v1026_v22 = vpop.f32.mrf.mxu0 }
 0x422   : > { %1048 = vmatmul.mubr.msk.bf16.vlgmr.msra.gmra.mxu0 %vm451_vm2, %v573_v21 }
 0x423   : > { %v694_v23 = vpop.f32.mrf.mxu0 }
 0x425   : > { %v1037_v24 = vpop.f32.mrf.mxu0 }
 0x427   : > { %v697_v1 = vpop.f32.mrf.mxu0 }
 0x428   : > { %v701_v25 = vpack.c.bf16 %v697_v1, %v694_v23 }
 0x429   : > { %v1038_v26 = vpop.f32.mrf.mxu0 }
 0x42a   : > { %1042 = vmatmul.mubr.msk.bf16.vlgmr.msra.gmra.mxu1 %vm451_vm2, %v701_v25 }
 0x4e2   : > { %v798_v27 = vpop.f32.mrf.mxu0 }
 0x4e4   : > { %v1049_v28 = vpop.f32.mrf.mxu0 }
 0x4e6   : > { %v801_v29 = vpop.f32.mrf.mxu0 }
 0x4e8   : > { %v1050_v30 = vpop.f32.mrf.mxu0 }
 0x4ea   : > { %v748_v31 = vpop.f32.mrf.mxu1 }
 0x4eb   : > { %v799_v33 = vadd.f32 %v798_v27, %v748_v31 }
 0x4ec   : > { %v1043_v34 = vpop.f32.mrf.mxu1 }
 0x4ed   : > { %v812_v35 = vadd.f32 %v983_v32, %v799_v33 }
 0x4ee   : > { %v751_v36 = vpop.f32.mrf.mxu1 }
 0x4ef   : > { %v802_v37 = vadd.f32 %v801_v29, %v751_v36  ;;  %v814_v38 = vadd.f32 %v812_v35, %v1187_v3 }
 0x4f0   : > { %v1044_v39 = vpop.f32.mrf.mxu1 }
 0x4f1   : > { %v813_v40 = vadd.f32 %v983_v32, %v802_v37  ;;  %v816_v41 = vsel %vm400_vm1, %v814_v38, 0.0 }
 0x4f2   : > { %817 = vadd.xlane.f32.xlu1 %v816_v41 }
 0x4f3   : > { %v815_v42 = vadd.f32 %v813_v40, %v1189_v4 }
 0x4f5   : > { %v819_v43 = vsel %vm400_vm1, %v815_v42, 0.0 }
 0x4f6   : > { %820 = vadd.xlane.f32.xlu0 %v819_v43 }
 0x57b   : > { %v818_v45 = vpop.xlane.xlu1 %817 }
 0x57c   : > { %v823_v46 = vmul.f32 0.03125, %v818_v45 }
 0x57e   : > { %v825_v47 = vsub.f32 %v814_v38, %v823_v46 }
 0x57f   : > { %v821_v48 = vpop.xlane.xlu0 %820 }
 0x580   : > { %v824_v49 = vmul.f32 0.03125, %v821_v48  ;;  %v827_v3 = vmul.f32 %v825_v47, %v825_v47 }
 0x582   : > { %v826_v50 = vsub.f32 %v815_v42, %v824_v49  ;;  %v829_v51 = vsel %vm400_vm1, %v827_v3, 0.0 }
 0x583   : > { %830 = vadd.xlane.f32.xlu0 %v829_v51 }
 0x584   : > { %v828_v52 = vmul.f32 %v826_v50, %v826_v50 }
 0x586   : > { %v832_v4 = vsel %vm400_vm1, %v828_v52, 0.0 }
 0x587   : > { %833 = vadd.xlane.f32.xlu1 %v832_v4 }
 0x598   : > { %870 = vperm.xlu1 %1068, %v862_v53  }
 0x599   : > { %865 = vperm.xlu0 %1067, %v861_v54  }
 0x60c   : > { %v831_v55 = vpop.xlane.xlu0 %830 }
 0x60d   : > { %v835_v56 = vmul.f32 0.03125, %v831_v55 }
 0x60f   : > { %v837_v57 = vadd.f32 1e-05, %v835_v56 }
 0x610   : > { %v834_v58 = vpop.xlane.xlu1 %833 }
 0x611   : > { %1089 = vrsqrt.f32 %v837_v57  ;;  %v836_v59 = vmul.f32 0.03125, %v834_v58 }
 0x613   : > { %v838_v60 = vadd.f32 1e-05, %v836_v59 }
 0x614   : > { %v866_v6 = vpop.permute.xlu0 %865  ;;  %v871_v11 = vpop.permute.xlu1 %870 }
 0x615   : > { %1091 = vrsqrt.f32 %v838_v60 }
 0x61e   : > { %v1090_v61 = vpop.eup %1089 }
 0x61f   : > { %v841_v63 = vmul.f32 %v1090_v61, %v825_v47 }
 0x621   : > { %v850_v2 = vmul.f32 %v984_v62, %v841_v63 }
 0x622   : > { %v1092_v5 = vpop.eup %1091 }
 0x623   : > { %v859_v7 = vadd.f32 %v985_v0, %v850_v2  ;;  %v842_v8 = vmul.f32 %v1092_v5, %v826_v50 }
 0x625   : > { %v873_v9 = vmul.f32 %v866_v6, %v859_v7  ;;  %v851_v10 = vmul.f32 %v984_v62, %v842_v8 }
 0x627   : > { %875 = vst.msk [vmem:[%s372_s25] sm:$0xff] %vm400_vm1, %v873_v9  ;;  %v860_v12 = vadd.f32 %v985_v0, %v851_v10 }
 0x629   : > { %v874_v13 = vmul.f32 %v871_v11, %v860_v12 }
 0x62b   : > { %876 = vst.msk [vmem:[%s372_s25 + $0x8] sm:$0xff] %vm400_vm1, %v874_v13 }
 0x62c PF: > { %s19_s30 = sadd.s32 1, %s1099_s30  }
 0x62d   : > { %p16_p4 = scmp.ge.s32.totalorder %s19_s30, 4  }
 0x62f   :  { %18 = sbr.rel (!%p16_p4) target bundleno = 1 (0x1), region = 93 }

// kernel: fastspeech_forward.32
= control target key start
LH: loop header
LB: loop body
LE: loop exit
PB: predicated region body
PF: predicated region fallthrough
CT: control target
= control target key end

     0   :  { %v174_v1 = vmov 0   ;;  %vm55_vm0 = vcmask 261120   ;;  %vm139_vm1 = vcmask 130048   ;;  %s245_s1 = inlined_call_operand.vmem [shape: bf16[32,16], index: 1, kind: input, shape index: {}]   ;;  %s246_s0 = inlined_call_operand.vmem [shape: bf16[32,32], index: 0, kind: input, shape index: {}]   ;;  %s247_s3 = inlined_call_operand.vmem [shape: f32[32,1], index: 3, kind: input, shape index: {}]   ;;  %s248_s2 = inlined_call_operand.vmem [shape: f32[1,16], index: 2, kind: input, shape index: {}]   ;;  %s249_s4 = inlined_call_operand.vmem [shape: f32[32,16], index: 4, kind: output, shape index: {}]  }
   0x1   :  { %v170_v0 = vld [vmem:[%s245_s1 + $0x8] sm:$0xff]   ;;  %169 = vset.pattern.permute.xlu1 %v174_v1  ;;  %168 = vset.pattern.permute.xlu0 %v174_v1  ;;  %v171_v2 = vld [vmem:[%s245_s1] sm:$0xff]   ;;  %v113_v4 = vld [vmem:[%s247_s3 + $0x10] sm:$0xff] }
   0x2   :  { %159 = vmatprep.subr.bf16.mxu0 %v170_v0  ;;  %v172_v3 = vld [vmem:[%s246_s0] sm:$0xff]   ;;  %127 = vperm.xlu1 %169, %v113_v4   ;;  %v173_v6 = vld [vmem:[%s246_s0 + $0x8] sm:$0xff]   ;;  %v114_v7 = vld [vmem:[%s247_s3 + $0x18] sm:$0xff] }
   0x3   :  { %160 = vmatpush3.bf16.msra.mxu0 %v170_v0  ;;  %163 = vmatprep.mubr.msk.bf16.mxu0 %vm55_vm0, %v172_v3  ;;  %v111_v5 = vld [vmem:[%s247_s3] sm:$0xff]  ;;  %v112_v8 = vld [vmem:[%s247_s3 + $0x8] sm:$0xff] }
   0x4   :  { %161 = vmatprep.subr.bf16.mxu0 %v171_v2  ;;  %117 = vperm.xlu0 %168, %v111_v5   ;;  %v148_v9 = vld [vmem:[%s248_s2] ss:$0 sm:$0xff] }
   0x6   :  { %132 = vperm.xlu1 %169, %v114_v7  }
   0x7   :  { %162 = vmatpush3.bf16.msra.mxu0 %v171_v2 }
   0x8   :  { %122 = vperm.xlu0 %168, %v112_v8  }
   0xa   :  { %164 = vmatmul.mubr.msk.bf16.vlgmr.msra.gmra.mxu0 %vm55_vm0, %v173_v6 }
  0x7d   :  { %v128_v10 = vpop.permute.xlu1 %127 }
  0x7f   :  { %v118_v13 = vpop.permute.xlu0 %117 }
  0x81   :  { %v133_v20 = vpop.permute.xlu1 %132 }
  0x83   :  { %v123_v24 = vpop.permute.xlu0 %122 }
  0xca   :  { %v165_v11 = vpop.f32.mrf.mxu0 }
  0xcb   :  { %v105_v12 = vadd.f32 %v165_v11, %v148_v9 }
  0xcc   :  { %v96_v14 = vpop.f32.mrf.mxu0 }
  0xcd   :  { %v137_v15 = vmul.f32 %v128_v10, %v105_v12  ;;  %v97_v16 = vadd.f32 %v148_v9, %v96_v14 }
  0xce   :  { %v166_v17 = vpop.f32.mrf.mxu0 }
  0xcf   :  { %142 = vst.msk [vmem:[%s249_s4 + $0x10] sm:$0xff] %vm139_vm1, %v137_v15  ;;  %v135_v18 = vmul.f32 %v118_v13, %v97_v16  ;;  %v108_v19 = vadd.f32 %v166_v17, %v148_v9 }
  0xd0   :  { %v99_v21 = vpop.f32.mrf.mxu0 }
  0xd1   :  { %140 = vst.msk [vmem:[%s249_s4] sm:$0xff] %vm139_vm1, %v135_v18  ;;  %v138_v22 = vmul.f32 %v133_v20, %v108_v19  ;;  %v100_v23 = vadd.f32 %v148_v9, %v99_v21 }
  0xd3   :  { %143 = vst.msk [vmem:[%s249_s4 + $0x18] sm:$0xff] %vm139_vm1, %v138_v22  ;;  %v136_v25 = vmul.f32 %v123_v24, %v100_v23 }
  0xd5   :  { %141 = vst.msk [vmem:[%s249_s4 + $0x8] sm:$0xff] %vm139_vm1, %v136_v25 }

// kernel: fastspeech_forward.29
= control target key start
LH: loop header
LB: loop body
LE: loop exit
PB: predicated region body
PF: predicated region fallthrough
CT: control target
= control target key end

     0   :  { %s1482_s27 = smov 0   ;;  %s1702_s0 = inlined_call_operand.vmem [shape: f32[2,24,32], index: 0, kind: input, shape index: {}]   ;;  %s1703_s1 = inlined_call_operand.vmem [shape: bf16[9,32,64], index: 1, kind: input, shape index: {}]   ;;  %s1704_s2 = inlined_call_operand.vmem [shape: f32[1,64], index: 2, kind: input, shape index: {}]   ;;  %s1705_s3 = inlined_call_operand.vmem [shape: bf16[1,64,32], index: 3, kind: input, shape index: {}]   ;;  %s1706_s4 = inlined_call_operand.vmem [shape: f32[1,32], index: 4, kind: input, shape index: {}]   ;;  %s1707_s5 = inlined_call_operand.vmem [shape: f32[1,32], index: 5, kind: input, shape index: {}]   ;;  %s1708_s6 = inlined_call_operand.vmem [shape: f32[1,32], index: 6, kind: input, shape index: {}]   ;;  %s1709_s7 = inlined_call_operand.vmem [shape: f32[2,16,1], index: 7, kind: input, shape index: {}]   ;;  %s1710_s8 = inlined_call_operand.vmem [shape: f32[2,16,32], index: 8, kind: output, shape index: {}]  }
   0x1 LB: > { %s1188_s28 = sadd.s32 4294967295, %s1432_s27   ;;  %p1192_p0 = scmp.ge.s32.totalorder %s1432_s27, 1  ;;  %s1432_s27 = sphi %s1482_s27, %s18_s27  }
   0x2   : > { %p272_p1 = scmp.lt.s32.totalorder %s1432_s27, 3 }
   0x4   : > { %p273_p2 = pnand %p1192_p0, %p272_p1 }
   0x5   : > { %p311_p3 = scmp.lt.s32.totalorder (!%p273_p2), %s1188_s28, 1 }
   0x6   : > { %276 = sbr.rel (%p273_p2) target bundleno = 775 (0x307), region = 52 }
   0xb   : > { %v1400_v0 = vld [vmem:[%s1703_s1 + $0x18] sm:$0xff]   ;;  %v1434_v1 = vmov 0.0   ;;  %v1401_v2 = vld [vmem:[%s1703_s1 + $0x8] sm:$0xff]   ;;  %v1402_v3 = vld [vmem:[%s1703_s1 + $0x10] sm:$0xff]   ;;  %vm1435_vm0 = vmmov 0   ;;  %s1712_s28 = smov (!%p311_p3, %s1188_s28), 1 }
   0xc   : > { %1302 = vmatprep.subr.bf16.mxu0 %v1434_v1  ;;  %1310 = vmatprep.subr.bf16.mxu1 %v1434_v1  ;;  %v1403_v4 = vld [vmem:[%s1703_s1] sm:$0xff]   ;;  %s1386_s15 = smul.u32 24, %s1712_s28  ;;  %v1405_v5 = vld [vmem:[%s1703_s1 + $0x38] sm:$0xff]   ;;  %vm366_vm1 = vcmask 261120   ;;  %vm341_vm2 = vsmask.f32 7424 }
   0xd   : > { %1303 = vmatpush3.bf16.msra.mxu0 %v1400_v0  ;;  %1306 = vmatprep.mubr.msk.bf16.mxu0 %vm1435_vm0, %v1434_v1  ;;  %v1407_v14 = vld [vmem:[%s1703_s1 + $0x30] sm:$0xff]   ;;  %v1404_v20 = vld [vmem:[%s1703_s1 + $0x28] sm:$0xff]   ;;  %vm540_vm3 = vsmask.f32 6400  ;;  %v1409_v26 = vld [vmem:[%s1703_s1 + $0x58] sm:$0xff]   ;;  %vm473_vm4 = vcmask 1046528  }
   0xe   : > { %1311 = vmatpush3.bf16.msra.mxu1 %v1401_v2  ;;  %1304 = vmatprep.subr.bf16.mxu0 %v1434_v1  ;;  %s315_s18 = scalar_lea.vmem %s1702_s0, %s1386_s15  ;;  %v1406_v33 = vld [vmem:[%s1703_s1 + $0x20] sm:$0xff]   ;;  %v1408_v36 = vld [vmem:[%s1703_s1 + $0x48] sm:$0xff]   ;;  %v1411_v37 = vld [vmem:[%s1703_s1 + $0x50] sm:$0xff]   ;;  %vm680_vm5 = vsmask.f32 5376  ;;  %vm613_vm6 = vcmask 1045504  }
   0xf   : > { %1312 = vmatprep.subr.bf16.mxu1 %v1434_v1  ;;  %1314 = vmatprep.mubr.msk.bf16.mxu1 %vm1435_vm0, %v1434_v1  ;;  %v1521_v6 = vld [vmem:[%s315_s18] sm:$0xff]  ;;  %v1523_v7 = vld [vmem:[%s315_s18 + $0x8] sm:$0xff]  ;;  %v1525_v8 = vld [vmem:[%s315_s18 + $0x10] sm:$0xff]  ;;  %vm818_vm7 = vsmask.f32 4352  ;;  %vm751_vm8 = vcmask 1044480  }
  0x10   : > { %v1529_v9 = vpack.c.bf16 %v1523_v7, %v1521_v6  ;;  %v1533_v10 = vpack.c.bf16 %v1525_v8, %v1525_v8  ;;  %v1413_v43 = vld [vmem:[%s1703_s1 + $0x78] sm:$0xff]   ;;  %v1410_v47 = vld [vmem:[%s1703_s1 + $0x40] sm:$0xff]   ;;  %v1415_v50 = vld [vmem:[%s1703_s1 + $0x70] sm:$0xff]   ;;  %vm889_vm9 = vcmask 1043456   ;;  %vm1002_vm10 = vcmask 523264   ;;  %s1268_s19 = sshll.u32 %s1712_s28, 4 }
  0x11   : > { %1305 = vmatpush3.bf16.msra.mxu0 %v1402_v3  ;;  %v1412_v54 = vld [vmem:[%s1703_s1 + $0x68] sm:$0xff]   ;;  %v1414_v56 = vld [vmem:[%s1703_s1 + $0x60] sm:$0xff]   ;;  %v1418_v2 = vld [vmem:[%s1705_s3 + $0x18] sm:$0xff]   ;;  %s320_s22 = scalar_lea.vmem %s1709_s7, %s1268_s19  ;;  %s325_s9 = scalar_lea.vmem %s1710_s8, %s1268_s19 }
  0x12   : > { %1313 = vmatpush3.bf16.msra.mxu1 %v1403_v4  ;;  %1318 = vmatprep.subr.bf16.mxu0 %v1434_v1  ;;  %v1536_v11 = vshrl.u32 %v1529_v9, 16  ;;  %v1539_v12 = vshll.u32 %v1529_v9, 16  ;;  %v1542_v13 = vshll.u32 %v1533_v10, 16  ;;  %v1552_v15 = vshrl.u32 %v1533_v10, 16  ;;  %v1416_v60 = vld [vmem:[%s1703_s1 + $0x88] sm:$0xff]   ;;  %v1417_v61 = vld [vmem:[%s1703_s1 + $0x80] sm:$0xff]  }
  0x13   : > { %1326 = vmatprep.subr.bf16.mxu1 %v1434_v1  ;;  %v474_v34 = vrot.slane %v1529_v9, 1  ;;  %v475_v35 = vrot.slane %v1533_v10, 1  ;;  %v614_v48 = vrot.slane %v1529_v9, 2  ;;  %v615_v49 = vrot.slane %v1533_v10, 2  ;;  %v1419_v3 = vld [vmem:[%s1705_s3 + $0x10] sm:$0xff]   ;;  %v1420_v4 = vld [vmem:[%s1705_s3 + $0x8] sm:$0xff]  }
  0x14   : > { %v347_v16 = vrot.slane %v1539_v12, 1  ;;  %v352_v17 = vrot.slane %v1542_v13, 1  ;;  %v541_v18 = vrot.slane %v1536_v11, 1  ;;  %v542_v19 = vrot.slane %v1539_v12, 2 }
  0x15   : > { %1315 = vmatmul.mubr.msk.bf16.vlgmr.msra.gmra.mxu1 %vm366_vm1, %v1529_v9  ;;  %v546_v21 = vrot.slane %v1552_v15, 1  ;;  %v547_v22 = vrot.slane %v1542_v13, 2  ;;  %v681_v27 = vrot.slane %v1536_v11, 2  ;;  %v682_v28 = vrot.slane %v1539_v12, 3 }
  0x16   : > { %1327 = vmatpush3.bf16.msra.mxu1 %v1405_v5  ;;  %1330 = vmatprep.mubr.msk.bf16.mxu1 %vm1435_vm0, %v1434_v1  ;;  %v348_v23 = vor.u32 %v347_v16, %v1536_v11  ;;  %v543_v24 = vor.u32 %v542_v19, %v541_v18  ;;  %v684_v30 = vrot.slane %v1552_v15, 2  ;;  %v685_v31 = vrot.slane %v1542_v13, 3  ;;  %v1421_v5 = vld [vmem:[%s1705_s3] sm:$0xff]  }
  0x17   : > { %1328 = vmatprep.subr.bf16.mxu1 %v1434_v1  ;;  %v548_v25 = vor.u32 %v547_v22, %v546_v21  ;;  %v683_v38 = vor.u32 %v682_v28, %v681_v27  ;;  %v476_v40 = vsel %vm473_vm4, %v474_v34, %v475_v35  ;;  %v819_v41 = vrot.slane %v1536_v11, 3 }
  0x18   : > { %v353_v29 = vsel %vm341_vm2, %v348_v23, %v352_v17  ;;  %v686_v39 = vor.u32 %v685_v31, %v684_v30  ;;  %v820_v44 = vrot.slane %v1539_v12, 4  ;;  %v822_v45 = vrot.slane %v1552_v15, 3 }
  0x19   : > { %1307 = vmatmul.mubr.msk.bf16.vlgmr.msra.gmra.mxu0 %vm366_vm1, %v353_v29  ;;  %v549_v32 = vsel %vm540_vm3, %v543_v24, %v548_v25  ;;  %v823_v46 = vrot.slane %v1542_v13, 4  ;;  %v616_v53 = vsel %vm613_vm6, %v614_v48, %v615_v49  ;;  %v752_v57 = vrot.slane %v1529_v9, 3 }
  0x1a   : > { %1329 = vmatpush3.bf16.msra.mxu1 %v1407_v14  ;;  %1319 = vmatpush3.bf16.msra.mxu0 %v1404_v20  ;;  %v687_v42 = vsel %vm680_vm5, %v683_v38, %v686_v39  ;;  %v821_v51 = vor.u32 %v820_v44, %v819_v41  ;;  %v753_v58 = vrot.slane %v1533_v10, 3  ;;  %v890_v62 = vrot.slane %v1529_v9, 4 }
  0x1b   : > { %1342 = vmatprep.subr.bf16.mxu1 %v1434_v1  ;;  %1322 = vmatprep.mubr.msk.bf16.mxu0 %vm1435_vm0, %v1434_v1  ;;  %v824_v52 = vor.u32 %v823_v46, %v822_v45  ;;  %v891_v63 = vrot.slane %v1533_v10, 4 }
  0x1c   : > { %1320 = vmatprep.subr.bf16.mxu0 %v1434_v1  ;;  %v754_v59 = vsel %vm751_vm8, %v752_v57, %v753_v58 }
  0x1d   : > { %1331 = vmatmul.mubr.msk.bf16.vlgmr.msra.gmra.mxu1 %vm366_vm1, %v549_v32  ;;  %v825_v55 = vsel %vm818_vm7, %v821_v51, %v824_v52  ;;  %v892_v0 = vsel %vm889_vm9, %v890_v62, %v891_v63 }
  0x1e   : > { %1343 = vmatpush3.bf16.msra.mxu1 %v1409_v26  ;;  %1346 = vmatprep.mubr.msk.bf16.mxu1 %vm1435_vm0, %v1434_v1 }
  0x1f   : > { %1344 = vmatprep.subr.bf16.mxu1 %v1434_v1  ;;  %1321 = vmatpush3.bf16.msra.mxu0 %v1406_v33 }
  0x20   : > { %1334 = vmatprep.subr.bf16.mxu0 %v1434_v1 }
  0x22   : > { %1345 = vmatpush3.bf16.msra.mxu1 %v1411_v37  ;;  %1323 = vmatmul.mubr.msk.bf16.vlgmr.msra.gmra.mxu0 %vm366_vm1, %v476_v40 }
  0x23   : > { %1358 = vmatprep.subr.bf16.mxu1 %v1434_v1  ;;  %1335 = vmatpush3.bf16.msra.mxu0 %v1408_v36 }
  0x24   : > { %1338 = vmatprep.mubr.msk.bf16.mxu0 %vm1435_vm0, %v1434_v1  ;;  %1336 = vmatprep.subr.bf16.mxu0 %v1434_v1 }
  0x25   : > { %1347 = vmatmul.mubr.msk.bf16.vlgmr.msra.gmra.mxu1 %vm366_vm1, %v687_v42 }
  0x26   : > { %1359 = vmatpush3.bf16.msra.mxu1 %v1413_v43  ;;  %1362 = vmatprep.mubr.msk.bf16.mxu1 %vm1435_vm0, %v1434_v1 }
  0x27   : > { %1360 = vmatprep.subr.bf16.mxu1 %v1434_v1  ;;  %1337 = vmatpush3.bf16.msra.mxu0 %v1410_v47 }
  0x28   : > { %1350 = vmatprep.subr.bf16.mxu0 %v1434_v1 }
  0x2a   : > { %1361 = vmatpush3.bf16.msra.mxu1 %v1415_v50  ;;  %1339 = vmatmul.mubr.msk.bf16.vlgmr.msra.gmra.mxu0 %vm366_vm1, %v616_v53 }
  0x2b   : > { %1374 = vmatprep.subr.bf16.mxu1 %v1434_v1  ;;  %1351 = vmatpush3.bf16.msra.mxu0 %v1412_v54 }
  0x2c   : > { %1354 = vmatprep.mubr.msk.bf16.mxu0 %vm1435_vm0, %v1434_v1  ;;  %1352 = vmatprep.subr.bf16.mxu0 %v1434_v1 }
  0x2d   : > { %1363 = vmatmul.mubr.msk.bf16.vlgmr.msra.gmra.mxu1 %vm366_vm1, %v825_v55  ;;  %v1257_v55 = vld [vmem:[%s1704_s2] ss:$0 sm:$0xff] }
  0x2e   : > { %1382 = vmatprep.mubr.msk.bf16.mxu1 %vm1435_vm0, %v1434_v1  ;;  %1375 = vmatpush3.bf16.msra.mxu1 %v1418_v2 }
  0x2f   : > { %1353 = vmatpush3.bf16.msra.mxu0 %v1414_v56  ;;  %1376 = vmatprep.subr.bf16.mxu1 %v1434_v1 }
  0x30   : > { %1366 = vmatprep.subr.bf16.mxu0 %v1434_v1 }
  0x32   : > { %1355 = vmatmul.mubr.msk.bf16.vlgmr.msra.gmra.mxu0 %vm366_vm1, %v754_v59  ;;  %1377 = vmatpush3.bf16.msra.mxu1 %v1419_v3  ;;  %v1051_v3 = vrot.slane %v1521_v6, 4 }
  0x33   : > { %1367 = vmatpush3.bf16.msra.mxu0 %v1416_v60  ;;  %1370 = vmatprep.mubr.msk.bf16.mxu0 %vm1435_vm0, %v1434_v1 }
  0x34   : > { %1368 = vmatprep.subr.bf16.mxu0 %v1434_v1  ;;  %1378 = vmatprep.subr.bf16.mxu1 %v1434_v1 }
  0x36   : > { %1379 = vmatpush3.bf16.msra.mxu1 %v1420_v4  ;;  %v1052_v4 = vrot.slane %v1523_v7, 4 }
  0x37   : > { %1369 = vmatpush3.bf16.msra.mxu0 %v1417_v61  ;;  %1380 = vmatprep.subr.bf16.mxu1 %v1434_v1 }
  0x3a   : > { %1371 = vmatmul.mubr.msk.bf16.vlgmr.msra.gmra.mxu0 %vm366_vm1, %v892_v0  ;;  %1381 = vmatpush3.bf16.msra.mxu1 %v1421_v5  ;;  %v1258_v5 = vld [vmem:[%s1706_s4] ss:$0 sm:$0xff] }
  0xd5   : > { %v459_v9 = vpop.f32.mrf.mxu1 }
  0xd7   : > { %v1316_v10 = vpop.f32.mrf.mxu1 }
  0xd8   : > { %v1053_v10 = vsel %vm889_vm9, %v1051_v3, %v1052_v4 }
  0xd9   : > { %v462_v11 = vpop.f32.mrf.mxu1  ;;  %v404_v13 = vpop.f32.mrf.mxu0 }
  0xda   : > { %v460_v25 = vadd.f32 %v459_v9, %v404_v13 }
  0xdb   : > { %v1317_v12 = vpop.f32.mrf.mxu1  ;;  %v1308_v14 = vpop.f32.mrf.mxu0 }
  0xdd   : > { %v599_v15 = vpop.f32.mrf.mxu1  ;;  %v407_v16 = vpop.f32.mrf.mxu0 }
  0xde   : > { %v463_v31 = vadd.f32 %v462_v11, %v407_v16  ;;  %v1054_v11 = vrot.slane %v1525_v8, 4  ;;  %v1105_v8 = vld [vmem:[%s320_s22] sm:$0xff] }
  0xdf   : > { %v1332_v17 = vpop.f32.mrf.mxu1  ;;  %v1309_v18 = vpop.f32.mrf.mxu0 }
  0xe0   : > { %v1055_v16 = vsel %vm889_vm9, %v1052_v4, %v1054_v11 }
  0xe1   : > { %v602_v19 = vpop.f32.mrf.mxu1 }
  0xe2   : > { %v526_v20 = vpop.f32.mrf.mxu0 }
  0xe3   : > { %v1333_v21 = vpop.f32.mrf.mxu1  ;;  %v533_v28 = vadd.f32 %v526_v20, %v460_v25  ;;  %v1436_v20 = vmov 0  }
  0xe4   : > { %v1324_v22 = vpop.f32.mrf.mxu0  ;;  %1398 = vset.pattern.permute.xlu0 %v1436_v20  ;;  %1399 = vset.pattern.permute.xlu1 %v1436_v20 }
  0xe5   : > { %v737_v1 = vpop.f32.mrf.mxu1  ;;  %v606_v34 = vadd.f32 %v599_v15, %v533_v28 }
  0xe6   : > { %v529_v23 = vpop.f32.mrf.mxu0 }
  0xe7   : > { %v1348_v24 = vpop.f32.mrf.mxu1  ;;  %v534_v35 = vadd.f32 %v529_v23, %v463_v31 }
  0xe8   : > { %v1325_v26 = vpop.f32.mrf.mxu0 }
  0xe9   : > { %v740_v27 = vpop.f32.mrf.mxu1  ;;  %v607_v41 = vadd.f32 %v602_v19, %v534_v35 }
  0xea   : > { %v666_v29 = vpop.f32.mrf.mxu0 }
  0xeb   : > { %v1349_v30 = vpop.f32.mrf.mxu1  ;;  %v673_v38 = vadd.f32 %v666_v29, %v606_v34 }
  0xec   : > { %v1340_v32 = vpop.f32.mrf.mxu0  ;;  %v1106_v30 = vld [vmem:[%s320_s22 + $0x8] sm:$0xff] }
  0xed   : > { %v875_v33 = vpop.f32.mrf.mxu1  ;;  %v744_v44 = vadd.f32 %v737_v1, %v673_v38  ;;  %v1264_v38 = vld [vmem:[%s1707_s5] ss:$0 sm:$0xff] }
  0xee   : > { %v669_v36 = vpop.f32.mrf.mxu0 }
  0xef   : > { %v1364_v37 = vpop.f32.mrf.mxu1  ;;  %v674_v45 = vadd.f32 %v669_v36, %v607_v41 }
  0xf0   : > { %v1341_v39 = vpop.f32.mrf.mxu0 }
  0xf1   : > { %v878_v40 = vpop.f32.mrf.mxu1  ;;  %v745_v49 = vadd.f32 %v740_v27, %v674_v45 }
  0xf2   : > { %v804_v42 = vpop.f32.mrf.mxu0 }
  0xf3   : > { %v1365_v43 = vpop.f32.mrf.mxu1  ;;  %v811_v47 = vadd.f32 %v804_v42, %v744_v44 }
  0xf4   : > { %v1356_v46 = vpop.f32.mrf.mxu0 }
  0xf5   : > { %v882_v51 = vadd.f32 %v875_v33, %v811_v47 }
  0xf6   : > { %v807_v48 = vpop.f32.mrf.mxu0 }
  0xf7   : > { %v812_v52 = vadd.f32 %v807_v48, %v745_v49 }
  0xf8   : > { %v1357_v50 = vpop.f32.mrf.mxu0 }
  0xf9   : > { %v883_v57 = vadd.f32 %v878_v40, %v812_v52  ;;  %v1265_v40 = vld [vmem:[%s1708_s6] ss:$0 sm:$0xff] }
  0xfa   : > { %v942_v53 = vpop.f32.mrf.mxu0 }
  0xfb   : > { %v949_v54 = vadd.f32 %v942_v53, %v882_v51 }
  0xfc   : > { %v1372_v56 = vpop.f32.mrf.mxu0 }
  0xfd   : > { %v958_v59 = vadd.f32 %v1257_v55, %v949_v54 }
  0xfe   : > { %v945_v58 = vpop.f32.mrf.mxu0 }
  0xff   : > { %v950_v60 = vadd.f32 %v945_v58, %v883_v57  ;;  %v960_v63 = vmax.f32 %v958_v59, 0.0 }
 0x100   : > { %v1373_v61 = vpop.f32.mrf.mxu0 }
 0x101   : > { %v959_v62 = vadd.f32 %v1257_v55, %v950_v60 }
 0x103   : > { %v961_v0 = vmax.f32 %v959_v62, 0.0 }
 0x105   : > { %v962_v2 = vpack.c.bf16 %v961_v0, %v960_v63 }
 0x107   : > { %1383 = vmatmul.mubr.msk.bf16.vlgmr.msra.gmra.mxu1 %vm1002_vm10, %v962_v2 }
 0x1c7   : > { %v1040_v9 = vpop.f32.mrf.mxu1 }
 0x1c8   : > { %v1041_v12 = vadd.f32 %v1258_v5, %v1040_v9 }
 0x1c9   : > { %v1384_v13 = vpop.f32.mrf.mxu1 }
 0x1ca   : > { %v1058_v14 = vadd.f32 %v1053_v10, %v1041_v12 }
 0x1cb   : > { %v1043_v15 = vpop.f32.mrf.mxu1 }
 0x1cc   : > { %v1044_v6 = vadd.f32 %v1258_v5, %v1043_v15  ;;  %v1060_v7 = vsel %vm366_vm1, %v1058_v14, 0.0 }
 0x1cd   : > { %1061 = vadd.xlane.f32.xlu0 %v1060_v7  ;;  %v1385_v17 = vpop.f32.mrf.mxu1 }
 0x1ce   : > { %v1059_v18 = vadd.f32 %v1055_v16, %v1044_v6 }
 0x1d0   : > { %v1063_v19 = vsel %vm366_vm1, %v1059_v18, 0.0 }
 0x1d1   : > { %1064 = vadd.xlane.f32.xlu0 %v1063_v19 }
 0x1e7   : > { %1109 = vperm.xlu0 %1398, %v1105_v8  }
 0x256   : > { %v1062_v21 = vpop.xlane.xlu0 %1061 }
 0x257   : > { %v1067_v22 = vmul.f32 0.03125, %v1062_v21 }
 0x259   : > { %v1069_v1 = vsub.f32 %v1058_v14, %v1067_v22 }
 0x25a   : > { %v1065_v23 = vpop.xlane.xlu0 %1064 }
 0x25b   : > { %v1068_v24 = vmul.f32 0.03125, %v1065_v23  ;;  %v1071_v25 = vmul.f32 %v1069_v1, %v1069_v1 }
 0x25d   : > { %v1070_v26 = vsub.f32 %v1059_v18, %v1068_v24  ;;  %v1073_v27 = vsel %vm366_vm1, %v1071_v25, 0.0 }
 0x25e   : > { %1074 = vadd.xlane.f32.xlu1 %v1073_v27 }
 0x25f   : > { %v1072_v28 = vmul.f32 %v1070_v26, %v1070_v26 }
 0x261   : > { %v1076_v29 = vsel %vm366_vm1, %v1072_v28, 0.0 }
 0x262   : > { %1077 = vadd.xlane.f32.xlu1 %v1076_v29  ;;  %v1110_v43 = vpop.permute.xlu0 %1109 }
 0x273   : > { %1114 = vperm.xlu1 %1399, %v1106_v30  }
 0x2e7   : > { %v1075_v31 = vpop.xlane.xlu1 %1074 }
 0x2e8   : > { %v1079_v32 = vmul.f32 0.03125, %v1075_v31 }
 0x2ea   : > { %v1081_v33 = vadd.f32 1e-05, %v1079_v32 }
 0x2eb   : > { %v1078_v34 = vpop.xlane.xlu1 %1077 }
 0x2ec   : > { %1422 = vrsqrt.f32 %v1081_v33  ;;  %v1080_v35 = vmul.f32 0.03125, %v1078_v34 }
 0x2ee   : > { %v1082_v36 = vadd.f32 1e-05, %v1080_v35 }
 0x2ef   : > { %v1115_v48 = vpop.permute.xlu1 %1114 }
 0x2f0   : > { %1424 = vrsqrt.f32 %v1082_v36 }
 0x2f9   : > { %v1423_v37 = vpop.eup %1422 }
 0x2fa   : > { %v1085_v39 = vmul.f32 %v1423_v37, %v1069_v1 }
 0x2fc   : > { %v1094_v41 = vmul.f32 %v1264_v38, %v1085_v39 }
 0x2fd   : > { %v1425_v42 = vpop.eup %1424 }
 0x2fe   : > { %v1103_v44 = vadd.f32 %v1265_v40, %v1094_v41  ;;  %v1086_v45 = vmul.f32 %v1425_v42, %v1070_v26 }
 0x300   : > { %v1117_v46 = vmul.f32 %v1110_v43, %v1103_v44  ;;  %v1095_v47 = vmul.f32 %v1264_v38, %v1086_v45 }
 0x302   : > { %1119 = vst.msk [vmem:[%s325_s9] sm:$0xff] %vm366_vm1, %v1117_v46  ;;  %v1104_v49 = vadd.f32 %v1265_v40, %v1095_v47 }
 0x304   : > { %v1118_v50 = vmul.f32 %v1115_v48, %v1104_v49 }
 0x306   : > { %1120 = vst.msk [vmem:[%s325_s9 + $0x8] sm:$0xff] %vm366_vm1, %v1118_v50 }
 0x307 PF: > { %s18_s27 = sadd.s32 1, %s1432_s27  }
 0x308   : > { %p15_p4 = scmp.ge.s32.totalorder %s18_s27, 4  }
 0x30a   :  { %17 = sbr.rel (!%p15_p4) target bundleno = 1 (0x1), region = 93 }

// kernel: fastspeech_forward.33
= control target key start
LH: loop header
LB: loop body
LE: loop exit
PB: predicated region body
PF: predicated region fallthrough
CT: control target
= control target key end

     0   :  { %s943_s9 = smov 0   ;;  %s1032_s0 = inlined_call_operand.vmem [shape: f32[2,24,16], index: 0, kind: input, shape index: {}]   ;;  %s1033_s1 = inlined_call_operand.vmem [shape: bf16[8,16,128], index: 1, kind: input, shape index: {}]   ;;  %s1034_s2 = inlined_call_operand.vmem [shape: f32[2,17,128], index: 2, kind: output, shape index: {}]  }
   0x1 LB: > { %s784_s10 = sadd.s32 4294967295, %s926_s9   ;;  %p788_p0 = scmp.ge.s32.totalorder %s926_s9, 1  ;;  %s926_s9 = sphi %s943_s9, %s12_s9  }
   0x2   : > { %p112_p1 = scmp.lt.s32.totalorder %s926_s9, 3 }
   0x4   : > { %p113_p2 = pnand %p788_p0, %p112_p1 }
   0x5   : > { %p134_p3 = scmp.lt.s32.totalorder (!%p113_p2), %s784_s10, 1 }
   0x6   : > { %116 = sbr.rel (%p113_p2) target bundleno = 256 (0x100), region = 28 }
   0xb   : > { %v912_v0 = vld [vmem:[%s1033_s1] sm:$0xff]   ;;  %v913_v1 = vld [vmem:[%s1033_s1 + $0x8] sm:$0xff]   ;;  %s1036_s10 = smov (!%p134_p3, %s784_s10), 1  ;;  %v914_v2 = vld [vmem:[%s1033_s1 + $0x10] sm:$0xff]   ;;  %vm176_vm0 = vcmask 130048   ;;  %vm294_vm3 = vcmask 1046528  }
   0xc   : > { %861 = vmatprep.subr.bf16.mxu1 %v912_v0  ;;  %855 = vmatprep.subr.bf16.mxu0 %v913_v1  ;;  %s903_s17 = smul.u32 24, %s1036_s10  ;;  %v915_v3 = vld [vmem:[%s1033_s1 + $0x18] sm:$0xff]   ;;  %v917_v9 = vld [vmem:[%s1033_s1 + $0x28] sm:$0xff]   ;;  %vm155_vm1 = vsmask.f32 7424  ;;  %v916_v30 = vld [vmem:[%s1033_s1 + $0x20] sm:$0xff]  }
   0xd   : > { %862 = vmatpush3.bf16.msra.mxu1 %v912_v0  ;;  %856 = vmatpush3.bf16.msra.mxu0 %v913_v1  ;;  %vm364_vm2 = vsmask.f32 6400  ;;  %vm508_vm4 = vsmask.f32 5376  ;;  %v919_v35 = vld [vmem:[%s1033_s1 + $0x38] sm:$0xff]   ;;  %vm438_vm5 = vcmask 1045504  }
   0xe   : > { %867 = vmatprep.subr.bf16.mxu0 %v914_v2  ;;  %s138_s22 = scalar_lea.vmem %s1032_s0, %s903_s17  ;;  %873 = vmatprep.subr.bf16.mxu1 %v915_v3  ;;  %vm652_vm6 = vsmask.f32 4352  ;;  %v918_v45 = vld [vmem:[%s1033_s1 + $0x30] sm:$0xff]   ;;  %vm582_vm7 = vcmask 1044480   ;;  %s143_s5 = scalar_lea.vmem %s1034_s2, %s903_s17 }
   0xf   : > { %v145_v4 = vld [vmem:[%s138_s22] sm:$0xff]  ;;  %v146_v5 = vld [vmem:[%s138_s22 + $0x8] sm:$0xff]  ;;  %v147_v6 = vld [vmem:[%s138_s22 + $0x10] sm:$0xff] }
  0x10   : > { %v971_v7 = vpack.c.bf16 %v146_v5, %v145_v4  ;;  %v973_v8 = vpack.c.bf16 %v147_v6, %v147_v6 }
  0x12   : > { %863 = vmatprep.mubr.msk.bf16.mxu1 %vm176_vm0, %v971_v7  ;;  %v157_v10 = vshrl.u32 %v971_v7, 16  ;;  %v159_v11 = vshll.u32 %v971_v7, 16  ;;  %v164_v12 = vshll.u32 %v973_v8, 16  ;;  %v984_v13 = vshrl.u32 %v973_v8, 16 }
  0x13   : > { %864 = vmatmul.mubr.msk.bf16.vlgmr.msra.gmra.mxu1 %vm176_vm0, %v973_v8  ;;  %v295_v14 = vrot.slane %v971_v7, 1  ;;  %v296_v21 = vrot.slane %v973_v8, 1  ;;  %v439_v41 = vrot.slane %v971_v7, 2  ;;  %v440_v42 = vrot.slane %v973_v8, 2 }
  0x14   : > { %v161_v15 = vrot.slane %v159_v11, 1  ;;  %v166_v16 = vrot.slane %v164_v12, 1  ;;  %874 = vmatpush3.bf16.msra.mxu1 %v915_v3  ;;  %v365_v17 = vrot.slane %v157_v10, 1  ;;  %v366_v18 = vrot.slane %v159_v11, 2 }
  0x15   : > { %v368_v19 = vrot.slane %v984_v13, 1  ;;  %v369_v20 = vrot.slane %v164_v12, 2  ;;  %885 = vmatprep.subr.bf16.mxu1 %v917_v9  ;;  %v509_v22 = vrot.slane %v157_v10, 2  ;;  %v510_v25 = vrot.slane %v159_v11, 3 }
  0x16   : > { %v162_v23 = vor.u32 %v161_v15, %v157_v10  ;;  %v367_v24 = vor.u32 %v366_v18, %v365_v17  ;;  %v512_v26 = vrot.slane %v984_v13, 2  ;;  %v513_v28 = vrot.slane %v164_v12, 3 }
  0x17   : > { %v370_v27 = vor.u32 %v369_v20, %v368_v19  ;;  %v511_v31 = vor.u32 %v510_v25, %v509_v22  ;;  %v297_v33 = vsel %vm294_vm3, %v295_v14, %v296_v21  ;;  %v653_v36 = vrot.slane %v157_v10, 3 }
  0x18   : > { %v167_v29 = vsel %vm155_vm1, %v162_v23, %v166_v16  ;;  %v514_v34 = vor.u32 %v513_v28, %v512_v26  ;;  %v654_v37 = vrot.slane %v159_v11, 4  ;;  %v656_v38 = vrot.slane %v984_v13, 3 }
  0x19   : > { %857 = vmatprep.mubr.msk.bf16.mxu0 %vm176_vm0, %v167_v29  ;;  %v371_v32 = vsel %vm364_vm2, %v367_v24, %v370_v27  ;;  %v657_v39 = vrot.slane %v164_v12, 4  ;;  %v441_v46 = vsel %vm438_vm5, %v439_v41, %v440_v42  ;;  %v583_v48 = vrot.slane %v971_v7, 3 }
  0x1a   : > { %858 = vmatmul.mubr.msk.bf16.vlgmr.msra.gmra.mxu0 %vm176_vm0, %v984_v13  ;;  %875 = vmatprep.mubr.msk.bf16.mxu1 %vm176_vm0, %v371_v32  ;;  %v515_v40 = vsel %vm508_vm4, %v511_v31, %v514_v34  ;;  %v655_v43 = vor.u32 %v654_v37, %v653_v36  ;;  %v584_v49 = vrot.slane %v973_v8, 3 }
  0x1b   : > { %868 = vmatpush3.bf16.msra.mxu0 %v914_v2  ;;  %876 = vmatmul.mubr.msk.bf16.vlgmr.msra.gmra.mxu1 %vm176_vm0, %v368_v19  ;;  %v658_v44 = vor.u32 %v657_v39, %v656_v38 }
  0x1c   : > { %869 = vmatprep.mubr.msk.bf16.mxu0 %vm176_vm0, %v297_v33  ;;  %879 = vmatprep.subr.bf16.mxu0 %v916_v30  ;;  %v585_v50 = vsel %vm582_vm7, %v583_v48, %v584_v49 }
  0x1d   : > { %886 = vmatpush3.bf16.msra.mxu1 %v917_v9  ;;  %887 = vmatprep.mubr.msk.bf16.mxu1 %vm176_vm0, %v515_v40  ;;  %v659_v47 = vsel %vm652_vm6, %v655_v43, %v658_v44 }
  0x1e   : > { %897 = vmatprep.subr.bf16.mxu1 %v919_v35 }
  0x22   : > { %870 = vmatmul.mubr.msk.bf16.vlgmr.msra.gmra.mxu0 %vm176_vm0, %v296_v21 }
  0x23   : > { %880 = vmatpush3.bf16.msra.mxu0 %v916_v30  ;;  %888 = vmatmul.mubr.msk.bf16.vlgmr.msra.gmra.mxu1 %vm176_vm0, %v512_v26 }
  0x24   : > { %881 = vmatprep.mubr.msk.bf16.mxu0 %vm176_vm0, %v441_v46  ;;  %891 = vmatprep.subr.bf16.mxu0 %v918_v45 }
  0x25   : > { %898 = vmatpush3.bf16.msra.mxu1 %v919_v35  ;;  %899 = vmatprep.mubr.msk.bf16.mxu1 %vm176_vm0, %v659_v47 }
  0x2a   : > { %882 = vmatmul.mubr.msk.bf16.vlgmr.msra.gmra.mxu0 %vm176_vm0, %v440_v42 }
  0x2b   : > { %892 = vmatpush3.bf16.msra.mxu0 %v918_v45  ;;  %900 = vmatmul.mubr.msk.bf16.vlgmr.msra.gmra.mxu1 %vm176_vm0, %v656_v38 }
  0x2c   : > { %893 = vmatprep.mubr.msk.bf16.mxu0 %vm176_vm0, %v585_v50 }
  0x32   : > { %894 = vmatmul.mubr.msk.bf16.vlgmr.msra.gmra.mxu0 %vm176_vm0, %v584_v49 }
  0xd3   : > { %v865_v51 = vpop.f32.mrf.mxu1 }
  0xd5   : > { %v275_v52 = vpop.f32.mrf.mxu1 }
  0xd7   : > { %v866_v53 = vpop.f32.mrf.mxu1 }
  0xd9   : > { %v278_v54 = vpop.f32.mrf.mxu1 }
  0xda   : > { %v859_v55 = vpop.f32.mrf.mxu0 }
  0xdb   : > { %v877_v56 = vpop.f32.mrf.mxu1  ;;  %v284_v2 = vadd.f32 %v865_v51, %v859_v55 }
  0xdc   : > { %v217_v57 = vpop.f32.mrf.mxu0 }
  0xdd   : > { %v418_v58 = vpop.f32.mrf.mxu1  ;;  %v276_v5 = vadd.f32 %v275_v52, %v217_v57 }
  0xde   : > { %v860_v59 = vpop.f32.mrf.mxu0 }
  0xdf   : > { %v878_v60 = vpop.f32.mrf.mxu1 }
  0xe0   : > { %v220_v61 = vpop.f32.mrf.mxu0 }
  0xe1   : > { %v421_v62 = vpop.f32.mrf.mxu1  ;;  %v279_v12 = vadd.f32 %v278_v54, %v220_v61 }
  0xe2   : > { %v871_v63 = vpop.f32.mrf.mxu0 }
  0xe3   : > { %v889_v0 = vpop.f32.mrf.mxu1  ;;  %v360_v6 = vadd.f32 %v871_v63, %v284_v2 }
  0xe4   : > { %v344_v1 = vpop.f32.mrf.mxu0 }
  0xe5   : > { %v562_v3 = vpop.f32.mrf.mxu1  ;;  %v358_v9 = vadd.f32 %v344_v1, %v276_v5  ;;  %v434_v13 = vadd.f32 %v877_v56, %v360_v6 }
  0xe6   : > { %v872_v4 = vpop.f32.mrf.mxu0 }
  0xe7   : > { %v890_v7 = vpop.f32.mrf.mxu1  ;;  %v432_v18 = vadd.f32 %v418_v58, %v358_v9 }
  0xe8   : > { %v347_v8 = vpop.f32.mrf.mxu0 }
  0xe9   : > { %v565_v10 = vpop.f32.mrf.mxu1  ;;  %v359_v16 = vadd.f32 %v347_v8, %v279_v12 }
  0xea   : > { %v883_v11 = vpop.f32.mrf.mxu0 }
  0xeb   : > { %v901_v14 = vpop.f32.mrf.mxu1  ;;  %v504_v17 = vadd.f32 %v883_v11, %v434_v13  ;;  %v433_v24 = vadd.f32 %v421_v62, %v359_v16 }
  0xec   : > { %v488_v15 = vpop.f32.mrf.mxu0 }
  0xed   : > { %v706_v19 = vpop.f32.mrf.mxu1  ;;  %v502_v21 = vadd.f32 %v488_v15, %v432_v18  ;;  %v578_v25 = vadd.f32 %v889_v0, %v504_v17 }
  0xee   : > { %v884_v20 = vpop.f32.mrf.mxu0 }
  0xef   : > { %v902_v22 = vpop.f32.mrf.mxu1  ;;  %v576_v29 = vadd.f32 %v562_v3, %v502_v21 }
  0xf0   : > { %v491_v23 = vpop.f32.mrf.mxu0 }
  0xf1   : > { %v503_v27 = vadd.f32 %v491_v23, %v433_v24  ;;  %v709_v40 = vpop.f32.mrf.mxu1 }
  0xf2   : > { %v895_v26 = vpop.f32.mrf.mxu0 }
  0xf3   : > { %v648_v28 = vadd.f32 %v895_v26, %v578_v25  ;;  %v577_v36 = vadd.f32 %v565_v10, %v503_v27 }
  0xf4   : > { %v632_v30 = vpop.f32.mrf.mxu0 }
  0xf5   : > { %v722_v31 = vadd.f32 %v901_v14, %v648_v28  ;;  %v646_v32 = vadd.f32 %v632_v30, %v576_v29 }
  0xf6   : > { %v896_v33 = vpop.f32.mrf.mxu0 }
  0xf7   : > { %v725_v34 = vmax.f32 %v722_v31, 0.0  ;;  %v720_v35 = vadd.f32 %v706_v19, %v646_v32 }
  0xf8   : > { %v635_v37 = vpop.f32.mrf.mxu0 }
  0xf9   : > { %728 = vst [vmem:[%s143_s5 + $0x10] sm:$0x1] %v725_v34  ;;  %v723_v38 = vmax.f32 %v720_v35, 0.0  ;;  %v647_v39 = vadd.f32 %v635_v37, %v577_v36 }
  0xfb   : > { %726 = vst [vmem:[%s143_s5] sm:$0xff] %v723_v38  ;;  %v721_v41 = vadd.f32 %v709_v40, %v647_v39 }
  0xfd   : > { %v724_v42 = vmax.f32 %v721_v41, 0.0 }
  0xff   : > { %727 = vst [vmem:[%s143_s5 + $0x8] sm:$0xff] %v724_v42 }
 0x100 PF: > { %s12_s9 = sadd.s32 1, %s926_s9  }
 0x101   : > { %p9_p4 = scmp.ge.s32.totalorder %s12_s9, 4  }
 0x103   :  { %11 = sbr.rel (!%p9_p4) target bundleno = 1 (0x1), region = 65 }

// kernel: fastspeech_forward.34
= control target key start
LH: loop header
LB: loop body
LE: loop exit
PB: predicated region body
PF: predicated region fallthrough
CT: control target
= control target key end

     0   :  { %s764_s9 = smov 0   ;;  %s887_s0 = inlined_call_operand.vmem [shape: f32[2,18,128], index: 0, kind: input, shape index: {}]   ;;  %s888_s1 = inlined_call_operand.vmem [shape: bf16[3,128,32], index: 1, kind: input, shape index: {}]   ;;  %s889_s2 = inlined_call_operand.vmem [shape: f32[2,16,32], index: 2, kind: output, shape index: {}]  }
   0x1 LB: > { %s550_s10 = sadd.s32 4294967295, %s745_s9   ;;  %p554_p0 = scmp.ge.s32.totalorder %s745_s9, 1  ;;  %s745_s9 = sphi %s764_s9, %s12_s9  }
   0x2   : > { %p112_p1 = scmp.lt.s32.totalorder %s745_s9, 3 }
   0x4   : > { %p113_p2 = pnand %p554_p0, %p112_p1 }
   0x5   : > { %p134_p3 = scmp.lt.s32.totalorder (!%p113_p2), %s550_s10, 1 }
   0x6   : > { %116 = sbr.rel (%p113_p2) target bundleno = 278 (0x116), region = 28 }
   0xb   : > { %v715_v0 = vld [vmem:[%s888_s1 + $0x78] sm:$0xff]   ;;  %v747_v1 = vmov 0.0   ;;  %v717_v3 = vld [vmem:[%s888_s1 + $0x70] sm:$0xff]   ;;  %vm748_vm0 = vmmov 0   ;;  %s891_s10 = smov (!%p134_p3, %s550_s10), 1  ;;  %v719_v5 = vld [vmem:[%s888_s1 + $0x68] sm:$0xff]  }
   0xc   : > { %644 = vmatprep.subr.bf16.mxu0 %v747_v1  ;;  %664 = vmatprep.subr.bf16.mxu1 %v747_v1  ;;  %v716_v2 = vld [vmem:[%s888_s1 + $0x38] sm:$0xff]   ;;  %v718_v4 = vld [vmem:[%s888_s1 + $0x30] sm:$0xff]   ;;  %v720_v6 = vld [vmem:[%s888_s1 + $0x28] sm:$0xff]   ;;  %s704_s23 = smul.u32 24, %s891_s10  ;;  %vm183_vm1 = vsmask.f32 7424 }
   0xd   : > { %645 = vmatpush3.bf16.msra.mxu0 %v715_v0  ;;  %660 = vmatprep.mubr.msk.bf16.mxu0 %vm748_vm0, %v747_v1  ;;  %v721_v7 = vld [vmem:[%s888_s1 + $0x60] sm:$0xff]   ;;  %v723_v9 = vld [vmem:[%s888_s1 + $0x58] sm:$0xff]   ;;  %v725_v16 = vld [vmem:[%s888_s1 + $0x50] sm:$0xff]   ;;  %vm394_vm2 = vcmask 1046528   ;;  %s616_s11 = sshll.u32 %s891_s10, 4  ;;  %vm492_vm3 = vcmask 261120  }
   0xe   : > { %665 = vmatpush3.bf16.msra.mxu1 %v716_v2  ;;  %646 = vmatprep.subr.bf16.mxu0 %v747_v1  ;;  %v722_v8 = vld [vmem:[%s888_s1 + $0x20] sm:$0xff]   ;;  %s138_s30 = scalar_lea.vmem %s887_s0, %s704_s23  ;;  %v724_v10 = vld [vmem:[%s888_s1 + $0x18] sm:$0xff]   ;;  %v726_v17 = vld [vmem:[%s888_s1 + $0x10] sm:$0xff]   ;;  %s143_s14 = scalar_lea.vmem %s889_s2, %s616_s11 }
   0xf   : > { %666 = vmatprep.subr.bf16.mxu1 %v747_v1  ;;  %680 = vmatprep.mubr.msk.bf16.mxu1 %vm748_vm0, %v747_v1  ;;  %v145_v11 = vld [vmem:[%s138_s30] sm:$0xff]  ;;  %v146_v12 = vld [vmem:[%s138_s30 + $0x8] sm:$0xff]  ;;  %v147_v13 = vld [vmem:[%s138_s30 + $0x10] sm:$0x3] }
  0x10   : > { %v148_v14 = vpack.c.bf16 %v146_v12, %v145_v11  ;;  %v149_v15 = vpack.c.bf16 %v147_v13, %v147_v13  ;;  %v727_v19 = vld [vmem:[%s888_s1 + $0x48] sm:$0xff]   ;;  %v729_v24 = vld [vmem:[%s888_s1 + $0x40] sm:$0xff]   ;;  %v731_v29 = vld [vmem:[%s888_s1 + $0xb8] sm:$0xff]  }
  0x11   : > { %647 = vmatpush3.bf16.msra.mxu0 %v717_v3  ;;  %v728_v23 = vld [vmem:[%s888_s1 + $0x8] sm:$0xff]   ;;  %v730_v27 = vld [vmem:[%s888_s1] sm:$0xff]   ;;  %v732_v30 = vld [vmem:[%s888_s1 + $0xb0] sm:$0xff]  }
  0x12   : > { %667 = vmatpush3.bf16.msra.mxu1 %v718_v4  ;;  %648 = vmatprep.subr.bf16.mxu0 %v747_v1  ;;  %v187_v18 = vshll.u32 %v148_v14, 16  ;;  %v185_v20 = vshrl.u32 %v148_v14, 16  ;;  %v192_v22 = vshll.u32 %v149_v15, 16  ;;  %v733_v31 = vld [vmem:[%s888_s1 + $0xa8] sm:$0xff]   ;;  %v734_v32 = vld [vmem:[%s888_s1 + $0xa0] sm:$0xff]   ;;  %v735_v33 = vld [vmem:[%s888_s1 + $0x98] sm:$0xff]  }
  0x13   : > { %668 = vmatprep.subr.bf16.mxu1 %v747_v1  ;;  %v736_v34 = vld [vmem:[%s888_s1 + $0x90] sm:$0xff]   ;;  %v737_v35 = vld [vmem:[%s888_s1 + $0x88] sm:$0xff]   ;;  %v738_v36 = vld [vmem:[%s888_s1 + $0x80] sm:$0xff]   ;;  %v395_v37 = vrot.slane %v148_v14, 1  ;;  %v396_v38 = vrot.slane %v149_v15, 1 }
  0x14   : > { %v189_v21 = vrot.slane %v187_v18, 1  ;;  %v194_v26 = vrot.slane %v192_v22, 1 }
  0x15   : > { %649 = vmatpush3.bf16.msra.mxu0 %v719_v5  ;;  %v397_v39 = vsel %vm394_vm2, %v395_v37, %v396_v38 }
  0x16   : > { %669 = vmatpush3.bf16.msra.mxu1 %v720_v6  ;;  %650 = vmatprep.subr.bf16.mxu0 %v747_v1  ;;  %v190_v25 = vor.u32 %v189_v21, %v185_v20 }
  0x17   : > { %670 = vmatprep.subr.bf16.mxu1 %v747_v1 }
  0x18   : > { %v195_v28 = vsel %vm183_vm1, %v190_v25, %v194_v26 }
  0x19   : > { %651 = vmatpush3.bf16.msra.mxu0 %v721_v7 }
  0x1a   : > { %671 = vmatpush3.bf16.msra.mxu1 %v722_v8  ;;  %652 = vmatprep.subr.bf16.mxu0 %v747_v1 }
  0x1b   : > { %672 = vmatprep.subr.bf16.mxu1 %v747_v1 }
  0x1d   : > { %653 = vmatpush3.bf16.msra.mxu0 %v723_v9 }
  0x1e   : > { %673 = vmatpush3.bf16.msra.mxu1 %v724_v10  ;;  %654 = vmatprep.subr.bf16.mxu0 %v747_v1 }
  0x1f   : > { %674 = vmatprep.subr.bf16.mxu1 %v747_v1 }
  0x21   : > { %655 = vmatpush3.bf16.msra.mxu0 %v725_v16 }
  0x22   : > { %675 = vmatpush3.bf16.msra.mxu1 %v726_v17  ;;  %656 = vmatprep.subr.bf16.mxu0 %v747_v1 }
  0x23   : > { %676 = vmatprep.subr.bf16.mxu1 %v747_v1 }
  0x25   : > { %657 = vmatpush3.bf16.msra.mxu0 %v727_v19 }
  0x26   : > { %677 = vmatpush3.bf16.msra.mxu1 %v728_v23  ;;  %658 = vmatprep.subr.bf16.mxu0 %v747_v1 }
  0x27   : > { %678 = vmatprep.subr.bf16.mxu1 %v747_v1 }
  0x29   : > { %659 = vmatpush3.bf16.msra.mxu0 %v729_v24 }
  0x2a   : > { %679 = vmatpush3.bf16.msra.mxu1 %v730_v27  ;;  %684 = vmatprep.subr.bf16.mxu0 %v747_v1 }
  0x2c   : > { %661 = vmatmul.mubr.bf16.vlgmr.msra.gmra.mxu0 %v195_v28 }
  0x2d   : > { %681 = vmatmul.mubr.bf16.vlgmr.msra.gmra.mxu1 %v148_v14  ;;  %685 = vmatpush3.bf16.msra.mxu0 %v731_v29 }
  0x2e   : > { %686 = vmatprep.subr.bf16.mxu0 %v747_v1  ;;  %700 = vmatprep.mubr.msk.bf16.mxu0 %vm748_vm0, %v747_v1 }
  0x31   : > { %687 = vmatpush3.bf16.msra.mxu0 %v732_v30 }
  0x32   : > { %688 = vmatprep.subr.bf16.mxu0 %v747_v1 }
  0x35   : > { %689 = vmatpush3.bf16.msra.mxu0 %v733_v31 }
  0x36   : > { %690 = vmatprep.subr.bf16.mxu0 %v747_v1 }
  0x39   : > { %691 = vmatpush3.bf16.msra.mxu0 %v734_v32 }
  0x3a   : > { %692 = vmatprep.subr.bf16.mxu0 %v747_v1 }
  0x3d   : > { %693 = vmatpush3.bf16.msra.mxu0 %v735_v33 }
  0x3e   : > { %694 = vmatprep.subr.bf16.mxu0 %v747_v1 }
  0x41   : > { %695 = vmatpush3.bf16.msra.mxu0 %v736_v34 }
  0x42   : > { %696 = vmatprep.subr.bf16.mxu0 %v747_v1 }
  0x45   : > { %697 = vmatpush3.bf16.msra.mxu0 %v737_v35 }
  0x46   : > { %698 = vmatprep.subr.bf16.mxu0 %v747_v1 }
  0x49   : > { %699 = vmatpush3.bf16.msra.mxu0 %v738_v36 }
  0x4c   : > { %701 = vmatmul.mubr.bf16.vlgmr.msra.gmra.mxu0 %v397_v39 }
  0xec   : > { %v279_v40 = vpop.f32.mrf.mxu0 }
  0xed   : > { %v368_v41 = vpop.f32.mrf.mxu1 }
  0xee   : > { %v662_v42 = vpop.f32.mrf.mxu0  ;;  %v369_v48 = vadd.f32 %v368_v41, %v279_v40 }
  0xef   : > { %v682_v43 = vpop.f32.mrf.mxu1 }
  0xf0   : > { %v282_v44 = vpop.f32.mrf.mxu0 }
  0xf1   : > { %v371_v45 = vpop.f32.mrf.mxu1 }
  0xf2   : > { %v663_v46 = vpop.f32.mrf.mxu0  ;;  %v372_v52 = vadd.f32 %v371_v45, %v282_v44 }
  0xf3   : > { %v683_v47 = vpop.f32.mrf.mxu1 }
 0x10c   : > { %v481_v49 = vpop.f32.mrf.mxu0 }
 0x10d   : > { %v488_v50 = vadd.f32 %v481_v49, %v369_v48 }
 0x10e   : > { %v702_v51 = vpop.f32.mrf.mxu0 }
 0x10f   : > { %v490_v53 = vmax.f32 %v488_v50, 0.0 }
 0x110   : > { %v484_v54 = vpop.f32.mrf.mxu0 }
 0x111   : > { %493 = vst.msk [vmem:[%s143_s14] sm:$0xff] %vm492_vm3, %v490_v53  ;;  %v489_v55 = vadd.f32 %v484_v54, %v372_v52 }
 0x112   : > { %v703_v56 = vpop.f32.mrf.mxu0 }
 0x113   : > { %v491_v57 = vmax.f32 %v489_v55, 0.0 }
 0x115   : > { %494 = vst.msk [vmem:[%s143_s14 + $0x8] sm:$0xff] %vm492_vm3, %v491_v57 }
 0x116 PF: > { %s12_s9 = sadd.s32 1, %s745_s9  }
 0x117   : > { %p9_p4 = scmp.ge.s32.totalorder %s12_s9, 4  }
 0x119   :  { %11 = sbr.rel (!%p9_p4) target bundleno = 1 (0x1), region = 60 }

// kernel: fastspeech_forward.35
= control target key start
LH: loop header
LB: loop body
LE: loop exit
PB: predicated region body
PF: predicated region fallthrough
CT: control target
= control target key end

     0   :  { %s514_s9 = smov 0   ;;  %s559_s0 = inlined_call_operand.vmem [shape: f32[2,18,32], index: 0, kind: input, shape index: {}]   ;;  %s560_s1 = inlined_call_operand.vmem [shape: bf16[3,32,16], index: 1, kind: input, shape index: {}]   ;;  %s561_s2 = inlined_call_operand.vmem [shape: f32[2,16,16], index: 2, kind: output, shape index: {}]  }
   0x1 LB: > { %s411_s10 = sadd.s32 4294967295, %s495_s9   ;;  %p415_p0 = scmp.ge.s32.totalorder %s495_s9, 1  ;;  %s495_s9 = sphi %s514_s9, %s12_s9  }
   0x2   : > { %p112_p1 = scmp.lt.s32.totalorder %s495_s9, 3 }
   0x4   : > { %p113_p2 = pnand %p415_p0, %p112_p1 }
   0x5   : > { %p134_p3 = scmp.lt.s32.totalorder (!%p113_p2), %s411_s10, 1 }
   0x6   : > { %116 = sbr.rel (%p113_p2) target bundleno = 233 (0xe9), region = 28 }
   0xb   : > { %v483_v0 = vld [vmem:[%s560_s1 + $0x18] sm:$0xff]   ;;  %v497_v1 = vmov 0.0   ;;  %v484_v2 = vld [vmem:[%s560_s1 + $0x8] sm:$0xff]   ;;  %v485_v3 = vld [vmem:[%s560_s1 + $0x10] sm:$0xff]   ;;  %vm498_vm0 = vmmov 0   ;;  %s563_s10 = smov (!%p134_p3, %s411_s10), 1 }
   0xc   : > { %448 = vmatprep.subr.bf16.mxu0 %v497_v1  ;;  %456 = vmatprep.subr.bf16.mxu1 %v497_v1  ;;  %v486_v4 = vld [vmem:[%s560_s1] sm:$0xff]   ;;  %s472_s19 = smul.u32 24, %s563_s10  ;;  %vm184_vm1 = vcmask 261120   ;;  %vm159_vm2 = vsmask.f32 7424  ;;  %v487_v16 = vld [vmem:[%s560_s1 + $0x28] sm:$0xff]  }
   0xd   : > { %449 = vmatpush3.bf16.msra.mxu0 %v483_v0  ;;  %452 = vmatprep.mubr.msk.bf16.mxu0 %vm498_vm0, %v497_v1  ;;  %v488_v18 = vld [vmem:[%s560_s1 + $0x20] sm:$0xff]   ;;  %vm291_vm3 = vcmask 1046528   ;;  %s438_s27 = sshll.u32 %s563_s10, 4  ;;  %vm353_vm4 = vcmask 130048  }
   0xe   : > { %457 = vmatpush3.bf16.msra.mxu1 %v484_v2  ;;  %450 = vmatprep.subr.bf16.mxu0 %v497_v1  ;;  %s138_s22 = scalar_lea.vmem %s559_s0, %s472_s19  ;;  %s143_s30 = scalar_lea.vmem %s561_s2, %s438_s27 }
   0xf   : > { %458 = vmatprep.subr.bf16.mxu1 %v497_v1  ;;  %460 = vmatprep.mubr.msk.bf16.mxu1 %vm498_vm0, %v497_v1  ;;  %v145_v5 = vld [vmem:[%s138_s22] sm:$0xff]  ;;  %v146_v6 = vld [vmem:[%s138_s22 + $0x8] sm:$0xff]  ;;  %v147_v7 = vld [vmem:[%s138_s22 + $0x10] sm:$0x3] }
  0x10   : > { %v148_v8 = vpack.c.bf16 %v146_v6, %v145_v5  ;;  %v149_v9 = vpack.c.bf16 %v147_v7, %v147_v7 }
  0x11   : > { %451 = vmatpush3.bf16.msra.mxu0 %v485_v3 }
  0x12   : > { %459 = vmatpush3.bf16.msra.mxu1 %v486_v4  ;;  %464 = vmatprep.subr.bf16.mxu0 %v497_v1  ;;  %v161_v10 = vshrl.u32 %v148_v8, 16  ;;  %v163_v11 = vshll.u32 %v148_v8, 16  ;;  %v168_v12 = vshll.u32 %v149_v9, 16  ;;  %v292_v19 = vrot.slane %v148_v8, 1 }
  0x13   : > { %v293_v20 = vrot.slane %v149_v9, 1 }
  0x14   : > { %v165_v13 = vrot.slane %v163_v11, 1  ;;  %v170_v14 = vrot.slane %v168_v12, 1 }
  0x15   : > { %461 = vmatmul.mubr.msk.bf16.vlgmr.msra.gmra.mxu1 %vm184_vm1, %v148_v8  ;;  %v294_v21 = vsel %vm291_vm3, %v292_v19, %v293_v20 }
  0x16   : > { %v166_v15 = vor.u32 %v165_v13, %v161_v10 }
  0x18   : > { %v171_v17 = vsel %vm159_vm2, %v166_v15, %v170_v14 }
  0x19   : > { %453 = vmatmul.mubr.msk.bf16.vlgmr.msra.gmra.mxu0 %vm184_vm1, %v171_v17 }
  0x1a   : > { %465 = vmatpush3.bf16.msra.mxu0 %v487_v16  ;;  %468 = vmatprep.mubr.msk.bf16.mxu0 %vm498_vm0, %v497_v1 }
  0x1b   : > { %466 = vmatprep.subr.bf16.mxu0 %v497_v1 }
  0x1e   : > { %467 = vmatpush3.bf16.msra.mxu0 %v488_v18 }
  0x21   : > { %469 = vmatmul.mubr.msk.bf16.vlgmr.msra.gmra.mxu0 %vm184_vm1, %v294_v21 }
  0xd5   : > { %v277_v22 = vpop.f32.mrf.mxu1 }
  0xd7   : > { %v462_v23 = vpop.f32.mrf.mxu1 }
  0xd9   : > { %v280_v24 = vpop.f32.mrf.mxu1  ;;  %v222_v26 = vpop.f32.mrf.mxu0 }
  0xda   : > { %v278_v30 = vadd.f32 %v277_v22, %v222_v26 }
  0xdb   : > { %v463_v25 = vpop.f32.mrf.mxu1  ;;  %v454_v27 = vpop.f32.mrf.mxu0 }
  0xdd   : > { %v225_v28 = vpop.f32.mrf.mxu0 }
  0xde   : > { %v281_v34 = vadd.f32 %v280_v24, %v225_v28 }
  0xdf   : > { %v455_v29 = vpop.f32.mrf.mxu0 }
  0xe1   : > { %v344_v31 = vpop.f32.mrf.mxu0 }
  0xe2   : > { %v351_v32 = vadd.f32 %v344_v31, %v278_v30 }
  0xe3   : > { %v470_v33 = vpop.f32.mrf.mxu0 }
  0xe4   : > { %354 = vst.msk [vmem:[%s143_s30] sm:$0xff] %vm353_vm4, %v351_v32 }
  0xe5   : > { %v347_v35 = vpop.f32.mrf.mxu0 }
  0xe6   : > { %v352_v36 = vadd.f32 %v347_v35, %v281_v34 }
  0xe7   : > { %v471_v37 = vpop.f32.mrf.mxu0 }
  0xe8   : > { %355 = vst.msk [vmem:[%s143_s30 + $0x8] sm:$0xff] %vm353_vm4, %v352_v36 }
  0xe9 PF: > { %s12_s9 = sadd.s32 1, %s495_s9  }
  0xea   : > { %p9_p4 = scmp.ge.s32.totalorder %s12_s9, 4  }
  0xec   :  { %11 = sbr.rel (!%p9_p4) target bundleno = 1 (0x1), region = 60 }

// kernel: fastspeech_forward.37
= control target key start
LH: loop header
LB: loop body
LE: loop exit
PB: predicated region body
PF: predicated region fallthrough
CT: control target
= control target key end

     0   :  { %vm44_vm0 = vcmask 130048   ;;  %vm100_vm1 = vcmask 392192   ;;  %s171_s1 = inlined_call_operand.vmem [shape: bf16[16,48], index: 1, kind: input, shape index: {}]   ;;  %s172_s0 = inlined_call_operand.vmem [shape: bf16[32,16], index: 0, kind: input, shape index: {}]   ;;  %s173_s2 = inlined_call_operand.vmem [shape: f32[1,48], index: 2, kind: input, shape index: {}]   ;;  %s174_s3 = inlined_call_operand.vmem [shape: f32[32,48], index: 3, kind: output, shape index: {}]  }
   0x1   :  { %v124_v0 = vld [vmem:[%s171_s1] sm:$0xff]   ;;  %v126_v2 = vld [vmem:[%s172_s0 + $0x8] sm:$0xff]  }
   0x2   :  { %v125_v1 = vld [vmem:[%s172_s0] sm:$0xff]   ;;  %118 = vmatprep.subr.bf16.mxu0 %v124_v0 }
   0x3   :  { %119 = vmatpush3.bf16.msra.mxu0 %v124_v0  ;;  %120 = vmatprep.mubr.msk.bf16.mxu0 %vm44_vm0, %v125_v1  ;;  %v109_v3 = vld [vmem:[%s173_s2] ss:$0 sm:$0xff] }
   0x6   :  { %121 = vmatmul.mubr.msk.bf16.vlgmr.msra.gmra.mxu0 %vm44_vm0, %v126_v2 }
  0xc6   :  { %v122_v4 = vpop.f32.mrf.mxu0 }
  0xc7   :  { %v94_v5 = vadd.f32 %v122_v4, %v109_v3 }
  0xc8   :  { %v85_v6 = vpop.f32.mrf.mxu0 }
  0xc9   :  { %103 = vst.msk [vmem:[%s174_s3 + $0x10] sm:$0xff] %vm100_vm1, %v94_v5  ;;  %v86_v7 = vadd.f32 %v109_v3, %v85_v6 }
  0xca   :  { %v123_v8 = vpop.f32.mrf.mxu0 }
  0xcb   :  { %101 = vst.msk [vmem:[%s174_s3] sm:$0xff] %vm100_vm1, %v86_v7  ;;  %v97_v9 = vadd.f32 %v123_v8, %v109_v3 }
  0xcc   :  { %v88_v10 = vpop.f32.mrf.mxu0 }
  0xcd   :  { %104 = vst.msk [vmem:[%s174_s3 + $0x18] sm:$0xff] %vm100_vm1, %v97_v9  ;;  %v89_v11 = vadd.f32 %v109_v3, %v88_v10 }
  0xcf   :  { %102 = vst.msk [vmem:[%s174_s3 + $0x8] sm:$0xff] %vm100_vm1, %v89_v11 }

// kernel: fastspeech_forward.36
= control target key start
LH: loop header
LB: loop body
LE: loop exit
PB: predicated region body
PF: predicated region fallthrough
CT: control target
= control target key end

     0   :  { %vm42_vm0 = vcmask 130048   ;;  %s1154_s3 = inlined_call_operand.vmem [shape: bf16[4,16,16], index: 3, kind: input, shape index: {}]   ;;  %s1155_s0 = inlined_call_operand.vmem [shape: f32[32,16], index: 0, kind: input, shape index: {}]   ;;  %s1156_s1 = inlined_call_operand.vmem [shape: bf16[4,16,16], index: 1, kind: input, shape index: {}]   ;;  %s1157_s4 = inlined_call_operand.vmem [shape: f32[4,1,16], index: 4, kind: input, shape index: {}]   ;;  %s1158_s2 = inlined_call_operand.vmem [shape: f32[4,1,16], index: 2, kind: input, shape index: {}]   ;;  %s1159_s5 = inlined_call_operand.vmem [shape: f32[32,16], index: 5, kind: output, shape index: {}]  }
   0x1   :  { %v904_v0 = vld [vmem:[%s1154_s3] sm:$0xff]   ;;  %v1017_v2 = vld [vmem:[%s1155_s0 + $0x8] sm:$0xff]  ;;  %v1022_v3 = vld [vmem:[%s1155_s0 + $0x10] sm:$0xff] }
   0x2   :  { %v1012_v1 = vld [vmem:[%s1155_s0] sm:$0xff]  ;;  %862 = vmatprep.subr.bf16.mxu1 %v904_v0  ;;  %v1029_v5 = vld [vmem:[%s1155_s0 + $0x18] sm:$0xff]  ;;  %v906_v8 = vld [vmem:[%s1154_s3 + $0x8] sm:$0xff]  }
   0x3   :  { %v25_v4 = vpack.c.bf16 %v1017_v2, %v1012_v1  ;;  %863 = vmatpush3.bf16.msra.mxu1 %v904_v0  ;;  %v26_v6 = vpack.c.bf16 %v1029_v5, %v1022_v3  ;;  %v905_v7 = vld [vmem:[%s1156_s1] sm:$0xff]   ;;  %v907_v9 = vld [vmem:[%s1156_s1 + $0x8] sm:$0xff]  }
   0x4   :  { %856 = vmatprep.subr.bf16.mxu0 %v905_v7  ;;  %874 = vmatprep.subr.bf16.mxu1 %v906_v8  ;;  %v770_v10 = vld [vmem:[%s1157_s4] ss:$0 sm:$0xff] }
   0x5   :  { %864 = vmatprep.mubr.msk.bf16.mxu1 %vm42_vm0, %v25_v4  ;;  %858 = vmatprep.mubr.msk.bf16.mxu0 %vm42_vm0, %v25_v4  ;;  %v766_v34 = vld [vmem:[%s1158_s2] ss:$0 sm:$0xff]  ;;  %v788_v4 = vld [vmem:[%s1157_s4 + $0x1] ss:$0 sm:$0xff] }
   0x6   :  { %865 = vmatmul.mubr.msk.bf16.vlgmr.msra.gmra.mxu1 %vm42_vm0, %v26_v6  ;;  %857 = vmatpush3.bf16.msra.mxu0 %v905_v7 }
   0x7   :  { %868 = vmatprep.subr.bf16.mxu0 %v907_v9  ;;  %875 = vmatpush3.bf16.msra.mxu1 %v906_v8 }
   0x9   :  { %859 = vmatmul.mubr.msk.bf16.vlgmr.msra.gmra.mxu0 %vm42_vm0, %v26_v6 }
   0xa   :  { %869 = vmatpush3.bf16.msra.mxu0 %v907_v9 }
  0xc6   :  { %v866_v11 = vpop.f32.mrf.mxu1 }
  0xc7   :  { %v160_v12 = vadd.f32 %v866_v11, %v770_v10 }
  0xc8   :  { %v151_v13 = vpop.f32.mrf.mxu1 }
  0xc9   :  { %v776_v14 = vmul.f32 -1.442695, %v160_v12  ;;  %v152_v15 = vadd.f32 %v770_v10, %v151_v13  ;;  %v860_v28 = vpop.f32.mrf.mxu0 }
  0xca   :  { %v867_v16 = vpop.f32.mrf.mxu1  ;;  %v92_v39 = vadd.f32 %v860_v28, %v766_v34 }
  0xcb   :  { %912 = vpow2.f32 %v776_v14  ;;  %v774_v17 = vmul.f32 -1.442695, %v152_v15  ;;  %v163_v18 = vadd.f32 %v867_v16, %v770_v10  ;;  %v83_v32 = vpop.f32.mrf.mxu0 }
  0xcc   :  { %v154_v19 = vpop.f32.mrf.mxu1  ;;  %v84_v37 = vadd.f32 %v766_v34, %v83_v32  ;;  %v100_v48 = vmax.f32 %v92_v39, 0.0 }
  0xcd   :  { %914 = vpow2.f32 %v774_v17  ;;  %v777_v20 = vmul.f32 -1.442695, %v163_v18  ;;  %v155_v21 = vadd.f32 %v770_v10, %v154_v19  ;;  %v861_v33 = vpop.f32.mrf.mxu0 }
  0xce   :  { %v95_v40 = vadd.f32 %v861_v33, %v766_v34  ;;  %v98_v45 = vmax.f32 %v84_v37, 0.0 }
  0xcf   :  { %916 = vpow2.f32 %v777_v20  ;;  %v775_v22 = vmul.f32 -1.442695, %v155_v21  ;;  %v86_v35 = vpop.f32.mrf.mxu0 }
  0xd0   :  { %v87_v42 = vadd.f32 %v766_v34, %v86_v35  ;;  %v101_v49 = vmax.f32 %v95_v40, 0.0 }
  0xd1   :  { %918 = vpow2.f32 %v775_v22 }
  0xd2   :  { %v99_v52 = vmax.f32 %v87_v42, 0.0 }
  0xd8   :  { %v913_v23 = vpop.eup %912 }
  0xd9   :  { %v180_v24 = vadd.f32 1.0, %v913_v23 }
  0xda   :  { %v915_v25 = vpop.eup %914 }
  0xdb   :  { %v178_v26 = vadd.f32 1.0, %v915_v25  ;;  %920 = vrcp.f32 %v180_v24 }
  0xdc   :  { %v917_v27 = vpop.eup %916 }
  0xdd   :  { %922 = vrcp.f32 %v178_v26  ;;  %v181_v29 = vadd.f32 1.0, %v917_v27 }
  0xde   :  { %v919_v30 = vpop.eup %918 }
  0xdf   :  { %924 = vrcp.f32 %v181_v29  ;;  %v179_v31 = vadd.f32 1.0, %v919_v30  ;;  %v781_v30 = vld [vmem:[%s1158_s2 + $0x1] ss:$0 sm:$0xff] }
  0xe1   :  { %926 = vrcp.f32 %v179_v31 }
  0xe8   :  { %v921_v36 = vpop.eup %920 }
  0xe9   :  { %v196_v44 = vsub.f32 1.0, %v921_v36  ;;  %v192_v59 = vmul.f32 %v921_v36, %v100_v48 }
  0xea   :  { %v923_v38 = vpop.eup %922 }
  0xeb   :  { %v194_v41 = vsub.f32 1.0, %v923_v38  ;;  %v200_v54 = vmul.f32 %v196_v44, %v1022_v3  ;;  %v190_v56 = vmul.f32 %v923_v38, %v98_v45  ;;  %v909_v3 = vld [vmem:[%s1156_s1 + $0x10] sm:$0xff]  }
  0xec   :  { %v925_v43 = vpop.eup %924  ;;  %880 = vmatprep.subr.bf16.mxu0 %v909_v3 }
  0xed   :  { %v197_v46 = vsub.f32 1.0, %v925_v43  ;;  %v198_v50 = vmul.f32 %v194_v41, %v1012_v1  ;;  %v193_v55 = vmul.f32 %v925_v43, %v101_v49  ;;  %v1062_v63 = vadd.f32 %v200_v54, %v192_v59 }
  0xee   :  { %v927_v47 = vpop.eup %926 }
  0xef   :  { %v201_v51 = vmul.f32 %v197_v46, %v1029_v5  ;;  %v195_v53 = vsub.f32 1.0, %v927_v47  ;;  %v191_v57 = vmul.f32 %v927_v47, %v99_v52  ;;  %v1058_v61 = vadd.f32 %v198_v50, %v190_v56 }
  0xf1   :  { %v199_v58 = vmul.f32 %v195_v53, %v1017_v2  ;;  %v1056_v60 = vadd.f32 %v201_v51, %v193_v55  ;;  %v908_v2 = vld [vmem:[%s1154_s3 + $0x10] sm:$0xff]  }
  0xf2   :  { %886 = vmatprep.subr.bf16.mxu1 %v908_v2 }
  0xf3   :  { %v1060_v62 = vadd.f32 %v199_v58, %v191_v57  ;;  %v207_v1 = vpack.c.bf16 %v1056_v60, %v1062_v63 }
  0xf5   :  { %v206_v0 = vpack.c.bf16 %v1060_v62, %v1058_v61 }
  0xf7   :  { %870 = vmatprep.mubr.msk.bf16.mxu0 %vm42_vm0, %v206_v0  ;;  %876 = vmatprep.mubr.msk.bf16.mxu1 %vm42_vm0, %v206_v0 }
  0xf8   :  { %871 = vmatmul.mubr.msk.bf16.vlgmr.msra.gmra.mxu0 %vm42_vm0, %v207_v1  ;;  %877 = vmatmul.mubr.msk.bf16.vlgmr.msra.gmra.mxu1 %vm42_vm0, %v207_v1 }
  0xf9   :  { %887 = vmatpush3.bf16.msra.mxu1 %v908_v2  ;;  %881 = vmatpush3.bf16.msra.mxu0 %v909_v3 }
 0x1b8   :  { %v878_v5 = vpop.f32.mrf.mxu1  ;;  %v872_v21 = vpop.f32.mrf.mxu0 }
 0x1b9   :  { %v344_v6 = vadd.f32 %v878_v5, %v788_v4  ;;  %v274_v36 = vadd.f32 %v872_v21, %v781_v30 }
 0x1ba   :  { %v335_v7 = vpop.f32.mrf.mxu1  ;;  %v265_v26 = vpop.f32.mrf.mxu0 }
 0x1bb   :  { %v794_v8 = vmul.f32 -1.442695, %v344_v6  ;;  %v336_v9 = vadd.f32 %v788_v4, %v335_v7  ;;  %v266_v33 = vadd.f32 %v781_v30, %v265_v26  ;;  %v282_v46 = vmax.f32 %v274_v36, 0.0 }
 0x1bc   :  { %v879_v10 = vpop.f32.mrf.mxu1  ;;  %v873_v27 = vpop.f32.mrf.mxu0 }
 0x1bd   :  { %928 = vpow2.f32 %v794_v8  ;;  %v792_v11 = vmul.f32 -1.442695, %v336_v9  ;;  %v347_v12 = vadd.f32 %v879_v10, %v788_v4  ;;  %v277_v32 = vadd.f32 %v873_v27, %v781_v30 }
 0x1be   :  { %v338_v13 = vpop.f32.mrf.mxu1  ;;  %v268_v28 = vpop.f32.mrf.mxu0  ;;  %v280_v42 = vmax.f32 %v266_v33, 0.0 }
 0x1bf   :  { %930 = vpow2.f32 %v792_v11  ;;  %v339_v14 = vadd.f32 %v788_v4, %v338_v13  ;;  %v795_v15 = vmul.f32 -1.442695, %v347_v12  ;;  %v269_v34 = vadd.f32 %v781_v30, %v268_v28 }
 0x1c0   :  { %v283_v40 = vmax.f32 %v277_v32, 0.0 }
 0x1c1   :  { %v793_v16 = vmul.f32 -1.442695, %v339_v14  ;;  %932 = vpow2.f32 %v795_v15  ;;  %v281_v43 = vmax.f32 %v269_v34, 0.0 }
 0x1c3   :  { %934 = vpow2.f32 %v793_v16 }
 0x1ca   :  { %v929_v17 = vpop.eup %928 }
 0x1cb   :  { %v364_v18 = vadd.f32 1.0, %v929_v17 }
 0x1cc   :  { %v931_v19 = vpop.eup %930 }
 0x1cd   :  { %v362_v20 = vadd.f32 1.0, %v931_v19  ;;  %936 = vrcp.f32 %v364_v18 }
 0x1ce   :  { %v933_v22 = vpop.eup %932 }
 0x1cf   :  { %938 = vrcp.f32 %v362_v20  ;;  %v365_v24 = vadd.f32 1.0, %v933_v22 }
 0x1d0   :  { %v935_v23 = vpop.eup %934 }
 0x1d1   :  { %v363_v25 = vadd.f32 1.0, %v935_v23  ;;  %940 = vrcp.f32 %v365_v24  ;;  %v799_v24 = vld [vmem:[%s1158_s2 + $0x2] ss:$0 sm:$0xff] }
 0x1d3   :  { %942 = vrcp.f32 %v363_v25 }
 0x1da   :  { %v937_v29 = vpop.eup %936 }
 0x1db   :  { %v380_v37 = vsub.f32 1.0, %v937_v29  ;;  %v376_v53 = vmul.f32 %v937_v29, %v282_v46 }
 0x1dc   :  { %v939_v31 = vpop.eup %938 }
 0x1dd   :  { %v378_v35 = vsub.f32 1.0, %v939_v31  ;;  %v384_v48 = vmul.f32 %v380_v37, %v1062_v63  ;;  %v374_v50 = vmul.f32 %v939_v31, %v280_v42 }
 0x1de   :  { %v941_v38 = vpop.eup %940 }
 0x1df   :  { %v381_v41 = vsub.f32 1.0, %v941_v38  ;;  %v382_v45 = vmul.f32 %v378_v35, %v1058_v61  ;;  %v377_v47 = vmul.f32 %v941_v38, %v283_v40  ;;  %v1094_v57 = vadd.f32 %v384_v48, %v376_v53  ;;  %v911_v61 = vld [vmem:[%s1156_s1 + $0x18] sm:$0xff]  }
 0x1e0   :  { %v943_v39 = vpop.eup %942  ;;  %892 = vmatprep.subr.bf16.mxu0 %v911_v61 }
 0x1e1   :  { %v379_v44 = vsub.f32 1.0, %v943_v39  ;;  %v385_v49 = vmul.f32 %v381_v41, %v1056_v60  ;;  %v375_v51 = vmul.f32 %v943_v39, %v281_v43  ;;  %v1090_v55 = vadd.f32 %v382_v45, %v374_v50  ;;  %v910_v60 = vld [vmem:[%s1154_s3 + $0x18] sm:$0xff]  }
 0x1e2   :  { %898 = vmatprep.subr.bf16.mxu1 %v910_v60 }
 0x1e3   :  { %v383_v52 = vmul.f32 %v379_v44, %v1060_v62  ;;  %v1088_v54 = vadd.f32 %v385_v49, %v377_v47  ;;  %v806_v62 = vld [vmem:[%s1157_s4 + $0x2] ss:$0 sm:$0xff] }
 0x1e5   :  { %v1092_v56 = vadd.f32 %v383_v52, %v375_v51  ;;  %v391_v59 = vpack.c.bf16 %v1088_v54, %v1094_v57 }
 0x1e7   :  { %v390_v58 = vpack.c.bf16 %v1092_v56, %v1090_v55 }
 0x1e9   :  { %882 = vmatprep.mubr.msk.bf16.mxu0 %vm42_vm0, %v390_v58  ;;  %888 = vmatprep.mubr.msk.bf16.mxu1 %vm42_vm0, %v390_v58 }
 0x1ea   :  { %883 = vmatmul.mubr.msk.bf16.vlgmr.msra.gmra.mxu0 %vm42_vm0, %v391_v59  ;;  %889 = vmatmul.mubr.msk.bf16.vlgmr.msra.gmra.mxu1 %vm42_vm0, %v391_v59 }
 0x1eb   :  { %899 = vmatpush3.bf16.msra.mxu1 %v910_v60  ;;  %893 = vmatpush3.bf16.msra.mxu0 %v911_v61 }
 0x2aa   :  { %v890_v63 = vpop.f32.mrf.mxu1  ;;  %v884_v15 = vpop.f32.mrf.mxu0 }
 0x2ab   :  { %v528_v0 = vadd.f32 %v890_v63, %v806_v62  ;;  %v458_v30 = vadd.f32 %v884_v15, %v799_v24 }
 0x2ac   :  { %v519_v1 = vpop.f32.mrf.mxu1  ;;  %v449_v20 = vpop.f32.mrf.mxu0 }
 0x2ad   :  { %v812_v2 = vmul.f32 -1.442695, %v528_v0  ;;  %v520_v3 = vadd.f32 %v806_v62, %v519_v1  ;;  %v450_v27 = vadd.f32 %v799_v24, %v449_v20  ;;  %v466_v40 = vmax.f32 %v458_v30, 0.0 }
 0x2ae   :  { %v891_v4 = vpop.f32.mrf.mxu1  ;;  %v885_v21 = vpop.f32.mrf.mxu0 }
 0x2af   :  { %944 = vpow2.f32 %v812_v2  ;;  %v810_v5 = vmul.f32 -1.442695, %v520_v3  ;;  %v531_v6 = vadd.f32 %v891_v4, %v806_v62  ;;  %v461_v26 = vadd.f32 %v885_v21, %v799_v24 }
 0x2b0   :  { %v522_v7 = vpop.f32.mrf.mxu1  ;;  %v452_v22 = vpop.f32.mrf.mxu0  ;;  %v464_v36 = vmax.f32 %v450_v27, 0.0 }
 0x2b1   :  { %946 = vpow2.f32 %v810_v5  ;;  %v523_v8 = vadd.f32 %v806_v62, %v522_v7  ;;  %v813_v9 = vmul.f32 -1.442695, %v531_v6  ;;  %v453_v28 = vadd.f32 %v799_v24, %v452_v22 }
 0x2b2   :  { %v467_v34 = vmax.f32 %v461_v26, 0.0 }
 0x2b3   :  { %v811_v10 = vmul.f32 -1.442695, %v523_v8  ;;  %948 = vpow2.f32 %v813_v9  ;;  %v465_v37 = vmax.f32 %v453_v28, 0.0 }
 0x2b5   :  { %950 = vpow2.f32 %v811_v10 }
 0x2bc   :  { %v945_v11 = vpop.eup %944 }
 0x2bd   :  { %v548_v12 = vadd.f32 1.0, %v945_v11 }
 0x2be   :  { %v947_v13 = vpop.eup %946 }
 0x2bf   :  { %v546_v14 = vadd.f32 1.0, %v947_v13  ;;  %952 = vrcp.f32 %v548_v12  ;;  %v817_v13 = vld [vmem:[%s1158_s2 + $0x3] ss:$0 sm:$0xff] }
 0x2c0   :  { %v949_v16 = vpop.eup %948 }
 0x2c1   :  { %954 = vrcp.f32 %v546_v14  ;;  %v549_v18 = vadd.f32 1.0, %v949_v16 }
 0x2c2   :  { %v951_v17 = vpop.eup %950 }
 0x2c3   :  { %v547_v19 = vadd.f32 1.0, %v951_v17  ;;  %956 = vrcp.f32 %v549_v18 }
 0x2c5   :  { %958 = vrcp.f32 %v547_v19 }
 0x2cc   :  { %v953_v23 = vpop.eup %952 }
 0x2cd   :  { %v564_v31 = vsub.f32 1.0, %v953_v23  ;;  %v560_v47 = vmul.f32 %v953_v23, %v466_v40 }
 0x2ce   :  { %v955_v25 = vpop.eup %954 }
 0x2cf   :  { %v562_v29 = vsub.f32 1.0, %v955_v25  ;;  %v568_v42 = vmul.f32 %v564_v31, %v1094_v57  ;;  %v558_v44 = vmul.f32 %v955_v25, %v464_v36 }
 0x2d0   :  { %v957_v32 = vpop.eup %956 }
 0x2d1   :  { %v565_v35 = vsub.f32 1.0, %v957_v32  ;;  %v566_v39 = vmul.f32 %v562_v29, %v1090_v55  ;;  %v561_v41 = vmul.f32 %v957_v32, %v467_v34  ;;  %v572_v51 = vadd.f32 %v568_v42, %v560_v47 }
 0x2d2   :  { %v959_v33 = vpop.eup %958 }
 0x2d3   :  { %v563_v38 = vsub.f32 1.0, %v959_v33  ;;  %v569_v43 = vmul.f32 %v565_v35, %v1088_v54  ;;  %v559_v45 = vmul.f32 %v959_v33, %v465_v37  ;;  %v570_v49 = vadd.f32 %v566_v39, %v558_v44  ;;  %v824_v54 = vld [vmem:[%s1157_s4 + $0x3] ss:$0 sm:$0xff] }
 0x2d5   :  { %v567_v46 = vmul.f32 %v563_v38, %v1092_v56  ;;  %v1120_v48 = vadd.f32 %v569_v43, %v561_v41 }
 0x2d7   :  { %v1122_v50 = vadd.f32 %v567_v46, %v559_v45  ;;  %v575_v53 = vpack.c.bf16 %v1120_v48, %v572_v51 }
 0x2d9   :  { %v574_v52 = vpack.c.bf16 %v1122_v50, %v570_v49 }
 0x2db   :  { %894 = vmatprep.mubr.msk.bf16.mxu0 %vm42_vm0, %v574_v52  ;;  %900 = vmatprep.mubr.msk.bf16.mxu1 %vm42_vm0, %v574_v52 }
 0x2dc   :  { %895 = vmatmul.mubr.msk.bf16.vlgmr.msra.gmra.mxu0 %vm42_vm0, %v575_v53  ;;  %901 = vmatmul.mubr.msk.bf16.vlgmr.msra.gmra.mxu1 %vm42_vm0, %v575_v53 }
 0x39c   :  { %v902_v55 = vpop.f32.mrf.mxu1  ;;  %v896_v7 = vpop.f32.mrf.mxu0 }
 0x39d   :  { %v712_v56 = vadd.f32 %v902_v55, %v824_v54  ;;  %v642_v15 = vadd.f32 %v896_v7, %v817_v13 }
 0x39e   :  { %v703_v57 = vpop.f32.mrf.mxu1  ;;  %v633_v12 = vpop.f32.mrf.mxu0 }
 0x39f   :  { %v830_v58 = vmul.f32 -1.442695, %v712_v56  ;;  %v704_v59 = vadd.f32 %v824_v54, %v703_v57  ;;  %v634_v16 = vadd.f32 %v817_v13, %v633_v12  ;;  %v650_v19 = vmax.f32 %v642_v15, 0.0 }
 0x3a0   :  { %v903_v60 = vpop.f32.mrf.mxu1  ;;  %v897_v14 = vpop.f32.mrf.mxu0 }
 0x3a1   :  { %960 = vpow2.f32 %v830_v58  ;;  %v828_v61 = vmul.f32 -1.442695, %v704_v59  ;;  %v715_v62 = vadd.f32 %v903_v60, %v824_v54  ;;  %v648_v22 = vmax.f32 %v634_v16, 0.0 }
 0x3a2   :  { %v706_v63 = vpop.f32.mrf.mxu1  ;;  %v636_v18 = vpop.f32.mrf.mxu0  ;;  %v645_v23 = vadd.f32 %v897_v14, %v817_v13 }
 0x3a3   :  { %962 = vpow2.f32 %v828_v61  ;;  %v707_v0 = vadd.f32 %v824_v54, %v706_v63  ;;  %v831_v1 = vmul.f32 -1.442695, %v715_v62  ;;  %v637_v27 = vadd.f32 %v817_v13, %v636_v18 }
 0x3a4   :  { %v651_v33 = vmax.f32 %v645_v23, 0.0 }
 0x3a5   :  { %v829_v2 = vmul.f32 -1.442695, %v707_v0  ;;  %964 = vpow2.f32 %v831_v1  ;;  %v649_v36 = vmax.f32 %v637_v27, 0.0 }
 0x3a7   :  { %966 = vpow2.f32 %v829_v2 }
 0x3ae   :  { %v961_v3 = vpop.eup %960 }
 0x3af   :  { %v732_v4 = vadd.f32 1.0, %v961_v3 }
 0x3b0   :  { %v963_v5 = vpop.eup %962 }
 0x3b1   :  { %968 = vrcp.f32 %v732_v4  ;;  %v730_v6 = vadd.f32 1.0, %v963_v5 }
 0x3b2   :  { %v965_v8 = vpop.eup %964 }
 0x3b3   :  { %970 = vrcp.f32 %v730_v6  ;;  %v733_v10 = vadd.f32 1.0, %v965_v8 }
 0x3b4   :  { %v967_v9 = vpop.eup %966 }
 0x3b5   :  { %v731_v11 = vadd.f32 1.0, %v967_v9  ;;  %972 = vrcp.f32 %v733_v10 }
 0x3b7   :  { %974 = vrcp.f32 %v731_v11 }
 0x3be   :  { %v969_v17 = vpop.eup %968 }
 0x3bf   :  { %v748_v20 = vsub.f32 1.0, %v969_v17  ;;  %v744_v24 = vmul.f32 %v969_v17, %v650_v19 }
 0x3c0   :  { %v971_v21 = vpop.eup %970 }
 0x3c1   :  { %v752_v25 = vmul.f32 %v748_v20, %v572_v51  ;;  %v746_v26 = vsub.f32 1.0, %v971_v21  ;;  %v742_v30 = vmul.f32 %v971_v21, %v648_v22 }
 0x3c2   :  { %v973_v28 = vpop.eup %972 }
 0x3c3   :  { %v756_v29 = vadd.f32 %v752_v25, %v744_v24  ;;  %v750_v31 = vmul.f32 %v746_v26, %v570_v49  ;;  %v749_v34 = vsub.f32 1.0, %v973_v28  ;;  %v745_v38 = vmul.f32 %v973_v28, %v651_v33 }
 0x3c4   :  { %v975_v32 = vpop.eup %974 }
 0x3c5   :  { %760 = vst.msk [vmem:[%s1159_s5 + $0x10] sm:$0xff] %vm42_vm0, %v756_v29  ;;  %v754_v35 = vadd.f32 %v750_v31, %v742_v30  ;;  %v747_v37 = vsub.f32 1.0, %v975_v32  ;;  %v753_v39 = vmul.f32 %v749_v34, %v1120_v48  ;;  %v743_v40 = vmul.f32 %v975_v32, %v649_v36 }
 0x3c7   :  { %758 = vst.msk [vmem:[%s1159_s5] sm:$0xff] %vm42_vm0, %v754_v35  ;;  %v751_v41 = vmul.f32 %v747_v37, %v1122_v50  ;;  %v757_v42 = vadd.f32 %v753_v39, %v745_v38 }
 0x3c9   :  { %v755_v43 = vadd.f32 %v751_v41, %v743_v40  ;;  %761 = vst.msk [vmem:[%s1159_s5 + $0x18] sm:$0xff] %vm42_vm0, %v757_v42 }
 0x3cb   :  { %759 = vst.msk [vmem:[%s1159_s5 + $0x8] sm:$0xff] %vm42_vm0, %v755_v43 }

// kernel: fastspeech_forward.38
= control target key start
LH: loop header
LB: loop body
LE: loop exit
PB: predicated region body
PF: predicated region fallthrough
CT: control target
= control target key end

     0   :  { %vm14_vm0 = vcmask 123904   ;;  %v201_v0 = vmov 0.0   ;;  %s238_s18 = smov 0   ;;  %s259_s0 = inlined_call_operand.vmem [shape: f32[16,2,48], index: 0, kind: input, shape index: {}]   ;;  %s260_s1 = inlined_call_operand.vmem [shape: f32[16,48], index: 1, kind: input, shape index: {}]   ;;  %s261_s2 = inlined_call_operand.vmem [shape: f32[1,48], index: 2, kind: input, shape index: {}]   ;;  %s262_s3 = inlined_call_operand.vmem [shape: f32[16,2,16], index: 3, kind: output, shape index: {}]  }
   0x1   :  { %15 = vst.msk [vmem:[#allocation2] sm:$0x3] %vm14_vm0, %v201_v0  ;;  %v16_v1 = vld [vmem:[%s260_s1] sm:$0xff]  ;;  %v17_v2 = vld [vmem:[%s260_s1 + $0x8] sm:$0xff] }
   0x2   :  { %v158_v3 = vld [vmem:[%s261_s2] ss:$0 sm:$0xff] }
   0x3 LB: > { %v202_v4 = vmov 0.0   ;;  %vm203_vm1 = vmmov 0   ;;  %vm32_vm2 = vcmask 130048   ;;  %s204_s1 = smov 96   ;;  %s160_s2 = sshll.u32 %s199_s18, 1  ;;  %s199_s18 = sphi %s238_s18, %s24_s18  }
   0x4   : > { %165 = vmatprep.subr.mxu0 %v202_v4  ;;  %169 = vmatprep.mubr.msk.f32.mxu0 %vm203_vm1, %v202_v4  ;;  %s107_s21 = scalar_lea.vmem %s259_s0, %s160_s2  ;;  %s205_s22 = smov 32  }
   0x5   : > { %166 = vmatpush3.msra.mxu0 %v17_v2  ;;  %v108_v9 = vld [vmem:[%s107_s21] sm:$0x3]  ;;  %s206_s23 = smov 112   ;;  %s207_s24 = smov 16  }
   0x6   : > { %167 = vmatprep.subr.mxu0 %v202_v4  ;;  %s143_s27 = scalar_lea.vmem %s262_s3, %s160_s2  ;;  %s24_s18 = sadd.s32 1, %s199_s18  }
   0x7   : > { %168 = vmatpush3.msra.mxu0 %v16_v1  ;;  %p21_p0 = scmp.ge.s32.totalorder %s24_s18, 16  }
   0x8   : > { %v25_v5 = vld [vmem:[#allocation2] sm:$0x3] }
   0x9   : > { %170 = vmatmul.mubr.msk.f32.vlgmr.msra.gmra.mxu0 %vm32_vm2, %v25_v5 }
  0xc9   : > { %v102_v6 = vpop.f32.mrf.mxu0 }
  0xca   : > { %v103_v7 = vadd.f32 %v158_v3, %v102_v6 }
  0xcb   : > { %v171_v8 = vpop.f32.mrf.mxu0 }
  0xcc   : > { %117 = vrot.lane.b32.xlu0 %v103_v7, %s204_s1  ;;  %v109_v10 = vadd.f32 %v108_v9, %v103_v7 }
  0xce   : > { %v161_v11 = vmul.f32 -1.442695, %v109_v10 }
  0xd0   : > { %187 = vpow2.f32 %v161_v11 }
  0xdd   : > { %v188_v12 = vpop.eup %187 }
  0xde   : > { %v113_v13 = vadd.f32 1.0, %v188_v12 }
  0xe0   : > { %189 = vrcp.f32 %v113_v13 }
  0xed   : > { %v190_v14 = vpop.eup %189 }
  0xee   : > { %v127_v21 = vsub.f32 1.0, %v190_v14 }
 0x13e   : > { %v118_v15 = vpop.permute.xlu0 %117 }
 0x13f   : > { %v120_v16 = vmul.f32 %v190_v14, %v118_v15 }
 0x141   : > { %122 = vrot.lane.b32.xlu0 %v120_v16, %s205_s22 }
 0x1b3   : > { %v123_v17 = vpop.permute.xlu0 %122 }
 0x1b4   : > { %v125_v18 = vadd.f32 %v123_v17, %v108_v9 }
 0x1b6   : > { %191 = vtanh.f32 %v125_v18 }
 0x1c3   : > { %v192_v19 = vpop.eup %191 }
 0x1c4   : > { %129 = vrot.lane.b32.xlu1 %v192_v19, %s206_s23 }
 0x1c8   : > { %133 = vrot.lane.b32.xlu1 %v25_v5, %s207_s24 }
 0x236   : > { %v130_v20 = vpop.permute.xlu1 %129 }
 0x237   : > { %v132_v23 = vmul.f32 %v130_v20, %v127_v21 }
 0x23a   : > { %v134_v22 = vpop.permute.xlu1 %133 }
 0x23b   : > { %v136_v24 = vmul.f32 %v190_v14, %v134_v22 }
 0x23d   : > { %v137_v25 = vadd.f32 %v136_v24, %v132_v23 }
 0x23f   : > { %139 = vrot.lane.b32.xlu0 %v137_v25, %s206_s23 }
 0x2ae   :  { %23 = sbr.rel (!%p21_p0) target bundleno = 3 (0x3), region = 41 }
 0x2b1   : > { %v140_v26 = vpop.permute.xlu0 %139 }
 0x2b2   : > { %142 = vst.msk [vmem:[#allocation2] sm:$0x3] %vm14_vm0, %v140_v26  ;;  %144 = vst.msk [vmem:[%s143_s27] sm:$0x3] %vm14_vm0, %v140_v26 }

// kernel: fastspeech_forward.41
= control target key start
LH: loop header
LB: loop body
LE: loop exit
PB: predicated region body
PF: predicated region fallthrough
CT: control target
= control target key end

     0   :  { %vm59_vm0 = vcmask 261120   ;;  %v223_v3 = vmov 0   ;;  %s305_s0 = inlined_call_operand.vmem [shape: bf16[32,32], index: 0, kind: input, shape index: {}]   ;;  %s306_s1 = inlined_call_operand.vmem [shape: bf16[32,16], index: 1, kind: input, shape index: {}]   ;;  %s307_s2 = inlined_call_operand.vmem [shape: f32[1,16], index: 2, kind: input, shape index: {}]   ;;  %s308_s3 = inlined_call_operand.vmem [shape: f32[32,16], index: 3, kind: input, shape index: {}]   ;;  %s309_s4 = inlined_call_operand.vmem [shape: f32[32,1], index: 4, kind: input, shape index: {}]   ;;  %s310_s5 = inlined_call_operand.hbm [shape: f32[32,16], index: 5, kind: output, shape index: {}]  }
   0x1   :  { %v197_v0 = vld [vmem:[%s306_s1 + $0x8] sm:$0xff]   ;;  %v198_v1 = vld [vmem:[%s306_s1] sm:$0xff]   ;;  %196 = vset.pattern.permute.xlu1 %v223_v3  ;;  %195 = vset.pattern.permute.xlu0 %v223_v3  ;;  %v125_v4 = vld [vmem:[%s309_s4 + $0x10] sm:$0xff] }
   0x2   :  { %183 = vmatprep.subr.bf16.mxu0 %v197_v0  ;;  %v199_v2 = vld [vmem:[%s305_s0] sm:$0xff]   ;;  %139 = vperm.xlu1 %196, %v125_v4  }
   0x3   :  { %184 = vmatpush3.bf16.msra.mxu0 %v197_v0  ;;  %187 = vmatprep.mubr.msk.bf16.mxu0 %vm59_vm0, %v199_v2  ;;  %v123_v5 = vld [vmem:[%s309_s4] sm:$0xff] }
   0x4   :  { %185 = vmatprep.subr.bf16.mxu0 %v198_v1  ;;  %129 = vperm.xlu0 %195, %v123_v5  }
   0x5   :  { %10 = vsyncpa [#allocation3], 0  ;;  %v200_v6 = vld [vmem:[%s305_s0 + $0x8] sm:$0xff]   ;;  %v126_v7 = vld [vmem:[%s309_s4 + $0x18] sm:$0xff]  ;;  %vm151_vm1 = vcmask 130048   ;;  %s224_s15 = smov [#allocation2]  }
   0x6   :  { %v124_v8 = vld [vmem:[%s309_s4 + $0x8] sm:$0xff]  ;;  %144 = vperm.xlu1 %196, %v126_v7   ;;  %v172_v9 = vld [vmem:[%s307_s2] ss:$0 sm:$0xff]  ;;  %v117_v11 = vld [vmem:[%s308_s3 + $0x10] sm:$0xff]  ;;  %s161_s16 = sshll.u32 %s224_s15, 4  ;;  %s162_s16 = int_to_ptr.vmem [resolvable:$true] %s161_s16 }
   0x7   :  { %186 = vmatpush3.bf16.msra.mxu0 %v198_v1  ;;  %v115_v15 = vld [vmem:[%s308_s3] sm:$0xff]  ;;  %v118_v20 = vld [vmem:[%s308_s3 + $0x18] sm:$0xff]  ;;  %v116_v25 = vld [vmem:[%s308_s3 + $0x8] sm:$0xff]  ;;  %s201_s3 = scalar_lea.vmem %s162_s16, 512  ;;  %p206_p1 = scmp.lt.s32.totalorder %s162_s16, %s162_s16 }
   0x8   :  { %134 = vperm.xlu0 %195, %v124_v8   ;;  %p202_p0 = scmp.ne.s32.totalorder %s162_s16, %s201_s3  ;;  %p207_p2 = scmp.lt.s32.totalorder %s201_s3, %s201_s3 }
   0xa   :  { %188 = vmatmul.mubr.msk.bf16.vlgmr.msra.gmra.mxu0 %vm59_vm0, %v200_v6  ;;  %p208_p3 = por %p207_p2, %p206_p1 }
   0xc   :  { %p209_p4 = pnand %p208_p3, %p202_p0 }
  0x7d   :  { %v140_v13 = vpop.permute.xlu1 %139 }
  0x7f   :  { %v130_v18 = vpop.permute.xlu0 %129 }
  0x81   :  { %v145_v29 = vpop.permute.xlu1 %144 }
  0x83   :  { %v135_v32 = vpop.permute.xlu0 %134 }
  0xca   :  { %v189_v10 = vpop.f32.mrf.mxu0 }
  0xcb   :  { %v109_v12 = vadd.f32 %v189_v10, %v172_v9 }
  0xcc   :  { %v100_v14 = vpop.f32.mrf.mxu0 }
  0xcd   :  { %v121_v16 = vadd.f32 %v117_v11, %v109_v12  ;;  %v101_v17 = vadd.f32 %v172_v9, %v100_v14 }
  0xce   :  { %v190_v19 = vpop.f32.mrf.mxu0 }
  0xcf   :  { %v149_v21 = vmul.f32 %v140_v13, %v121_v16  ;;  %v119_v22 = vadd.f32 %v115_v15, %v101_v17  ;;  %v112_v23 = vadd.f32 %v190_v19, %v172_v9 }
  0xd0   :  { %v103_v24 = vpop.f32.mrf.mxu0 }
  0xd1   :  { %154 = vst.msk [vmem:[#allocation2 + $0x10] sm:$0xff] %vm151_vm1, %v149_v21  ;;  %v147_v26 = vmul.f32 %v130_v18, %v119_v22  ;;  %v122_v27 = vadd.f32 %v118_v20, %v112_v23  ;;  %v104_v28 = vadd.f32 %v172_v9, %v103_v24 }
  0xd3   :  { %152 = vst.msk [vmem:[#allocation2] sm:$0xff] %vm151_vm1, %v147_v26  ;;  %v150_v30 = vmul.f32 %v145_v29, %v122_v27  ;;  %v120_v31 = vadd.f32 %v116_v25, %v104_v28 }
  0xd5   :  { %155 = vst.msk [vmem:[#allocation2 + $0x18] sm:$0xff] %vm151_vm1, %v150_v30  ;;  %v148_v33 = vmul.f32 %v135_v32, %v120_v31 }
  0xd7   :  { %153 = vst.msk [vmem:[#allocation2 + $0x8] sm:$0xff] %vm151_vm1, %v148_v33 }
  0xd8   :  { %212 = shalt.err (!%p209_p4)
}
  0xd9   :  { %s225_s17 = smov 128   ;;  %s226_s18 = smov 8  }
  0xda   :  { %167 = dma.vmem_to_hbm [thread:$0]  %s162_s16, 512, %s310_s5, [#allocation3], %s225_s17, %s225_s17, %s226_s18  }
  0xdb   :  { %221 = dma.done.wait [#allocation3], 512  }
  0xdc   :  { %222 = vsyncadd [#allocation3], 4294966784 }
  0xdd   :  { %171 = vsyncpa [#allocation3], 1 }

// kernel: fastspeech_forward.25
= control target key start
LH: loop header
LB: loop body
LE: loop exit
PB: predicated region body
PF: predicated region fallthrough
CT: control target
= control target key end

     0   :  { %s631_s18 = smov 0   ;;  %s688_s0 = inlined_call_operand.vmem [shape: f32[2,10,32], index: 0, kind: input, shape index: {}]   ;;  %s689_s1 = inlined_call_operand.vmem [shape: bf16[3,32,32], index: 1, kind: input, shape index: {}]   ;;  %s690_s2 = inlined_call_operand.vmem [shape: f32[1,32], index: 2, kind: input, shape index: {}]   ;;  %s691_s3 = inlined_call_operand.vmem [shape: f32[1,32], index: 3, kind: input, shape index: {}]   ;;  %s692_s4 = inlined_call_operand.vmem [shape: f32[1,32], index: 4, kind: input, shape index: {}]   ;;  %s693_s5 = inlined_call_operand.vmem [shape: f32[2,8,32], index: 5, kind: output, shape index: {}]  }
   0x1 LB: > { %s509_s19 = sadd.s32 4294967295, %s597_s18   ;;  %p513_p0 = scmp.ge.s32.totalorder %s597_s18, 1  ;;  %s597_s18 = sphi %s631_s18, %s15_s18  }
   0x2   : > { %p187_p1 = scmp.lt.s32.totalorder %s597_s18, 3 }
   0x4   : > { %p188_p2 = pnand %p513_p0, %p187_p1 }
   0x5   : > { %p214_p3 = scmp.lt.s32.totalorder (!%p188_p2), %s509_s19, 1 }
   0x6   : > { %191 = sbr.rel (%p188_p2) target bundleno = 539 (0x21b), region = 40 }
   0xb   : > { %v583_v0 = vld [vmem:[%s689_s1 + $0x18] sm:$0xff]   ;;  %v599_v1 = vmov 0.0   ;;  %v584_v2 = vld [vmem:[%s689_s1 + $0x8] sm:$0xff]   ;;  %v585_v3 = vld [vmem:[%s689_s1 + $0x10] sm:$0xff]   ;;  %vm600_vm0 = vmmov 0   ;;  %s695_s19 = smov (!%p214_p3, %s509_s19), 1 }
   0xc   : > { %549 = vmatprep.subr.bf16.mxu0 %v599_v1  ;;  %557 = vmatprep.subr.bf16.mxu1 %v599_v1  ;;  %v586_v4 = vld [vmem:[%s689_s1] sm:$0xff]   ;;  %s539_s28 = sshll.u32 %s695_s19, 4  ;;  %vm255_vm1 = vcmask 261120   ;;  %v587_v11 = vld [vmem:[%s689_s1 + $0x28] sm:$0xff]   ;;  %s516_s17 = sshll.u32 %s695_s19, 3 }
   0xd   : > { %550 = vmatpush3.bf16.msra.mxu0 %v583_v0  ;;  %553 = vmatprep.mubr.msk.bf16.mxu0 %vm600_vm0, %v599_v1  ;;  %s218_s6 = scalar_lea.vmem %s688_s0, %s539_s28  ;;  %v588_v13 = vld [vmem:[%s689_s1 + $0x20] sm:$0xff]   ;;  %s222_s22 = scalar_lea.vmem %s693_s5, %s516_s17 }
   0xe   : > { %558 = vmatpush3.bf16.msra.mxu1 %v584_v2  ;;  %551 = vmatprep.subr.bf16.mxu0 %v599_v1  ;;  %v224_v5 = vld [vmem:[%s218_s6] sm:$0xff]  ;;  %v225_v6 = vld [vmem:[%s218_s6 + $0x8] sm:$0x3] }
   0xf   : > { %559 = vmatprep.subr.bf16.mxu1 %v599_v1  ;;  %561 = vmatprep.mubr.msk.bf16.mxu1 %vm600_vm0, %v599_v1  ;;  %v226_v7 = vpack.c.bf16 %v225_v6, %v224_v5  ;;  %v534_v25 = vld [vmem:[%s690_s2] ss:$0 sm:$0xff] }
  0x10   : > { %v535_v41 = vld [vmem:[%s691_s3] ss:$0 sm:$0xff] }
  0x11   : > { %552 = vmatpush3.bf16.msra.mxu0 %v585_v3  ;;  %v237_v8 = vshrl.u32 %v226_v7, 16  ;;  %v239_v9 = vshll.u32 %v226_v7, 16  ;;  %v359_v14 = vrot.slane %v226_v7, 1  ;;  %v536_v43 = vld [vmem:[%s692_s4] ss:$0 sm:$0xff] }
  0x12   : > { %560 = vmatpush3.bf16.msra.mxu1 %v586_v4  ;;  %565 = vmatprep.subr.bf16.mxu0 %v599_v1 }
  0x13   : > { %v241_v10 = vrot.slane %v239_v9, 1 }
  0x15   : > { %562 = vmatmul.mubr.msk.bf16.vlgmr.msra.gmra.mxu1 %vm255_vm1, %v226_v7  ;;  %v242_v12 = vor.u32 %v241_v10, %v237_v8 }
  0x17   : > { %554 = vmatmul.mubr.msk.bf16.vlgmr.msra.gmra.mxu0 %vm255_vm1, %v242_v12 }
  0x18   : > { %566 = vmatpush3.bf16.msra.mxu0 %v587_v11  ;;  %569 = vmatprep.mubr.msk.bf16.mxu0 %vm600_vm0, %v599_v1 }
  0x19   : > { %567 = vmatprep.subr.bf16.mxu0 %v599_v1 }
  0x1c   : > { %568 = vmatpush3.bf16.msra.mxu0 %v588_v13 }
  0x1f   : > { %570 = vmatmul.mubr.msk.bf16.vlgmr.msra.gmra.mxu0 %vm255_vm1, %v359_v14 }
  0xd5   : > { %v347_v15 = vpop.f32.mrf.mxu1 }
  0xd7   : > { %v563_v16 = vpop.f32.mrf.mxu1  ;;  %v293_v18 = vpop.f32.mrf.mxu0 }
  0xd8   : > { %v348_v23 = vadd.f32 %v347_v15, %v293_v18 }
  0xd9   : > { %v350_v17 = vpop.f32.mrf.mxu1  ;;  %v555_v20 = vpop.f32.mrf.mxu0 }
  0xdb   : > { %v564_v19 = vpop.f32.mrf.mxu1  ;;  %v296_v21 = vpop.f32.mrf.mxu0 }
  0xdd   : > { %v556_v22 = vpop.f32.mrf.mxu0 }
  0xdf   : > { %v409_v24 = vpop.f32.mrf.mxu0 }
  0xe0   : > { %v415_v26 = vadd.f32 %v409_v24, %v348_v23 }
  0xe1   : > { %v571_v27 = vpop.f32.mrf.mxu0 }
  0xe2   : > { %v423_v28 = vadd.f32 %v534_v25, %v415_v26 }
  0xe3   : > { %v412_v29 = vpop.f32.mrf.mxu0 }
  0xe4   : > { %v424_v30 = vsel %vm255_vm1, %v423_v28, 0.0 }
  0xe5   : > { %425 = vadd.xlane.f32.xlu0 %v424_v30  ;;  %v572_v31 = vpop.f32.mrf.mxu0 }
 0x16e   : > { %v426_v32 = vpop.xlane.xlu0 %425 }
 0x16f   : > { %v428_v33 = vmul.f32 0.03125, %v426_v32 }
 0x171   : > { %v429_v34 = vsub.f32 %v423_v28, %v428_v33 }
 0x173   : > { %v430_v35 = vmul.f32 %v429_v34, %v429_v34 }
 0x175   : > { %v431_v36 = vsel %vm255_vm1, %v430_v35, 0.0 }
 0x176   : > { %432 = vadd.xlane.f32.xlu0 %v431_v36 }
 0x1ff   : > { %v433_v37 = vpop.xlane.xlu0 %432 }
 0x200   : > { %v434_v38 = vmul.f32 0.03125, %v433_v37 }
 0x202   : > { %v435_v39 = vadd.f32 1e-05, %v434_v38 }
 0x204   : > { %589 = vrsqrt.f32 %v435_v39 }
 0x211   : > { %v590_v40 = vpop.eup %589 }
 0x212   : > { %v437_v42 = vmul.f32 %v590_v40, %v429_v34 }
 0x214   : > { %v445_v44 = vmul.f32 %v535_v41, %v437_v42 }
 0x216   : > { %v453_v45 = vadd.f32 %v536_v43, %v445_v44 }
 0x218   : > { %v454_v46 = vmax.f32 %v453_v45, 0.0 }
 0x21a   : > { %455 = vst.msk [vmem:[%s222_s22] sm:$0xff] %vm255_vm1, %v454_v46 }
 0x21b PF: > { %s15_s18 = sadd.s32 1, %s597_s18  }
 0x21c   : > { %p12_p4 = scmp.ge.s32.totalorder %s15_s18, 4  }
 0x21e   :  { %14 = sbr.rel (!%p12_p4) target bundleno = 1 (0x1), region = 72 }

// kernel: fastspeech_forward.26
= control target key start
LH: loop header
LB: loop body
LE: loop exit
PB: predicated region body
PF: predicated region fallthrough
CT: control target
= control target key end

     0   :  { %s723_s26 = smov 0   ;;  %s783_s0 = inlined_call_operand.vmem [shape: f32[2,10,32], index: 0, kind: input, shape index: {}]   ;;  %s784_s1 = inlined_call_operand.vmem [shape: bf16[3,32,32], index: 1, kind: input, shape index: {}]   ;;  %s785_s2 = inlined_call_operand.vmem [shape: f32[1,32], index: 2, kind: input, shape index: {}]   ;;  %s786_s3 = inlined_call_operand.vmem [shape: f32[1,32], index: 3, kind: input, shape index: {}]   ;;  %s787_s4 = inlined_call_operand.vmem [shape: f32[1,32], index: 4, kind: input, shape index: {}]   ;;  %s788_s5 = inlined_call_operand.vmem [shape: f32[1,32], index: 5, kind: input, shape index: {}]   ;;  %s789_s6 = inlined_call_operand.<no memory space> [shape: f32[1,1], index: 6, kind: input, shape index: {}]   ;;  %s790_s7 = inlined_call_operand.vmem [shape: f32[2,8,1], index: 7, kind: output, shape index: {}]  }
   0x1   :  { %v12_v0 = vstv %s789_s6 }
   0x2   :  { %13 = vst [vmem:[#allocation2] sm:$0x1] %v12_v0 }
   0x3 LB: > { %s586_s27 = sadd.s32 4294967295, %s676_s26   ;;  %p590_p0 = scmp.ge.s32.totalorder %s676_s26, 1  ;;  %s676_s26 = sphi %s723_s26, %s19_s26  }
   0x4   : > { %p239_p1 = scmp.lt.s32.totalorder %s676_s26, 3 }
   0x6   : > { %p240_p2 = pnand %p590_p0, %p239_p1 }
   0x7   : > { %p270_p3 = scmp.lt.s32.totalorder (!%p240_p2), %s586_s27, 1 }
   0x8   : > { %243 = sbr.rel (%p240_p2) target bundleno = 686 (0x2ae), region = 48 }
   0xd   : > { %v662_v1 = vld [vmem:[%s784_s1 + $0x18] sm:$0xff]   ;;  %v678_v2 = vmov 0.0   ;;  %v663_v3 = vld [vmem:[%s784_s1 + $0x8] sm:$0xff]   ;;  %v664_v4 = vld [vmem:[%s784_s1 + $0x10] sm:$0xff]   ;;  %vm679_vm0 = vmmov 0   ;;  %s792_s27 = smov (!%p270_p3, %s586_s27), 1 }
   0xe   : > { %628 = vmatprep.subr.bf16.mxu0 %v678_v2  ;;  %636 = vmatprep.subr.bf16.mxu1 %v678_v2  ;;  %v665_v5 = vld [vmem:[%s784_s1] sm:$0xff]   ;;  %s618_s12 = sshll.u32 %s792_s27, 4  ;;  %vm311_vm1 = vcmask 261120   ;;  %v666_v12 = vld [vmem:[%s784_s1 + $0x28] sm:$0xff]   ;;  %s593_s6 = sshll.u32 %s792_s27, 3  ;;  %vm531_vm2 = vcmask 7168  }
   0xf   : > { %629 = vmatpush3.bf16.msra.mxu0 %v662_v1  ;;  %632 = vmatprep.mubr.msk.bf16.mxu0 %vm679_vm0, %v678_v2  ;;  %s274_s15 = scalar_lea.vmem %s783_s0, %s618_s12  ;;  %v667_v14 = vld [vmem:[%s784_s1 + $0x20] sm:$0xff]   ;;  %s278_s9 = scalar_lea.vmem %s790_s7, %s593_s6 }
  0x10   : > { %637 = vmatpush3.bf16.msra.mxu1 %v663_v3  ;;  %630 = vmatprep.subr.bf16.mxu0 %v678_v2  ;;  %v280_v6 = vld [vmem:[%s274_s15] sm:$0xff]  ;;  %v281_v7 = vld [vmem:[%s274_s15 + $0x8] sm:$0x3] }
  0x11   : > { %638 = vmatprep.subr.bf16.mxu1 %v678_v2  ;;  %640 = vmatprep.mubr.msk.bf16.mxu1 %vm679_vm0, %v678_v2  ;;  %v282_v8 = vpack.c.bf16 %v281_v7, %v280_v6  ;;  %v611_v26 = vld [vmem:[%s785_s2] ss:$0 sm:$0xff] }
  0x12   : > { %v612_v42 = vld [vmem:[%s786_s3] ss:$0 sm:$0xff] }
  0x13   : > { %631 = vmatpush3.bf16.msra.mxu0 %v664_v4  ;;  %v293_v9 = vshrl.u32 %v282_v8, 16  ;;  %v295_v10 = vshll.u32 %v282_v8, 16  ;;  %v415_v15 = vrot.slane %v282_v8, 1  ;;  %v613_v44 = vld [vmem:[%s787_s4] ss:$0 sm:$0xff] }
  0x14   : > { %639 = vmatpush3.bf16.msra.mxu1 %v665_v5  ;;  %644 = vmatprep.subr.bf16.mxu0 %v678_v2  ;;  %v614_v47 = vld [vmem:[%s788_s5] ss:$0 sm:$0xff] }
  0x15   : > { %v297_v11 = vrot.slane %v295_v10, 1  ;;  %v615_v51 = vld [vmem:[#allocation2] ss:$0 sm:$0xff] }
  0x17   : > { %641 = vmatmul.mubr.msk.bf16.vlgmr.msra.gmra.mxu1 %vm311_vm1, %v282_v8  ;;  %v298_v13 = vor.u32 %v297_v11, %v293_v9 }
  0x19   : > { %633 = vmatmul.mubr.msk.bf16.vlgmr.msra.gmra.mxu0 %vm311_vm1, %v298_v13 }
  0x1a   : > { %645 = vmatpush3.bf16.msra.mxu0 %v666_v12  ;;  %648 = vmatprep.mubr.msk.bf16.mxu0 %vm679_vm0, %v678_v2 }
  0x1b   : > { %646 = vmatprep.subr.bf16.mxu0 %v678_v2 }
  0x1e   : > { %647 = vmatpush3.bf16.msra.mxu0 %v667_v14 }
  0x21   : > { %649 = vmatmul.mubr.msk.bf16.vlgmr.msra.gmra.mxu0 %vm311_vm1, %v415_v15 }
  0xd7   : > { %v403_v16 = vpop.f32.mrf.mxu1 }
  0xd9   : > { %v642_v17 = vpop.f32.mrf.mxu1  ;;  %v349_v19 = vpop.f32.mrf.mxu0 }
  0xda   : > { %v404_v24 = vadd.f32 %v403_v16, %v349_v19 }
  0xdb   : > { %v406_v18 = vpop.f32.mrf.mxu1  ;;  %v634_v21 = vpop.f32.mrf.mxu0 }
  0xdd   : > { %v643_v20 = vpop.f32.mrf.mxu1  ;;  %v352_v22 = vpop.f32.mrf.mxu0 }
  0xdf   : > { %v635_v23 = vpop.f32.mrf.mxu0 }
  0xe1   : > { %v465_v25 = vpop.f32.mrf.mxu0 }
  0xe2   : > { %v471_v27 = vadd.f32 %v465_v25, %v404_v24 }
  0xe3   : > { %v650_v28 = vpop.f32.mrf.mxu0 }
  0xe4   : > { %v479_v29 = vadd.f32 %v611_v26, %v471_v27 }
  0xe5   : > { %v468_v30 = vpop.f32.mrf.mxu0 }
  0xe6   : > { %v480_v31 = vsel %vm311_vm1, %v479_v29, 0.0 }
  0xe7   : > { %481 = vadd.xlane.f32.xlu0 %v480_v31  ;;  %v651_v32 = vpop.f32.mrf.mxu0 }
 0x170   : > { %v482_v33 = vpop.xlane.xlu0 %481 }
 0x171   : > { %v484_v34 = vmul.f32 0.03125, %v482_v33 }
 0x173   : > { %v485_v35 = vsub.f32 %v479_v29, %v484_v34 }
 0x175   : > { %v486_v36 = vmul.f32 %v485_v35, %v485_v35 }
 0x177   : > { %v487_v37 = vsel %vm311_vm1, %v486_v36, 0.0 }
 0x178   : > { %488 = vadd.xlane.f32.xlu0 %v487_v37 }
 0x201   : > { %v489_v38 = vpop.xlane.xlu0 %488 }
 0x202   : > { %v490_v39 = vmul.f32 0.03125, %v489_v38 }
 0x204   : > { %v491_v40 = vadd.f32 1e-05, %v490_v39 }
 0x206   : > { %668 = vrsqrt.f32 %v491_v40 }
 0x213   : > { %v669_v41 = vpop.eup %668 }
 0x214   : > { %v493_v43 = vmul.f32 %v669_v41, %v485_v35 }
 0x216   : > { %v501_v45 = vmul.f32 %v612_v42, %v493_v43 }
 0x218   : > { %v509_v46 = vadd.f32 %v613_v44, %v501_v45 }
 0x21a   : > { %v510_v48 = vmax.f32 %v509_v46, 0.0 }
 0x21c   : > { %v518_v49 = vmul.f32 %v614_v47, %v510_v48 }
 0x21e   : > { %v519_v50 = vsel %vm311_vm1, %v518_v49, 0.0 }
 0x21f   : > { %520 = vadd.xlane.f32.xlu1 %v519_v50 }
 0x2a8   : > { %v521_v52 = vpop.xlane.xlu1 %520 }
 0x2a9   : > { %v529_v53 = vadd.f32 %v615_v51, %v521_v52 }
 0x2ab   : > { %v530_v54 = vmax.f32 %v529_v53, 0.0 }
 0x2ad   : > { %532 = vst.msk [vmem:[%s278_s9] sm:$0xff] %vm531_vm2, %v530_v54 }
 0x2ae PF: > { %s19_s26 = sadd.s32 1, %s676_s26  }
 0x2af   : > { %p16_p4 = scmp.ge.s32.totalorder %s19_s26, 4  }
 0x2b1   :  { %18 = sbr.rel (!%p16_p4) target bundleno = 3 (0x3), region = 80 }

</bundles_post_ra>
